<compile_context>
chip_gen: v7x
topology: tpu7x:2x2x1
jax: 0.10.0
libtpu: 0.0.40
codegen_flags: <defaults>
</compile_context>

<pallas_src>
import jax
import jax.numpy as jnp
from jax.experimental import pallas as pl
from jax.experimental.pallas import tpu as pltpu

CIN = 3
COUT = 512
H = W = 16
POOL = 4
HP = H // POOL               # 4
WP = W // POOL               # 4
HWP = HP * WP                # 16
KDIM = 9 * CIN               # 27
KDIM_PAD = 32                # pad conv contraction dim to a clean size
FC_IN = COUT * HP * WP       # 8192  (original: 512*56*56)
FC_OUT = 512
GRU_H = 128
NGATE = 3 * GRU_H            # 384
TN = 128                     # N tile of the folded gate projection (3 tiles)
ROW_TILE = 64                # conv_pool row tile (2 tiles -> parallel axis)


# ------------- kernel A: conv(1,3,3) + maxpool(1,4,4) over a row tile --------
def conv_pool_kernel(p_ref, w_ref, b_ref, o_ref):
    # p_ref: (16, ROW_TILE, KDIM_PAD) bf16, pool-window-position major
    # w_ref: (KDIM_PAD, COUT) bf16    b_ref: (1, COUT) f32
    # o_ref: (ROW_TILE, COUT) bf16
    npos, tr, kdim = p_ref.shape
    # one matmul: single RHS push, 16*ROW_TILE LHS rows streamed past it
    acc = jnp.dot(p_ref[...].reshape(npos * tr, kdim), w_ref[...],
                  preferred_element_type=jnp.float32)          # (npos*tr, COUT)
    acc = acc.reshape(npos, tr, acc.shape[-1])
    # 4x4 max pool == elementwise max over the 16 position slabs (pure VPU)
    m = acc[0]
    for i in range(1, npos):
        m = jnp.maximum(m, acc[i])
    # per-channel bias commutes with the max -> add once at the end
    o_ref[...] = (m + b_ref[...]).astype(o_ref.dtype)          # one lane-dense store


def conv_pool(patches, w, b):
    npos, rows, kdim = patches.shape
    cout = w.shape[1]
    assert rows % ROW_TILE == 0
    return pl.pallas_call(
        conv_pool_kernel,
        out_shape=jax.ShapeDtypeStruct((rows, cout), jnp.bfloat16),
        grid_spec=pltpu.PrefetchScalarGridSpec(
            num_scalar_prefetch=0,
            grid=(rows // ROW_TILE,),
            in_specs=[
                pl.BlockSpec((npos, ROW_TILE, kdim), lambda r: (0, r, 0)),
                pl.BlockSpec((kdim, cout), lambda r: (0, 0)),
                pl.BlockSpec((1, cout), lambda r: (0, 0)),
            ],
            out_specs=pl.BlockSpec((ROW_TILE, cout), lambda r: (r, 0)),
        ),
        compiler_params=pltpu.CompilerParams(dimension_semantics=("parallel",)),
    )(patches, w, b)


# ------------- kernel B: folded fc + GRU input projection (all timesteps) ----
def gate_proj_kernel(x_ref, w_ref, b_ref, o_ref):
    # x_ref: (rows, FC_IN) bf16 (constant index map -> DMA'd once)
    # w_ref: (1, FC_IN, TN) bf16 contiguous block   b_ref: (1, TN) f32
    # o_ref: (rows, TN) f32
    o_ref[...] = (jnp.dot(x_ref[...], w_ref[0],
                          preferred_element_type=jnp.float32) + b_ref[...])


def gate_proj(x, w_blocks, b):
    rows, k = x.shape
    nblk, k2, tn = w_blocks.shape
    assert k == k2 and rows % 8 == 0
    return pl.pallas_call(
        gate_proj_kernel,
        out_shape=jax.ShapeDtypeStruct((rows, nblk * tn), jnp.float32),
        grid_spec=pltpu.PrefetchScalarGridSpec(
            num_scalar_prefetch=0,
            grid=(nblk,),                       # full K per step, parallel over N
            in_specs=[
                pl.BlockSpec((rows, k), lambda n: (0, 0)),
                pl.BlockSpec((1, k, tn), lambda n: (n, 0, 0)),
                pl.BlockSpec((1, tn), lambda n: (0, n)),
            ],
            out_specs=pl.BlockSpec((rows, tn), lambda n: (0, n)),
        ),
        compiler_params=pltpu.CompilerParams(dimension_semantics=("parallel",)),
    )(x, w_blocks, b)


# ------------- kernel C: GRU recurrence, single program, unrolled timesteps --
def gru_kernel(gi_ref, whh_ref, bhh_ref, o_ref):
    m_, b_, _ = gi_ref.shape
    whh = whh_ref[...]
    bhh = bhh_ref[...]
    h = jnp.zeros((b_, GRU_H), jnp.float32)
    for t in range(m_):                         # static unroll (M is tiny)
        gi = gi_ref[t]                          # (B, 3H) = x@W_ih + b_ih (fc folded)
        gh = jnp.dot(h, whh, preferred_element_type=jnp.float32) + bhh
        r = jax.nn.sigmoid(gi[:, 0:GRU_H] + gh[:, 0:GRU_H])
        z = jax.nn.sigmoid(gi[:, GRU_H:2 * GRU_H] + gh[:, GRU_H:2 * GRU_H])
        n = jnp.tanh(gi[:, 2 * GRU_H:] + r * gh[:, 2 * GRU_H:])
        h = (1.0 - z) * n + z * h
        # VMEM store into the resident output block; HBM writeback happens once.
        o_ref[t] = h


def gru(gi_seq, whh, bhh):
    m_, b_, ng = gi_seq.shape
    return pl.pallas_call(
        gru_kernel,
        out_shape=jax.ShapeDtypeStruct((m_, b_, GRU_H), jnp.float32),
        grid_spec=pltpu.PrefetchScalarGridSpec(
            num_scalar_prefetch=0,
            grid=(1,),
            in_specs=[
                pl.BlockSpec((m_, b_, ng), lambda i: (0, 0, 0)),
                pl.BlockSpec((GRU_H, ng), lambda i: (0, 0)),
                pl.BlockSpec((1, ng), lambda i: (0, 0)),
            ],
            out_specs=pl.BlockSpec((m_, b_, GRU_H), lambda i: (0, 0, 0)),
        ),
        compiler_params=pltpu.CompilerParams(dimension_semantics=("arbitrary",)),
    )(gi_seq, whh, bhh)


# ------------- offline weight prep -------------------------------------------
def prepare_params(raw):
    # Fold fc into the GRU input projection:
    #   gi = feats @ (fc_w @ gru_wih) + (fc_b @ gru_wih + gru_bih)
    w_eff = raw["fc_w"] @ raw["gru_wih"]                        # (FC_IN, 3H) f32
    b_eff = raw["fc_b"] @ raw["gru_wih"] + raw["gru_bih"]       # (1, 3H) f32
    # Pre-block into contiguous per-N-tile slabs: (NGATE/TN, FC_IN, TN) bf16.
    w_blocks = (w_eff.astype(jnp.bfloat16)
                .reshape(FC_IN, NGATE // TN, TN)
                .transpose(1, 0, 2))
    # Pad conv contraction dim 27 -> 32 (zeros), bf16 weight stream.
    conv_w = jnp.pad(raw["conv_w"], ((0, KDIM_PAD - KDIM), (0, 0)))
    return {
        "conv_w": conv_w.astype(jnp.bfloat16),                  # (32, 512)
        "conv_b": raw["conv_b"],                                # (1, 512) f32
        "w_blocks": w_blocks,                                   # (3, 8192, 128) bf16
        "b_eff": b_eff,                                         # (1, 384) f32
        "gru_whh": raw["gru_whh"],                              # (128, 384) f32
        "gru_bhh": raw["gru_bhh"],                              # (1, 384) f32
    }


# ------------- full forward pass ----------------------------------------------
def local_content_extractor(x, kp):
    B, M, Hh, Ww, C = x.shape
    nf = B * M
    # permute(0,4,1,2,3) + Conv3d(k=(1,3,3), pad=(0,1,1)) == per-frame 3x3 conv.
    frames = x.reshape(nf, Hh, Ww, C)
    xp = jnp.pad(frames, ((0, 0), (1, 1), (1, 1), (0, 0)))
    cols = [xp[:, kh:kh + Hh, kw:kw + Ww, :] for kh in range(3) for kw in range(3)]
    patches = jnp.concatenate(cols, axis=-1)                    # (nf, H, W, 27)
    patches = jnp.pad(patches, ((0, 0), (0, 0), (0, 0), (0, KDIM_PAD - KDIM)))
    # pool-window-position-major layout: 4x4 max pool == max over 16 slabs
    patches = patches.reshape(nf, HP, POOL, WP, POOL, KDIM_PAD)
    patches = patches.transpose(2, 4, 0, 1, 3, 5).reshape(
        POOL * POOL, nf * HWP, KDIM_PAD).astype(jnp.bfloat16)

    pooled = conv_pool(patches, kp["conv_w"], kp["conv_b"])     # (nf*HWP, 512) bf16

    # Reproduce torch's `x.view(B, m, c*h'*w')` on the NCDHW-contiguous tensor,
    # producing the rows directly in time-major order for the GRU.
    # TODO(synk): this NCDHW view genuinely mixes channel/frame dims, so it
    # cannot be folded into w_eff's row order; it stays as a tiny XLA relayout.
    ncdhw = pooled.reshape(B, M, HWP, COUT).transpose(0, 3, 1, 2)   # (B, C, M, H'W')
    feats = (ncdhw.reshape(B, M, FC_IN)
             .transpose(1, 0, 2)                                    # time-major rows
             .reshape(nf, FC_IN))                                   # (M*B, FC_IN) bf16

    gi = gate_proj(feats, kp["w_blocks"], kp["b_eff"])          # (M*B, 3H) f32
    gi_seq = gi.reshape(M, B, NGATE)                            # already time-major

    out = gru(gi_seq, kp["gru_whh"], kp["gru_bhh"])             # (M, B, GRU_H)
    return jnp.transpose(out, (1, 0, 2))                        # (B, M, GRU_H)


# ------------- pure-JAX f32 reference (unfolded fc -> GRU) ---------------------
def reference(x, raw):
    B, M, Hh, Ww, C = x.shape
    frames = x.reshape(B * M, Hh, Ww, C)
    xp = jnp.pad(frames, ((0, 0), (1, 1), (1, 1), (0, 0)))
    cols = [xp[:, kh:kh + Hh, kw:kw + Ww, :] for kh in range(3) for kw in range(3)]
    patches = jnp.concatenate(cols, axis=-1)                    # (B*M, H, W, 27)
    conv = jnp.einsum("nhwk,kc->nhwc", patches, raw["conv_w"]) + raw["conv_b"][0]
    pooled = conv.reshape(B * M, HP, POOL, WP, POOL, COUT).max(axis=(2, 4))
    ncdhw = pooled.reshape(B, M, HP, WP, COUT).transpose(0, 4, 1, 2, 3)
    fc_o = ncdhw.reshape(B * M, FC_IN) @ raw["fc_w"] + raw["fc_b"][0]
    fc_o = fc_o.reshape(B, M, FC_OUT)

    def step(h, x_t):
        gi = x_t @ raw["gru_wih"] + raw["gru_bih"][0]
        gh = h @ raw["gru_whh"] + raw["gru_bhh"][0]
        r = jax.nn.sigmoid(gi[:, :GRU_H] + gh[:, :GRU_H])
        z = jax.nn.sigmoid(gi[:, GRU_H:2 * GRU_H] + gh[:, GRU_H:2 * GRU_H])
        n = jnp.tanh(gi[:, 2 * GRU_H:] + r * gh[:, 2 * GRU_H:])
        h_new = (1.0 - z) * n + z * h
        return h_new, h_new

    h0 = jnp.zeros((B, GRU_H), jnp.float32)
    _, outs = jax.lax.scan(step, h0, jnp.transpose(fc_o, (1, 0, 2)))
    return jnp.transpose(outs, (1, 0, 2))


if __name__ == "__main__":
    key = jax.random.PRNGKey(0)
    kx, kc, kcb, kf, kfb, kwi, kwh, kbi, kbh = jax.random.split(key, 9)
    B, M = 2, 4
    x = jax.random.normal(kx, (B, M, H, W, CIN), jnp.float32)
    raw = {
        # Conv3d weight (out=512, in=3, 1, 3, 3) stored as (kh, kw, cin, cout) -> (27, 512)
        "conv_w": (jax.random.normal(kc, (3, 3, CIN, COUT), jnp.float32) * 0.1
                   ).reshape(KDIM, COUT),
        "conv_b": jax.random.normal(kcb, (1, COUT), jnp.float32) * 0.1,
        "fc_w": jax.random.normal(kf, (FC_IN, FC_OUT), jnp.float32) * (float(FC_IN) ** -0.5),
        "fc_b": jax.random.normal(kfb, (1, FC_OUT), jnp.float32) * 0.1,
        # GRU weights stored transposed: (input, 3*hidden) / (hidden, 3*hidden), gates [r, z, n]
        "gru_wih": jax.random.normal(kwi, (FC_OUT, NGATE), jnp.float32) * (float(GRU_H) ** -0.5),
        "gru_whh": jax.random.normal(kwh, (GRU_H, NGATE), jnp.float32) * (float(GRU_H) ** -0.5),
        "gru_bih": jax.random.normal(kbi, (1, NGATE), jnp.float32) * 0.1,
        "gru_bhh": jax.random.normal(kbh, (1, NGATE), jnp.float32) * 0.1,
    }
    kp = prepare_params(raw)

    out = jax.jit(local_content_extractor)(x, kp)
    out = jax.block_until_ready(out)
    ref = reference(x, raw)

    assert out.shape == (B, M, GRU_H), out.shape
    # bf16 storage of patches / pooled / folded fc-GRU weight loosens the
    # tolerance vs the all-f32 unfolded reference.
    assert bool(jnp.allclose(out, ref, rtol=5e-2, atol=5e-2)), "mismatch vs reference"
    print("KERNEL_OK")
</pallas_src>

<mosaic_0001>
module attributes {stable_mosaic.version = 11 : i64} {
  func.func @conv_pool_kernel(%arg0: i32, %arg1: memref<16x64x32xbf16, #tpu.memory_space<vmem>>, %arg2: memref<32x512xbf16, #tpu.memory_space<vmem>>, %arg3: memref<1x512xf32, #tpu.memory_space<vmem>>, %arg4: memref<64x512xbf16, #tpu.memory_space<vmem>>) attributes {dimension_semantics = [#tpu.dimension_semantics<parallel>], iteration_bounds = array<i64: 2>, scalar_prefetch = 0 : i64, scratch_operands = 0 : i64, tpu.core_type = #tpu.core_type<tc>, window_params = [{transform_indices = @transform_0, window_bounds = array<i64: 16, 64, 32>}, {pipeline_mode = #tpu.pipeline_mode<synchronous>, transform_indices = @transform_1, window_bounds = array<i64: 32, 512>}, {pipeline_mode = #tpu.pipeline_mode<synchronous>, transform_indices = @transform_2, window_bounds = array<i64: 1, 512>}, {transform_indices = @transform_3, window_bounds = array<i64: 64, 512>}]} {
    %c0 = arith.constant 0 : index
    %c0_0 = arith.constant 0 : index
    %c0_1 = arith.constant 0 : index
    %0 = vector.load %arg1[%c0, %c0_0, %c0_1] : memref<16x64x32xbf16, #tpu.memory_space<vmem>>, vector<16x64x32xbf16>
    %1 = vector.shape_cast %0 : vector<16x64x32xbf16> to vector<1024x32xbf16>
    %c0_2 = arith.constant 0 : index
    %c0_3 = arith.constant 0 : index
    %2 = vector.load %arg2[%c0_2, %c0_3] : memref<32x512xbf16, #tpu.memory_space<vmem>>, vector<32x512xbf16>
    %cst = arith.constant dense<0.000000e+00> : vector<1024x512xf32>
    %3 = tpu.matmul %1, %2, %cst {dimension_numbers = #tpu.dot_dimension_numbers<[1], [0], [0], [1], [0, 0, 1, 1], [], []>} : vector<1024x32xbf16>, vector<32x512xbf16>, vector<1024x512xf32> -> vector<1024x512xf32>
    %4 = vector.shape_cast %3 : vector<1024x512xf32> to vector<16x64x512xf32>
    %5 = vector.extract_strided_slice %4 {offsets = [0, 0, 0], sizes = [1, 64, 512], strides = [1, 1, 1]} : vector<16x64x512xf32> to vector<1x64x512xf32>
    %6 = vector.shape_cast %5 : vector<1x64x512xf32> to vector<64x512xf32>
    %7 = vector.extract_strided_slice %4 {offsets = [1, 0, 0], sizes = [1, 64, 512], strides = [1, 1, 1]} : vector<16x64x512xf32> to vector<1x64x512xf32>
    %8 = vector.shape_cast %7 : vector<1x64x512xf32> to vector<64x512xf32>
    %9 = arith.maximumf %6, %8 : vector<64x512xf32>
    %10 = vector.extract_strided_slice %4 {offsets = [2, 0, 0], sizes = [1, 64, 512], strides = [1, 1, 1]} : vector<16x64x512xf32> to vector<1x64x512xf32>
    %11 = vector.shape_cast %10 : vector<1x64x512xf32> to vector<64x512xf32>
    %12 = arith.maximumf %9, %11 : vector<64x512xf32>
    %13 = vector.extract_strided_slice %4 {offsets = [3, 0, 0], sizes = [1, 64, 512], strides = [1, 1, 1]} : vector<16x64x512xf32> to vector<1x64x512xf32>
    %14 = vector.shape_cast %13 : vector<1x64x512xf32> to vector<64x512xf32>
    %15 = arith.maximumf %12, %14 : vector<64x512xf32>
    %16 = vector.extract_strided_slice %4 {offsets = [4, 0, 0], sizes = [1, 64, 512], strides = [1, 1, 1]} : vector<16x64x512xf32> to vector<1x64x512xf32>
    %17 = vector.shape_cast %16 : vector<1x64x512xf32> to vector<64x512xf32>
    %18 = arith.maximumf %15, %17 : vector<64x512xf32>
    %19 = vector.extract_strided_slice %4 {offsets = [5, 0, 0], sizes = [1, 64, 512], strides = [1, 1, 1]} : vector<16x64x512xf32> to vector<1x64x512xf32>
    %20 = vector.shape_cast %19 : vector<1x64x512xf32> to vector<64x512xf32>
    %21 = arith.maximumf %18, %20 : vector<64x512xf32>
    %22 = vector.extract_strided_slice %4 {offsets = [6, 0, 0], sizes = [1, 64, 512], strides = [1, 1, 1]} : vector<16x64x512xf32> to vector<1x64x512xf32>
    %23 = vector.shape_cast %22 : vector<1x64x512xf32> to vector<64x512xf32>
    %24 = arith.maximumf %21, %23 : vector<64x512xf32>
    %25 = vector.extract_strided_slice %4 {offsets = [7, 0, 0], sizes = [1, 64, 512], strides = [1, 1, 1]} : vector<16x64x512xf32> to vector<1x64x512xf32>
    %26 = vector.shape_cast %25 : vector<1x64x512xf32> to vector<64x512xf32>
    %27 = arith.maximumf %24, %26 : vector<64x512xf32>
    %28 = vector.extract_strided_slice %4 {offsets = [8, 0, 0], sizes = [1, 64, 512], strides = [1, 1, 1]} : vector<16x64x512xf32> to vector<1x64x512xf32>
    %29 = vector.shape_cast %28 : vector<1x64x512xf32> to vector<64x512xf32>
    %30 = arith.maximumf %27, %29 : vector<64x512xf32>
    %31 = vector.extract_strided_slice %4 {offsets = [9, 0, 0], sizes = [1, 64, 512], strides = [1, 1, 1]} : vector<16x64x512xf32> to vector<1x64x512xf32>
    %32 = vector.shape_cast %31 : vector<1x64x512xf32> to vector<64x512xf32>
    %33 = arith.maximumf %30, %32 : vector<64x512xf32>
    %34 = vector.extract_strided_slice %4 {offsets = [10, 0, 0], sizes = [1, 64, 512], strides = [1, 1, 1]} : vector<16x64x512xf32> to vector<1x64x512xf32>
    %35 = vector.shape_cast %34 : vector<1x64x512xf32> to vector<64x512xf32>
    %36 = arith.maximumf %33, %35 : vector<64x512xf32>
    %37 = vector.extract_strided_slice %4 {offsets = [11, 0, 0], sizes = [1, 64, 512], strides = [1, 1, 1]} : vector<16x64x512xf32> to vector<1x64x512xf32>
    %38 = vector.shape_cast %37 : vector<1x64x512xf32> to vector<64x512xf32>
    %39 = arith.maximumf %36, %38 : vector<64x512xf32>
    %40 = vector.extract_strided_slice %4 {offsets = [12, 0, 0], sizes = [1, 64, 512], strides = [1, 1, 1]} : vector<16x64x512xf32> to vector<1x64x512xf32>
    %41 = vector.shape_cast %40 : vector<1x64x512xf32> to vector<64x512xf32>
    %42 = arith.maximumf %39, %41 : vector<64x512xf32>
    %43 = vector.extract_strided_slice %4 {offsets = [13, 0, 0], sizes = [1, 64, 512], strides = [1, 1, 1]} : vector<16x64x512xf32> to vector<1x64x512xf32>
    %44 = vector.shape_cast %43 : vector<1x64x512xf32> to vector<64x512xf32>
    %45 = arith.maximumf %42, %44 : vector<64x512xf32>
    %46 = vector.extract_strided_slice %4 {offsets = [14, 0, 0], sizes = [1, 64, 512], strides = [1, 1, 1]} : vector<16x64x512xf32> to vector<1x64x512xf32>
    %47 = vector.shape_cast %46 : vector<1x64x512xf32> to vector<64x512xf32>
    %48 = arith.maximumf %45, %47 : vector<64x512xf32>
    %49 = vector.extract_strided_slice %4 {offsets = [15, 0, 0], sizes = [1, 64, 512], strides = [1, 1, 1]} : vector<16x64x512xf32> to vector<1x64x512xf32>
    %50 = vector.shape_cast %49 : vector<1x64x512xf32> to vector<64x512xf32>
    %51 = arith.maximumf %48, %50 : vector<64x512xf32>
    %c0_4 = arith.constant 0 : index
    %c0_5 = arith.constant 0 : index
    %52 = vector.load %arg3[%c0_4, %c0_5] : memref<1x512xf32, #tpu.memory_space<vmem>>, vector<1x512xf32>
    %53 = vector.broadcast %52 : vector<1x512xf32> to vector<64x512xf32>
    %54 = arith.addf %51, %53 : vector<64x512xf32>
    %55 = arith.truncf %54 : vector<64x512xf32> to vector<64x512xbf16>
    %c0_6 = arith.constant 0 : index
    %c0_7 = arith.constant 0 : index
    %56 = vector.load %arg4[%c0_6, %c0_7] : memref<64x512xbf16, #tpu.memory_space<vmem>>, vector<64x512xbf16>
    tpu.vector_store %arg4[%c0_6, %c0_7], %55 {strides = array<i32>} : memref<64x512xbf16, #tpu.memory_space<vmem>>, vector<64x512xbf16>,
    return
  }
  func.func @transform_0(%arg0: i32) -> (i32, i32, i32) {
    %c0_i32 = arith.constant 0 : i32
    %c0_i32_0 = arith.constant 0 : i32
    %c0_i32_1 = arith.constant 0 : i32
    return %c0_i32, %arg0, %c0_i32_0 : i32, i32, i32
  }
  func.func @transform_1(%arg0: i32) -> (i32, i32) {
    %c0_i32 = arith.constant 0 : i32
    %c0_i32_0 = arith.constant 0 : i32
    %c0_i32_1 = arith.constant 0 : i32
    return %c0_i32, %c0_i32_0 : i32, i32
  }
  func.func @transform_2(%arg0: i32) -> (i32, i32) {
    %c0_i32 = arith.constant 0 : i32
    %c0_i32_0 = arith.constant 0 : i32
    %c0_i32_1 = arith.constant 0 : i32
    return %c0_i32, %c0_i32_0 : i32, i32
  }
  func.func @transform_3(%arg0: i32) -> (i32, i32) {
    %c0_i32 = arith.constant 0 : i32
    %c0_i32_0 = arith.constant 0 : i32
    return %arg0, %c0_i32 : i32, i32
  }
}

module attributes {stable_mosaic.version = 11 : i64} {
  func.func @gate_proj_kernel(%arg0: i32, %arg1: memref<8x8192xbf16, #tpu.memory_space<vmem>>, %arg2: memref<1x8192x128xbf16, #tpu.memory_space<vmem>>, %arg3: memref<1x128xf32, #tpu.memory_space<vmem>>, %arg4: memref<8x128xf32, #tpu.memory_space<vmem>>) attributes {dimension_semantics = [#tpu.dimension_semantics<parallel>], iteration_bounds = array<i64: 3>, scalar_prefetch = 0 : i64, scratch_operands = 0 : i64, tpu.core_type = #tpu.core_type<tc>, window_params = [{pipeline_mode = #tpu.pipeline_mode<synchronous>, transform_indices = @transform_0, window_bounds = array<i64: 8, 8192>}, {transform_indices = @transform_1, window_bounds = array<i64: 1, 8192, 128>}, {transform_indices = @transform_2, window_bounds = array<i64: 1, 128>}, {transform_indices = @transform_3, window_bounds = array<i64: 8, 128>}]} {
    %c0 = arith.constant 0 : index
    %c0_0 = arith.constant 0 : index
    %0 = vector.load %arg1[%c0, %c0_0] : memref<8x8192xbf16, #tpu.memory_space<vmem>>, vector<8x8192xbf16>
    %c0_1 = arith.constant 0 : index
    %c0_2 = arith.constant 0 : index
    %c0_3 = arith.constant 0 : index
    %1 = vector.load %arg2[%c0_1, %c0_2, %c0_3] : memref<1x8192x128xbf16, #tpu.memory_space<vmem>>, vector<1x8192x128xbf16>
    %2 = vector.shape_cast %1 : vector<1x8192x128xbf16> to vector<8192x128xbf16>
    %cst = arith.constant dense<0.000000e+00> : vector<8x128xf32>
    %3 = tpu.matmul %0, %2, %cst {dimension_numbers = #tpu.dot_dimension_numbers<[1], [0], [0], [1], [0, 0, 1, 1], [], []>} : vector<8x8192xbf16>, vector<8192x128xbf16>, vector<8x128xf32> -> vector<8x128xf32>
    %c0_4 = arith.constant 0 : index
    %c0_5 = arith.constant 0 : index
    %4 = vector.load %arg3[%c0_4, %c0_5] : memref<1x128xf32, #tpu.memory_space<vmem>>, vector<1x128xf32>
    %5 = vector.broadcast %4 : vector<1x128xf32> to vector<8x128xf32>
    %6 = arith.addf %3, %5 : vector<8x128xf32>
    %c0_6 = arith.constant 0 : index
    %c0_7 = arith.constant 0 : index
    %7 = vector.load %arg4[%c0_6, %c0_7] : memref<8x128xf32, #tpu.memory_space<vmem>>, vector<8x128xf32>
    tpu.vector_store %arg4[%c0_6, %c0_7], %6 {strides = array<i32>} : memref<8x128xf32, #tpu.memory_space<vmem>>, vector<8x128xf32>,
    return
  }
  func.func @transform_0(%arg0: i32) -> (i32, i32) {
    %c0_i32 = arith.constant 0 : i32
    %c0_i32_0 = arith.constant 0 : i32
    %c0_i32_1 = arith.constant 0 : i32
    return %c0_i32, %c0_i32_0 : i32, i32
  }
  func.func @transform_1(%arg0: i32) -> (i32, i32, i32) {
    %c0_i32 = arith.constant 0 : i32
    %c0_i32_0 = arith.constant 0 : i32
    %c0_i32_1 = arith.constant 0 : i32
    return %arg0, %c0_i32, %c0_i32_0 : i32, i32, i32
  }
  func.func @transform_2(%arg0: i32) -> (i32, i32) {
    %c0_i32 = arith.constant 0 : i32
    %c0_i32_0 = arith.constant 0 : i32
    return %c0_i32, %arg0 : i32, i32
  }
  func.func @transform_3(%arg0: i32) -> (i32, i32) {
    %c0_i32 = arith.constant 0 : i32
    %c0_i32_0 = arith.constant 0 : i32
    return %c0_i32, %arg0 : i32, i32
  }
}

module attributes {stable_mosaic.version = 11 : i64} {
  func.func @gru_kernel(%arg0: i32, %arg1: memref<4x2x384xf32, #tpu.memory_space<vmem>>, %arg2: memref<128x384xf32, #tpu.memory_space<vmem>>, %arg3: memref<1x384xf32, #tpu.memory_space<vmem>>, %arg4: memref<4x2x128xf32, #tpu.memory_space<vmem>>) attributes {dimension_semantics = [#tpu.dimension_semantics<arbitrary>], iteration_bounds = array<i64: 1>, scalar_prefetch = 0 : i64, scratch_operands = 0 : i64, tpu.core_type = #tpu.core_type<tc>, window_params = [{pipeline_mode = #tpu.pipeline_mode<synchronous>, transform_indices = @transform_0, window_bounds = array<i64: 4, 2, 384>}, {pipeline_mode = #tpu.pipeline_mode<synchronous>, transform_indices = @transform_1, window_bounds = array<i64: 128, 384>}, {pipeline_mode = #tpu.pipeline_mode<synchronous>, transform_indices = @transform_2, window_bounds = array<i64: 1, 384>}, {pipeline_mode = #tpu.pipeline_mode<synchronous>, transform_indices = @transform_3, window_bounds = array<i64: 4, 2, 128>}]} {
    %c0 = arith.constant 0 : index
    %c0_0 = arith.constant 0 : index
    %0 = vector.load %arg2[%c0, %c0_0] : memref<128x384xf32, #tpu.memory_space<vmem>>, vector<128x384xf32>
    %c0_1 = arith.constant 0 : index
    %c0_2 = arith.constant 0 : index
    %1 = vector.load %arg3[%c0_1, %c0_2] : memref<1x384xf32, #tpu.memory_space<vmem>>, vector<1x384xf32>
    %cst = arith.constant 0.000000e+00 : f32
    %2 = vector.broadcast %cst : f32 to vector<2x128xf32>
    %c0_3 = arith.constant 0 : index
    %c0_4 = arith.constant 0 : index
    %c0_5 = arith.constant 0 : index
    %3 = vector.load %arg1[%c0_3, %c0_4, %c0_5] : memref<4x2x384xf32, #tpu.memory_space<vmem>>, vector<1x2x384xf32>
    %4 = vector.shape_cast %3 : vector<1x2x384xf32> to vector<2x384xf32>
    %cst_6 = arith.constant dense<0.000000e+00> : vector<2x384xf32>
    %5 = tpu.matmul %2, %0, %cst_6 {dimension_numbers = #tpu.dot_dimension_numbers<[1], [0], [0], [1], [0, 0, 1, 1], [], []>} : vector<2x128xf32>, vector<128x384xf32>, vector<2x384xf32> -> vector<2x384xf32>
    %6 = vector.broadcast %1 : vector<1x384xf32> to vector<2x384xf32>
    %7 = arith.addf %5, %6 : vector<2x384xf32>
    %8 = vector.extract_strided_slice %4 {offsets = [0, 0], sizes = [2, 128], strides = [1, 1]} : vector<2x384xf32> to vector<2x128xf32>
    %9 = vector.extract_strided_slice %7 {offsets = [0, 0], sizes = [2, 128], strides = [1, 1]} : vector<2x384xf32> to vector<2x128xf32>
    %10 = arith.addf %8, %9 : vector<2x128xf32>
    %11 = arith.negf %10 : vector<2x128xf32>
    %12 = math.exp %11 : vector<2x128xf32>
    %cst_7 = arith.constant 1.000000e+00 : f32
    %13 = vector.broadcast %cst_7 : f32 to vector<2x128xf32>
    %14 = arith.addf %13, %12 : vector<2x128xf32>
    %15 = arith.divf %13, %14 : vector<2x128xf32>
    %16 = vector.extract_strided_slice %4 {offsets = [0, 128], sizes = [2, 128], strides = [1, 1]} : vector<2x384xf32> to vector<2x128xf32>
    %17 = vector.extract_strided_slice %7 {offsets = [0, 128], sizes = [2, 128], strides = [1, 1]} : vector<2x384xf32> to vector<2x128xf32>
    %18 = arith.addf %16, %17 : vector<2x128xf32>
    %19 = arith.negf %18 : vector<2x128xf32>
    %20 = math.exp %19 : vector<2x128xf32>
    %cst_8 = arith.constant 1.000000e+00 : f32
    %21 = vector.broadcast %cst_8 : f32 to vector<2x128xf32>
    %22 = arith.addf %21, %20 : vector<2x128xf32>
    %23 = arith.divf %21, %22 : vector<2x128xf32>
    %24 = vector.extract_strided_slice %4 {offsets = [0, 256], sizes = [2, 128], strides = [1, 1]} : vector<2x384xf32> to vector<2x128xf32>
    %25 = vector.extract_strided_slice %7 {offsets = [0, 256], sizes = [2, 128], strides = [1, 1]} : vector<2x384xf32> to vector<2x128xf32>
    %26 = arith.mulf %15, %25 : vector<2x128xf32>
    %27 = arith.addf %24, %26 : vector<2x128xf32>
    %28 = math.tanh %27 : vector<2x128xf32>
    %cst_9 = arith.constant 1.000000e+00 : f32
    %29 = vector.broadcast %cst_9 : f32 to vector<2x128xf32>
    %30 = arith.subf %29, %23 : vector<2x128xf32>
    %31 = arith.mulf %30, %28 : vector<2x128xf32>
    %32 = arith.mulf %23, %2 : vector<2x128xf32>
    %33 = arith.addf %31, %32 : vector<2x128xf32>
    %c0_10 = arith.constant 0 : index
    %c0_11 = arith.constant 0 : index
    %c0_12 = arith.constant 0 : index
    %34 = vector.load %arg4[%c0_10, %c0_11, %c0_12] : memref<4x2x128xf32, #tpu.memory_space<vmem>>, vector<1x2x128xf32>
    %35 = vector.shape_cast %34 : vector<1x2x128xf32> to vector<2x128xf32>
    %36 = vector.shape_cast %33 : vector<2x128xf32> to vector<1x2x128xf32>
    tpu.vector_store %arg4[%c0_10, %c0_11, %c0_12], %36 {strides = array<i32>} : memref<4x2x128xf32, #tpu.memory_space<vmem>>, vector<1x2x128xf32>,
    %c1 = arith.constant 1 : index
    %c0_13 = arith.constant 0 : index
    %c0_14 = arith.constant 0 : index
    %37 = vector.load %arg1[%c1, %c0_13, %c0_14] : memref<4x2x384xf32, #tpu.memory_space<vmem>>, vector<1x2x384xf32>
    %38 = vector.shape_cast %37 : vector<1x2x384xf32> to vector<2x384xf32>
    %cst_15 = arith.constant dense<0.000000e+00> : vector<2x384xf32>
    %39 = tpu.matmul %33, %0, %cst_15 {dimension_numbers = #tpu.dot_dimension_numbers<[1], [0], [0], [1], [0, 0, 1, 1], [], []>} : vector<2x128xf32>, vector<128x384xf32>, vector<2x384xf32> -> vector<2x384xf32>
    %40 = vector.broadcast %1 : vector<1x384xf32> to vector<2x384xf32>
    %41 = arith.addf %39, %40 : vector<2x384xf32>
    %42 = vector.extract_strided_slice %38 {offsets = [0, 0], sizes = [2, 128], strides = [1, 1]} : vector<2x384xf32> to vector<2x128xf32>
    %43 = vector.extract_strided_slice %41 {offsets = [0, 0], sizes = [2, 128], strides = [1, 1]} : vector<2x384xf32> to vector<2x128xf32>
    %44 = arith.addf %42, %43 : vector<2x128xf32>
    %45 = arith.negf %44 : vector<2x128xf32>
    %46 = math.exp %45 : vector<2x128xf32>
    %cst_16 = arith.constant 1.000000e+00 : f32
    %47 = vector.broadcast %cst_16 : f32 to vector<2x128xf32>
    %48 = arith.addf %47, %46 : vector<2x128xf32>
    %49 = arith.divf %47, %48 : vector<2x128xf32>
    %50 = vector.extract_strided_slice %38 {offsets = [0, 128], sizes = [2, 128], strides = [1, 1]} : vector<2x384xf32> to vector<2x128xf32>
    %51 = vector.extract_strided_slice %41 {offsets = [0, 128], sizes = [2, 128], strides = [1, 1]} : vector<2x384xf32> to vector<2x128xf32>
    %52 = arith.addf %50, %51 : vector<2x128xf32>
    %53 = arith.negf %52 : vector<2x128xf32>
    %54 = math.exp %53 : vector<2x128xf32>
    %cst_17 = arith.constant 1.000000e+00 : f32
    %55 = vector.broadcast %cst_17 : f32 to vector<2x128xf32>
    %56 = arith.addf %55, %54 : vector<2x128xf32>
    %57 = arith.divf %55, %56 : vector<2x128xf32>
    %58 = vector.extract_strided_slice %38 {offsets = [0, 256], sizes = [2, 128], strides = [1, 1]} : vector<2x384xf32> to vector<2x128xf32>
    %59 = vector.extract_strided_slice %41 {offsets = [0, 256], sizes = [2, 128], strides = [1, 1]} : vector<2x384xf32> to vector<2x128xf32>
    %60 = arith.mulf %49, %59 : vector<2x128xf32>
    %61 = arith.addf %58, %60 : vector<2x128xf32>
    %62 = math.tanh %61 : vector<2x128xf32>
    %cst_18 = arith.constant 1.000000e+00 : f32
    %63 = vector.broadcast %cst_18 : f32 to vector<2x128xf32>
    %64 = arith.subf %63, %57 : vector<2x128xf32>
    %65 = arith.mulf %64, %62 : vector<2x128xf32>
    %66 = arith.mulf %57, %33 : vector<2x128xf32>
    %67 = arith.addf %65, %66 : vector<2x128xf32>
    %c1_19 = arith.constant 1 : index
    %c0_20 = arith.constant 0 : index
    %c0_21 = arith.constant 0 : index
    %68 = vector.load %arg4[%c1_19, %c0_20, %c0_21] : memref<4x2x128xf32, #tpu.memory_space<vmem>>, vector<1x2x128xf32>
    %69 = vector.shape_cast %68 : vector<1x2x128xf32> to vector<2x128xf32>
    %70 = vector.shape_cast %67 : vector<2x128xf32> to vector<1x2x128xf32>
    tpu.vector_store %arg4[%c1_19, %c0_20, %c0_21], %70 {strides = array<i32>} : memref<4x2x128xf32, #tpu.memory_space<vmem>>, vector<1x2x128xf32>,
    %c2 = arith.constant 2 : index
    %c0_22 = arith.constant 0 : index
    %c0_23 = arith.constant 0 : index
    %71 = vector.load %arg1[%c2, %c0_22, %c0_23] : memref<4x2x384xf32, #tpu.memory_space<vmem>>, vector<1x2x384xf32>
    %72 = vector.shape_cast %71 : vector<1x2x384xf32> to vector<2x384xf32>
    %cst_24 = arith.constant dense<0.000000e+00> : vector<2x384xf32>
    %73 = tpu.matmul %67, %0, %cst_24 {dimension_numbers = #tpu.dot_dimension_numbers<[1], [0], [0], [1], [0, 0, 1, 1], [], []>} : vector<2x128xf32>, vector<128x384xf32>, vector<2x384xf32> -> vector<2x384xf32>
    %74 = vector.broadcast %1 : vector<1x384xf32> to vector<2x384xf32>
    %75 = arith.addf %73, %74 : vector<2x384xf32>
    %76 = vector.extract_strided_slice %72 {offsets = [0, 0], sizes = [2, 128], strides = [1, 1]} : vector<2x384xf32> to vector<2x128xf32>
    %77 = vector.extract_strided_slice %75 {offsets = [0, 0], sizes = [2, 128], strides = [1, 1]} : vector<2x384xf32> to vector<2x128xf32>
    %78 = arith.addf %76, %77 : vector<2x128xf32>
    %79 = arith.negf %78 : vector<2x128xf32>
    %80 = math.exp %79 : vector<2x128xf32>
    %cst_25 = arith.constant 1.000000e+00 : f32
    %81 = vector.broadcast %cst_25 : f32 to vector<2x128xf32>
    %82 = arith.addf %81, %80 : vector<2x128xf32>
    %83 = arith.divf %81, %82 : vector<2x128xf32>
    %84 = vector.extract_strided_slice %72 {offsets = [0, 128], sizes = [2, 128], strides = [1, 1]} : vector<2x384xf32> to vector<2x128xf32>
    %85 = vector.extract_strided_slice %75 {offsets = [0, 128], sizes = [2, 128], strides = [1, 1]} : vector<2x384xf32> to vector<2x128xf32>
    %86 = arith.addf %84, %85 : vector<2x128xf32>
    %87 = arith.negf %86 : vector<2x128xf32>
    %88 = math.exp %87 : vector<2x128xf32>
    %cst_26 = arith.constant 1.000000e+00 : f32
    %89 = vector.broadcast %cst_26 : f32 to vector<2x128xf32>
    %90 = arith.addf %89, %88 : vector<2x128xf32>
    %91 = arith.divf %89, %90 : vector<2x128xf32>
    %92 = vector.extract_strided_slice %72 {offsets = [0, 256], sizes = [2, 128], strides = [1, 1]} : vector<2x384xf32> to vector<2x128xf32>
    %93 = vector.extract_strided_slice %75 {offsets = [0, 256], sizes = [2, 128], strides = [1, 1]} : vector<2x384xf32> to vector<2x128xf32>
    %94 = arith.mulf %83, %93 : vector<2x128xf32>
    %95 = arith.addf %92, %94 : vector<2x128xf32>
    %96 = math.tanh %95 : vector<2x128xf32>
    %cst_27 = arith.constant 1.000000e+00 : f32
    %97 = vector.broadcast %cst_27 : f32 to vector<2x128xf32>
    %98 = arith.subf %97, %91 : vector<2x128xf32>
    %99 = arith.mulf %98, %96 : vector<2x128xf32>
    %100 = arith.mulf %91, %67 : vector<2x128xf32>
    %101 = arith.addf %99, %100 : vector<2x128xf32>
    %c2_28 = arith.constant 2 : index
    %c0_29 = arith.constant 0 : index
    %c0_30 = arith.constant 0 : index
    %102 = vector.load %arg4[%c2_28, %c0_29, %c0_30] : memref<4x2x128xf32, #tpu.memory_space<vmem>>, vector<1x2x128xf32>
    %103 = vector.shape_cast %102 : vector<1x2x128xf32> to vector<2x128xf32>
    %104 = vector.shape_cast %101 : vector<2x128xf32> to vector<1x2x128xf32>
    tpu.vector_store %arg4[%c2_28, %c0_29, %c0_30], %104 {strides = array<i32>} : memref<4x2x128xf32, #tpu.memory_space<vmem>>, vector<1x2x128xf32>,
    %c3 = arith.constant 3 : index
    %c0_31 = arith.constant 0 : index
    %c0_32 = arith.constant 0 : index
    %105 = vector.load %arg1[%c3, %c0_31, %c0_32] : memref<4x2x384xf32, #tpu.memory_space<vmem>>, vector<1x2x384xf32>
    %106 = vector.shape_cast %105 : vector<1x2x384xf32> to vector<2x384xf32>
    %cst_33 = arith.constant dense<0.000000e+00> : vector<2x384xf32>
    %107 = tpu.matmul %101, %0, %cst_33 {dimension_numbers = #tpu.dot_dimension_numbers<[1], [0], [0], [1], [0, 0, 1, 1], [], []>} : vector<2x128xf32>, vector<128x384xf32>, vector<2x384xf32> -> vector<2x384xf32>
    %108 = vector.broadcast %1 : vector<1x384xf32> to vector<2x384xf32>
    %109 = arith.addf %107, %108 : vector<2x384xf32>
    %110 = vector.extract_strided_slice %106 {offsets = [0, 0], sizes = [2, 128], strides = [1, 1]} : vector<2x384xf32> to vector<2x128xf32>
    %111 = vector.extract_strided_slice %109 {offsets = [0, 0], sizes = [2, 128], strides = [1, 1]} : vector<2x384xf32> to vector<2x128xf32>
    %112 = arith.addf %110, %111 : vector<2x128xf32>
    %113 = arith.negf %112 : vector<2x128xf32>
    %114 = math.exp %113 : vector<2x128xf32>
    %cst_34 = arith.constant 1.000000e+00 : f32
    %115 = vector.broadcast %cst_34 : f32 to vector<2x128xf32>
    %116 = arith.addf %115, %114 : vector<2x128xf32>
    %117 = arith.divf %115, %116 : vector<2x128xf32>
    %118 = vector.extract_strided_slice %106 {offsets = [0, 128], sizes = [2, 128], strides = [1, 1]} : vector<2x384xf32> to vector<2x128xf32>
    %119 = vector.extract_strided_slice %109 {offsets = [0, 128], sizes = [2, 128], strides = [1, 1]} : vector<2x384xf32> to vector<2x128xf32>
    %120 = arith.addf %118, %119 : vector<2x128xf32>
    %121 = arith.negf %120 : vector<2x128xf32>
    %122 = math.exp %121 : vector<2x128xf32>
    %cst_35 = arith.constant 1.000000e+00 : f32
    %123 = vector.broadcast %cst_35 : f32 to vector<2x128xf32>
    %124 = arith.addf %123, %122 : vector<2x128xf32>
    %125 = arith.divf %123, %124 : vector<2x128xf32>
    %126 = vector.extract_strided_slice %106 {offsets = [0, 256], sizes = [2, 128], strides = [1, 1]} : vector<2x384xf32> to vector<2x128xf32>
    %127 = vector.extract_strided_slice %109 {offsets = [0, 256], sizes = [2, 128], strides = [1, 1]} : vector<2x384xf32> to vector<2x128xf32>
    %128 = arith.mulf %117, %127 : vector<2x128xf32>
    %129 = arith.addf %126, %128 : vector<2x128xf32>
    %130 = math.tanh %129 : vector<2x128xf32>
    %cst_36 = arith.constant 1.000000e+00 : f32
    %131 = vector.broadcast %cst_36 : f32 to vector<2x128xf32>
    %132 = arith.subf %131, %125 : vector<2x128xf32>
    %133 = arith.mulf %132, %130 : vector<2x128xf32>
    %134 = arith.mulf %125, %101 : vector<2x128xf32>
    %135 = arith.addf %133, %134 : vector<2x128xf32>
    %c3_37 = arith.constant 3 : index
    %c0_38 = arith.constant 0 : index
    %c0_39 = arith.constant 0 : index
    %136 = vector.load %arg4[%c3_37, %c0_38, %c0_39] : memref<4x2x128xf32, #tpu.memory_space<vmem>>, vector<1x2x128xf32>
    %137 = vector.shape_cast %136 : vector<1x2x128xf32> to vector<2x128xf32>
    %138 = vector.shape_cast %135 : vector<2x128xf32> to vector<1x2x128xf32>
    tpu.vector_store %arg4[%c3_37, %c0_38, %c0_39], %138 {strides = array<i32>} : memref<4x2x128xf32, #tpu.memory_space<vmem>>, vector<1x2x128xf32>,
    return
  }
  func.func @transform_0(%arg0: i32) -> (i32, i32, i32) {
    %c0_i32 = arith.constant 0 : i32
    %c0_i32_0 = arith.constant 0 : i32
    %c0_i32_1 = arith.constant 0 : i32
    %c0_i32_2 = arith.constant 0 : i32
    return %c0_i32, %c0_i32_0, %c0_i32_1 : i32, i32, i32
  }
  func.func @transform_1(%arg0: i32) -> (i32, i32) {
    %c0_i32 = arith.constant 0 : i32
    %c0_i32_0 = arith.constant 0 : i32
    %c0_i32_1 = arith.constant 0 : i32
    return %c0_i32, %c0_i32_0 : i32, i32
  }
  func.func @transform_2(%arg0: i32) -> (i32, i32) {
    %c0_i32 = arith.constant 0 : i32
    %c0_i32_0 = arith.constant 0 : i32
    %c0_i32_1 = arith.constant 0 : i32
    return %c0_i32, %c0_i32_0 : i32, i32
  }
  func.func @transform_3(%arg0: i32) -> (i32, i32, i32) {
    %c0_i32 = arith.constant 0 : i32
    %c0_i32_0 = arith.constant 0 : i32
    %c0_i32_1 = arith.constant 0 : i32
    %c0_i32_2 = arith.constant 0 : i32
    return %c0_i32, %c0_i32_0, %c0_i32_1 : i32, i32, i32
  }
}

</mosaic_0001>

<bundles_post_ra>
// kernel: local_content_extractor.3
= control target key start
LH: loop header
LB: loop body
LE: loop exit
PB: predicated region body
PF: predicated region fallthrough
CT: control target
= control target key end

     0   :  { %s3865_s12 = smov 0   ;;  %s3867_s13 = smov 0   ;;  %s6568_s0 = inlined_call_operand.vmem [shape: bf16[16,128,32], index: 0, kind: input, shape index: {}]   ;;  %s6569_s1 = inlined_call_operand.vmem [shape: bf16[32,512], index: 1, kind: input, shape index: {}]   ;;  %s6570_s2 = inlined_call_operand.vmem [shape: f32[1,512], index: 2, kind: input, shape index: {}]   ;;  %s6571_s3 = inlined_call_operand.vmem [shape: bf16[128,512], index: 3, kind: output, shape index: {}]  }
   0x1   :  { %s3869_s14 = smov 0  }
   0x2 LB: > { %s3471_s15 = sadd.s32 4294967295, %s3842_s14   ;;  %s3882_s16 = sadd.s32 1, %s3842_s14   ;;  %s3842_s14 = sphi %s3869_s14, %s7077_s14   ;;  %s3838_s13 = sphi %s3867_s13, %s7076_s13   ;;  %s3834_s12 = sphi %s3865_s12, %s7075_s12  }
   0x3   : > { %s17_s17 = ssub.s32 %s3842_s14, %s3882_s16  ;;  %s20_s18 = sadd.s32 1, %s3838_s13 }
   0x4   : > { %p18_p0 = scmp.eq.s32.totalorder %s17_s17, 0  ;;  %p27_p1 = scmp.ne.s32.totalorder %s3838_s13, %s3834_s12 }
   0x5   : > { %p28_p2 = scmp.eq.s32.totalorder %s3842_s14, 0  ;;  %p3474_p4 = scmp.ge.s32.totalorder %s3842_s14, 2 }
   0x6   : > { %s3891_s19 = scalar_select %p18_p0, %s3838_s13, %s20_s18  }
   0x7   : > { %p29_p3 = por %p28_p2, %p27_p1  ;;  %127 = sbr.rel (%p3474_p4) target bundleno = 50 (0x32), region = 24 }
   0xe   : > { %130 = sbr.rel (!%p29_p3) target bundleno = 50 (0x32), region = 28  ;;  %s132_s20 = sand.u32 (%p29_p3), 1, %s3838_s13  }
   0xf   : > { %s3701_s21 = sshll.u32 (%p29_p3), %s3842_s14, 5  ;;  %s3475_s22 = sshll.u32 (%p29_p3), %s132_s20, 9 }
  0x10   : > { %s3899_s25 = scalar_lea.vmem (%p29_p3), %s6568_s0, %s3701_s21  ;;  %s3904_s26 = scalar_lea.vmem (%p29_p3), [#allocation2], %s3475_s22 }
  0x11   : > { %v153_v0 = vld [vmem:[%s3899_s25] sm:$0xff] (%p29_p3)   ;;  %v157_v1 = vld [vmem:[%s3899_s25 + $0x8] sm:$0xff] (%p29_p3)   ;;  %v161_v2 = vld [vmem:[%s3899_s25 + $0x10] sm:$0xff] (%p29_p3)  }
  0x12   : > { %154 = vst [vmem:[%s3904_s26] sm:$0xff] (%p29_p3), %v153_v0   ;;  %158 = vst [vmem:[%s3904_s26 + $0x8] sm:$0xff] (%p29_p3), %v157_v1   ;;  %v165_v3 = vld [vmem:[%s3899_s25 + $0x18] sm:$0xff] (%p29_p3)   ;;  %v169_v4 = vld [vmem:[%s3899_s25 + $0x40] sm:$0xff] (%p29_p3)  }
  0x13   : > { %162 = vst [vmem:[%s3904_s26 + $0x10] sm:$0xff] (%p29_p3), %v161_v2   ;;  %v173_v5 = vld [vmem:[%s3899_s25 + $0x48] sm:$0xff] (%p29_p3)   ;;  %166 = vst [vmem:[%s3904_s26 + $0x18] sm:$0xff] (%p29_p3), %v165_v3   ;;  %v177_v6 = vld [vmem:[%s3899_s25 + $0x50] sm:$0xff] (%p29_p3)  }
  0x14   : > { %170 = vst [vmem:[%s3904_s26 + $0x20] sm:$0xff] (%p29_p3), %v169_v4   ;;  %174 = vst [vmem:[%s3904_s26 + $0x28] sm:$0xff] (%p29_p3), %v173_v5   ;;  %v181_v7 = vld [vmem:[%s3899_s25 + $0x58] sm:$0xff] (%p29_p3)   ;;  %v185_v8 = vld [vmem:[%s3899_s25 + $0x80] sm:$0xff] (%p29_p3)  }
  0x15   : > { %178 = vst [vmem:[%s3904_s26 + $0x30] sm:$0xff] %v177_v6   ;;  %182 = vst [vmem:[%s3904_s26 + $0x38] sm:$0xff] %v181_v7   ;;  %v189_v9 = vld [vmem:[%s3899_s25 + $0x88] sm:$0xff]   ;;  %v193_v10 = vld [vmem:[%s3899_s25 + $0x90] sm:$0xff]  }
  0x16   : > { %186 = vst [vmem:[%s3904_s26 + $0x40] sm:$0xff] %v185_v8   ;;  %v197_v11 = vld [vmem:[%s3899_s25 + $0x98] sm:$0xff]   ;;  %190 = vst [vmem:[%s3904_s26 + $0x48] sm:$0xff] %v189_v9   ;;  %v201_v12 = vld [vmem:[%s3899_s25 + $0xc0] sm:$0xff]  }
  0x17   : > { %194 = vst [vmem:[%s3904_s26 + $0x50] sm:$0xff] %v193_v10   ;;  %198 = vst [vmem:[%s3904_s26 + $0x58] sm:$0xff] %v197_v11   ;;  %v205_v13 = vld [vmem:[%s3899_s25 + $0xc8] sm:$0xff]   ;;  %v209_v14 = vld [vmem:[%s3899_s25 + $0xd0] sm:$0xff]  }
  0x18   : > { %202 = vst [vmem:[%s3904_s26 + $0x60] sm:$0xff] %v201_v12   ;;  %206 = vst [vmem:[%s3904_s26 + $0x68] sm:$0xff] %v205_v13   ;;  %v213_v15 = vld [vmem:[%s3899_s25 + $0xd8] sm:$0xff]   ;;  %v217_v16 = vld [vmem:[%s3899_s25 + $0x100] sm:$0xff]  }
  0x19   : > { %210 = vst [vmem:[%s3904_s26 + $0x70] sm:$0xff] %v209_v14   ;;  %v221_v17 = vld [vmem:[%s3899_s25 + $0x108] sm:$0xff]   ;;  %214 = vst [vmem:[%s3904_s26 + $0x78] sm:$0xff] %v213_v15   ;;  %v225_v18 = vld [vmem:[%s3899_s25 + $0x110] sm:$0xff]  }
  0x1a   : > { %218 = vst [vmem:[%s3904_s26 + $0x80] sm:$0xff] %v217_v16   ;;  %222 = vst [vmem:[%s3904_s26 + $0x88] sm:$0xff] %v221_v17   ;;  %v229_v19 = vld [vmem:[%s3899_s25 + $0x118] sm:$0xff]   ;;  %v233_v20 = vld [vmem:[%s3899_s25 + $0x140] sm:$0xff]  }
  0x1b   : > { %226 = vst [vmem:[%s3904_s26 + $0x90] sm:$0xff] %v225_v18   ;;  %230 = vst [vmem:[%s3904_s26 + $0x98] sm:$0xff] %v229_v19   ;;  %v237_v21 = vld [vmem:[%s3899_s25 + $0x148] sm:$0xff]   ;;  %v241_v22 = vld [vmem:[%s3899_s25 + $0x150] sm:$0xff]  }
  0x1c   : > { %234 = vst [vmem:[%s3904_s26 + $0xa0] sm:$0xff] %v233_v20   ;;  %v245_v23 = vld [vmem:[%s3899_s25 + $0x158] sm:$0xff]   ;;  %238 = vst [vmem:[%s3904_s26 + $0xa8] sm:$0xff] %v237_v21   ;;  %v249_v24 = vld [vmem:[%s3899_s25 + $0x180] sm:$0xff]  }
  0x1d   : > { %242 = vst [vmem:[%s3904_s26 + $0xb0] sm:$0xff] %v241_v22   ;;  %246 = vst [vmem:[%s3904_s26 + $0xb8] sm:$0xff] %v245_v23   ;;  %v253_v25 = vld [vmem:[%s3899_s25 + $0x188] sm:$0xff]   ;;  %v257_v26 = vld [vmem:[%s3899_s25 + $0x190] sm:$0xff]  }
  0x1e   : > { %250 = vst [vmem:[%s3904_s26 + $0xc0] sm:$0xff] %v249_v24   ;;  %254 = vst [vmem:[%s3904_s26 + $0xc8] sm:$0xff] %v253_v25   ;;  %v261_v27 = vld [vmem:[%s3899_s25 + $0x198] sm:$0xff]   ;;  %v265_v28 = vld [vmem:[%s3899_s25 + $0x1c0] sm:$0xff]  }
  0x1f   : > { %258 = vst [vmem:[%s3904_s26 + $0xd0] sm:$0xff] %v257_v26   ;;  %v269_v29 = vld [vmem:[%s3899_s25 + $0x1c8] sm:$0xff]   ;;  %262 = vst [vmem:[%s3904_s26 + $0xd8] sm:$0xff] %v261_v27   ;;  %v273_v30 = vld [vmem:[%s3899_s25 + $0x1d0] sm:$0xff]  }
  0x20   : > { %266 = vst [vmem:[%s3904_s26 + $0xe0] sm:$0xff] %v265_v28   ;;  %270 = vst [vmem:[%s3904_s26 + $0xe8] sm:$0xff] %v269_v29   ;;  %v277_v31 = vld [vmem:[%s3899_s25 + $0x1d8] sm:$0xff]   ;;  %v281_v32 = vld [vmem:[%s3899_s25 + $0x200] sm:$0xff]  }
  0x21   : > { %274 = vst [vmem:[%s3904_s26 + $0xf0] sm:$0xff] %v273_v30   ;;  %278 = vst [vmem:[%s3904_s26 + $0xf8] sm:$0xff] %v277_v31   ;;  %v285_v33 = vld [vmem:[%s3899_s25 + $0x208] sm:$0xff]   ;;  %v289_v34 = vld [vmem:[%s3899_s25 + $0x210] sm:$0xff]  }
  0x22   : > { %282 = vst [vmem:[%s3904_s26 + $0x100] sm:$0xff] %v281_v32   ;;  %v293_v35 = vld [vmem:[%s3899_s25 + $0x218] sm:$0xff]   ;;  %286 = vst [vmem:[%s3904_s26 + $0x108] sm:$0xff] %v285_v33   ;;  %v297_v36 = vld [vmem:[%s3899_s25 + $0x240] sm:$0xff]  }
  0x23   : > { %290 = vst [vmem:[%s3904_s26 + $0x110] sm:$0xff] %v289_v34   ;;  %294 = vst [vmem:[%s3904_s26 + $0x118] sm:$0xff] %v293_v35   ;;  %v301_v37 = vld [vmem:[%s3899_s25 + $0x248] sm:$0xff]   ;;  %v305_v38 = vld [vmem:[%s3899_s25 + $0x250] sm:$0xff]  }
  0x24   : > { %298 = vst [vmem:[%s3904_s26 + $0x120] sm:$0xff] %v297_v36   ;;  %302 = vst [vmem:[%s3904_s26 + $0x128] sm:$0xff] %v301_v37   ;;  %v309_v39 = vld [vmem:[%s3899_s25 + $0x258] sm:$0xff]   ;;  %v313_v40 = vld [vmem:[%s3899_s25 + $0x280] sm:$0xff]  }
  0x25   : > { %306 = vst [vmem:[%s3904_s26 + $0x130] sm:$0xff] %v305_v38   ;;  %v317_v41 = vld [vmem:[%s3899_s25 + $0x288] sm:$0xff]   ;;  %310 = vst [vmem:[%s3904_s26 + $0x138] sm:$0xff] %v309_v39   ;;  %v321_v42 = vld [vmem:[%s3899_s25 + $0x290] sm:$0xff]  }
  0x26   : > { %314 = vst [vmem:[%s3904_s26 + $0x140] sm:$0xff] %v313_v40   ;;  %318 = vst [vmem:[%s3904_s26 + $0x148] sm:$0xff] %v317_v41   ;;  %v325_v43 = vld [vmem:[%s3899_s25 + $0x298] sm:$0xff]   ;;  %v329_v44 = vld [vmem:[%s3899_s25 + $0x2c0] sm:$0xff]  }
  0x27   : > { %322 = vst [vmem:[%s3904_s26 + $0x150] sm:$0xff] %v321_v42   ;;  %326 = vst [vmem:[%s3904_s26 + $0x158] sm:$0xff] %v325_v43   ;;  %v333_v45 = vld [vmem:[%s3899_s25 + $0x2c8] sm:$0xff]   ;;  %v337_v46 = vld [vmem:[%s3899_s25 + $0x2d0] sm:$0xff]  }
  0x28   : > { %330 = vst [vmem:[%s3904_s26 + $0x160] sm:$0xff] %v329_v44   ;;  %v341_v47 = vld [vmem:[%s3899_s25 + $0x2d8] sm:$0xff]   ;;  %334 = vst [vmem:[%s3904_s26 + $0x168] sm:$0xff] %v333_v45   ;;  %v345_v48 = vld [vmem:[%s3899_s25 + $0x300] sm:$0xff]  }
  0x29   : > { %338 = vst [vmem:[%s3904_s26 + $0x170] sm:$0xff] %v337_v46   ;;  %342 = vst [vmem:[%s3904_s26 + $0x178] sm:$0xff] %v341_v47   ;;  %v349_v49 = vld [vmem:[%s3899_s25 + $0x308] sm:$0xff]   ;;  %v353_v50 = vld [vmem:[%s3899_s25 + $0x310] sm:$0xff]  }
  0x2a   : > { %346 = vst [vmem:[%s3904_s26 + $0x180] sm:$0xff] %v345_v48   ;;  %350 = vst [vmem:[%s3904_s26 + $0x188] sm:$0xff] %v349_v49   ;;  %v357_v51 = vld [vmem:[%s3899_s25 + $0x318] sm:$0xff]   ;;  %v361_v52 = vld [vmem:[%s3899_s25 + $0x340] sm:$0xff]  }
  0x2b   : > { %354 = vst [vmem:[%s3904_s26 + $0x190] sm:$0xff] %v353_v50   ;;  %v365_v53 = vld [vmem:[%s3899_s25 + $0x348] sm:$0xff]   ;;  %358 = vst [vmem:[%s3904_s26 + $0x198] sm:$0xff] %v357_v51   ;;  %v369_v54 = vld [vmem:[%s3899_s25 + $0x350] sm:$0xff]  }
  0x2c   : > { %362 = vst [vmem:[%s3904_s26 + $0x1a0] sm:$0xff] %v361_v52   ;;  %366 = vst [vmem:[%s3904_s26 + $0x1a8] sm:$0xff] %v365_v53   ;;  %v373_v55 = vld [vmem:[%s3899_s25 + $0x358] sm:$0xff]   ;;  %v377_v56 = vld [vmem:[%s3899_s25 + $0x380] sm:$0xff]  }
  0x2d   : > { %370 = vst [vmem:[%s3904_s26 + $0x1b0] sm:$0xff] %v369_v54   ;;  %374 = vst [vmem:[%s3904_s26 + $0x1b8] sm:$0xff] %v373_v55   ;;  %v381_v57 = vld [vmem:[%s3899_s25 + $0x388] sm:$0xff]   ;;  %v385_v58 = vld [vmem:[%s3899_s25 + $0x390] sm:$0xff]  }
  0x2e   : > { %378 = vst [vmem:[%s3904_s26 + $0x1c0] sm:$0xff] %v377_v56   ;;  %v389_v59 = vld [vmem:[%s3899_s25 + $0x398] sm:$0xff]   ;;  %382 = vst [vmem:[%s3904_s26 + $0x1c8] sm:$0xff] %v381_v57   ;;  %v393_v60 = vld [vmem:[%s3899_s25 + $0x3c0] sm:$0xff]  }
  0x2f   : > { %386 = vst [vmem:[%s3904_s26 + $0x1d0] sm:$0xff] %v385_v58   ;;  %390 = vst [vmem:[%s3904_s26 + $0x1d8] sm:$0xff] %v389_v59   ;;  %v397_v61 = vld [vmem:[%s3899_s25 + $0x3c8] sm:$0xff]   ;;  %v401_v62 = vld [vmem:[%s3899_s25 + $0x3d0] sm:$0xff]  }
  0x30   : > { %394 = vst [vmem:[%s3904_s26 + $0x1e0] sm:$0xff] %v393_v60   ;;  %398 = vst [vmem:[%s3904_s26 + $0x1e8] sm:$0xff] %v397_v61   ;;  %v405_v63 = vld [vmem:[%s3899_s25 + $0x3d8] sm:$0xff]  }
  0x31   : > { %402 = vst [vmem:[%s3904_s26 + $0x1f0] sm:$0xff] %v401_v62   ;;  %406 = vst [vmem:[%s3904_s26 + $0x1f8] sm:$0xff] %v405_v63  }
  0x32 PF: > { %p3478_p5 = scmp.ge.s32.totalorder %s3842_s14, 1  ;;  %p686_p6 = scmp.lt.s32.totalorder %s3842_s14, 3 }
  0x34   : > { %p687_p7 = pnand %p3478_p5, %p686_p6 }
  0x36   : > { %690 = sbr.rel (%p687_p7) target bundleno = 797 (0x31d), region = 69 }
  0x3d   : > { %v3744_v0 = vld [vmem:[%s6569_s1 + $0x4] ss:$16 sps:$4 sm:$0xff]   ;;  %s693_s29 = sand.u32 1, %s3834_s12   ;;  %v3746_v1 = vld [vmem:[%s6569_s1 + $0xc] ss:$16 sps:$4 sm:$0xff]   ;;  %v6573_v2 = vmov 0  }
  0x3e   : > { %1447 = vmatprep.mubr.bf16.mxu0 %v6573_v2  ;;  %2120 = vmatprep.mubr.bf16.mxu1 %v6573_v2  ;;  %s3479_s5 = sshll.u32 %s693_s29, 9  ;;  %v3748_v3 = vld [vmem:[%s6569_s1] ss:$16 sps:$4 sm:$0xff]   ;;  %v3749_v4 = vld [vmem:[%s6569_s1 + $0x8] ss:$16 sps:$4 sm:$0xff]   ;;  %vm1222_vm0 = vcmask 261120  }
  0x3f   : > { %1415 = vmatprep.subr.bf16.mxu0 %v3744_v0  ;;  %2088 = vmatprep.subr.bf16.mxu1 %v3746_v1  ;;  %v3750_v5 = vld [vmem:[%s6569_s1 + $0x24] ss:$16 sps:$4 sm:$0xff]   ;;  %v3752_v6 = vld [vmem:[%s6569_s1 + $0x2c] ss:$16 sps:$4 sm:$0xff]   ;;  %v3754_v7 = vld [vmem:[%s6569_s1 + $0x20] ss:$16 sps:$4 sm:$0xff]  }
  0x40   : > { %1416 = vmatpush1.bf16.msra.mxu0 %v3748_v3  ;;  %2089 = vmatpush1.bf16.msra.mxu1 %v3749_v4  ;;  %v3755_v8 = vld [vmem:[%s6569_s1 + $0x28] ss:$16 sps:$4 sm:$0xff]   ;;  %s4060_s23 = scalar_lea.vmem [#allocation2], %s3479_s5  ;;  %s3480_s24 = sshll.u32 %s3471_s15, 3 }
  0x41   : > { %1417 = vmatprep.subr.bf16.mxu0 %v3750_v5  ;;  %2090 = vmatprep.subr.bf16.mxu1 %v3752_v6  ;;  %v3756_v9 = vld [vmem:[%s4060_s23] sm:$0xff]   ;;  %v3757_v10 = vld [vmem:[%s4060_s23 + $0x8] sm:$0xff]   ;;  %v3758_v11 = vld [vmem:[%s4060_s23 + $0x10] sm:$0xff]   ;;  %p719_p8 = scmp.lt.s32.totalorder %s3480_s24, 15 }
  0x42   : > { %v3759_v12 = vld [vmem:[%s4060_s23 + $0x18] sm:$0xff]   ;;  %v3760_v13 = vld [vmem:[%s4060_s23 + $0x20] sm:$0xff]   ;;  %v3761_v14 = vld [vmem:[%s4060_s23 + $0x28] sm:$0xff]  }
  0x43   : > { %v3762_v15 = vld [vmem:[%s4060_s23 + $0x30] sm:$0xff]   ;;  %v3763_v16 = vld [vmem:[%s4060_s23 + $0x38] sm:$0xff]   ;;  %v3764_v17 = vld [vmem:[%s4060_s23 + $0x40] sm:$0xff]   ;;  %s7079_s24 = smov (!%p719_p8, %s3480_s24), 15 }
  0x44   : > { %1418 = vmatpush1.bf16.msra.mxu0 %v3754_v7  ;;  %2091 = vmatpush1.bf16.msra.mxu1 %v3755_v8  ;;  %v3765_v18 = vld [vmem:[%s4060_s23 + $0x48] sm:$0xff]   ;;  %v3766_v19 = vld [vmem:[%s4060_s23 + $0x50] sm:$0xff]   ;;  %v3767_v20 = vld [vmem:[%s4060_s23 + $0x58] sm:$0xff]   ;;  %s3702_s25 = sshll.u32 %s7079_s24, 4 }
  0x45   : > { %v3768_v21 = vld [vmem:[%s4060_s23 + $0x60] sm:$0xff]   ;;  %v3769_v22 = vld [vmem:[%s4060_s23 + $0x68] sm:$0xff]   ;;  %v3770_v23 = vld [vmem:[%s4060_s23 + $0x70] sm:$0xff]   ;;  %s6488_s28 = scalar_lea.vmem %s6571_s3, %s3702_s25 }
  0x46   : > { %v3771_v24 = vld [vmem:[%s4060_s23 + $0x78] sm:$0xff]   ;;  %v3772_v25 = vld [vmem:[%s4060_s23 + $0x80] sm:$0xff]   ;;  %v3773_v26 = vld [vmem:[%s4060_s23 + $0x88] sm:$0xff]  }
  0x47   : > { %3555 = vmatmul.mubr.msk.bf16.vlgmr.msra.gmra.mrb[0].mxu0 %vm1222_vm0, %v3756_v9  ;;  %3619 = vmatmul.mubr.msk.bf16.vlgmr.msra.gmra.mrb[0].mxu1 %vm1222_vm0, %v3756_v9  ;;  %v3774_v27 = vld [vmem:[%s4060_s23 + $0x90] sm:$0xff]   ;;  %v3775_v28 = vld [vmem:[%s4060_s23 + $0x98] sm:$0xff]   ;;  %v3776_v29 = vld [vmem:[%s4060_s23 + $0xa0] sm:$0xff]  }
  0x48   : > { %1457 = vmatprep.mubr.bf16.mxu0 %v6573_v2  ;;  %2130 = vmatprep.mubr.bf16.mxu1 %v6573_v2  ;;  %v3777_v30 = vld [vmem:[%s4060_s23 + $0xa8] sm:$0xff]   ;;  %v3778_v31 = vld [vmem:[%s4060_s23 + $0xb0] sm:$0xff]   ;;  %v3779_v32 = vld [vmem:[%s4060_s23 + $0xb8] sm:$0xff]  }
  0x49   : > { %v3780_v33 = vld [vmem:[%s4060_s23 + $0xc0] sm:$0xff]   ;;  %v3781_v34 = vld [vmem:[%s4060_s23 + $0xc8] sm:$0xff]   ;;  %v3782_v35 = vld [vmem:[%s4060_s23 + $0xd0] sm:$0xff]  }
  0x4a   : > { %v3783_v40 = vld [vmem:[%s4060_s23 + $0xd8] sm:$0xff]   ;;  %v3784_v49 = vld [vmem:[%s4060_s23 + $0xe0] sm:$0xff]   ;;  %v3785_v58 = vld [vmem:[%s4060_s23 + $0xe8] sm:$0xff]  }
  0x4b   : > { %v3786_v4 = vld [vmem:[%s4060_s23 + $0xf0] sm:$0xff]  }
  0x4f   : > { %3556 = vmatmul.mubr.msk.bf16.gmra.mrb[4].mxu0 %vm1222_vm0, %v3757_v10  ;;  %3620 = vmatmul.mubr.msk.bf16.gmra.mrb[4].mxu1 %vm1222_vm0, %v3757_v10 }
  0x50   : > { %1467 = vmatprep.mubr.bf16.mxu0 %v6573_v2  ;;  %2140 = vmatprep.mubr.bf16.mxu1 %v6573_v2 }
  0x57   : > { %3557 = vmatmul.mubr.msk.bf16.gmra.mrb[8].mxu0 %vm1222_vm0, %v3758_v11  ;;  %3621 = vmatmul.mubr.msk.bf16.gmra.mrb[8].mxu1 %vm1222_vm0, %v3758_v11 }
  0x58   : > { %1477 = vmatprep.mubr.bf16.mxu0 %v6573_v2  ;;  %2150 = vmatprep.mubr.bf16.mxu1 %v6573_v2 }
  0x5f   : > { %3558 = vmatmul.mubr.msk.bf16.gmra.mrb[12].mxu0 %vm1222_vm0, %v3759_v12  ;;  %3622 = vmatmul.mubr.msk.bf16.gmra.mrb[12].mxu1 %vm1222_vm0, %v3759_v12 }
  0x60   : > { %1487 = vmatprep.mubr.bf16.mxu0 %v6573_v2  ;;  %2160 = vmatprep.mubr.bf16.mxu1 %v6573_v2 }
  0x67   : > { %3559 = vmatmul.mubr.msk.bf16.gmra.mrb[16].mxu0 %vm1222_vm0, %v3760_v13  ;;  %3623 = vmatmul.mubr.msk.bf16.gmra.mrb[16].mxu1 %vm1222_vm0, %v3760_v13 }
  0x68   : > { %1497 = vmatprep.mubr.bf16.mxu0 %v6573_v2  ;;  %2170 = vmatprep.mubr.bf16.mxu1 %v6573_v2 }
  0x6f   : > { %3560 = vmatmul.mubr.msk.bf16.gmra.mrb[20].mxu0 %vm1222_vm0, %v3761_v14  ;;  %3624 = vmatmul.mubr.msk.bf16.gmra.mrb[20].mxu1 %vm1222_vm0, %v3761_v14 }
  0x70   : > { %1507 = vmatprep.mubr.bf16.mxu0 %v6573_v2  ;;  %2180 = vmatprep.mubr.bf16.mxu1 %v6573_v2 }
  0x77   : > { %3561 = vmatmul.mubr.msk.bf16.gmra.mrb[24].mxu0 %vm1222_vm0, %v3762_v15  ;;  %3625 = vmatmul.mubr.msk.bf16.gmra.mrb[24].mxu1 %vm1222_vm0, %v3762_v15  ;;  %v3787_v15 = vld [vmem:[%s4060_s23 + $0xf8] sm:$0xff]  }
  0x78   : > { %1517 = vmatprep.mubr.bf16.mxu0 %v6573_v2  ;;  %2190 = vmatprep.mubr.bf16.mxu1 %v6573_v2 }
  0x7f   : > { %3562 = vmatmul.mubr.msk.bf16.gmra.mrb[28].mxu0 %vm1222_vm0, %v3763_v16  ;;  %3626 = vmatmul.mubr.msk.bf16.gmra.mrb[28].mxu1 %vm1222_vm0, %v3763_v16 }
  0x80   : > { %1527 = vmatprep.mubr.bf16.mxu0 %v6573_v2  ;;  %2200 = vmatprep.mubr.bf16.mxu1 %v6573_v2 }
  0x87   : > { %3563 = vmatmul.mubr.msk.bf16.gmra.mrb[32].mxu0 %vm1222_vm0, %v3764_v17  ;;  %3627 = vmatmul.mubr.msk.bf16.gmra.mrb[32].mxu1 %vm1222_vm0, %v3764_v17 }
  0x88   : > { %1537 = vmatprep.mubr.bf16.mxu0 %v6573_v2  ;;  %2210 = vmatprep.mubr.bf16.mxu1 %v6573_v2 }
  0x8f   : > { %3564 = vmatmul.mubr.msk.bf16.gmra.mrb[36].mxu0 %vm1222_vm0, %v3765_v18  ;;  %3628 = vmatmul.mubr.msk.bf16.gmra.mrb[36].mxu1 %vm1222_vm0, %v3765_v18 }
  0x90   : > { %1547 = vmatprep.mubr.bf16.mxu0 %v6573_v2  ;;  %2220 = vmatprep.mubr.bf16.mxu1 %v6573_v2 }
  0x97   : > { %3565 = vmatmul.mubr.msk.bf16.gmra.mrb[40].mxu0 %vm1222_vm0, %v3766_v19  ;;  %3629 = vmatmul.mubr.msk.bf16.gmra.mrb[40].mxu1 %vm1222_vm0, %v3766_v19 }
  0x98   : > { %1557 = vmatprep.mubr.bf16.mxu0 %v6573_v2  ;;  %2230 = vmatprep.mubr.bf16.mxu1 %v6573_v2 }
  0x9f   : > { %3566 = vmatmul.mubr.msk.bf16.gmra.mrb[44].mxu0 %vm1222_vm0, %v3767_v20  ;;  %3630 = vmatmul.mubr.msk.bf16.gmra.mrb[44].mxu1 %vm1222_vm0, %v3767_v20 }
  0xa0   : > { %1567 = vmatprep.mubr.bf16.mxu0 %v6573_v2  ;;  %2240 = vmatprep.mubr.bf16.mxu1 %v6573_v2 }
  0xa7   : > { %3567 = vmatmul.mubr.msk.bf16.gmra.mrb[48].mxu0 %vm1222_vm0, %v3768_v21  ;;  %3631 = vmatmul.mubr.msk.bf16.gmra.mrb[48].mxu1 %vm1222_vm0, %v3768_v21 }
  0xa8   : > { %1577 = vmatprep.mubr.bf16.mxu0 %v6573_v2  ;;  %2250 = vmatprep.mubr.bf16.mxu1 %v6573_v2 }
  0xaf   : > { %3568 = vmatmul.mubr.msk.bf16.gmra.mrb[52].mxu0 %vm1222_vm0, %v3769_v22  ;;  %3632 = vmatmul.mubr.msk.bf16.gmra.mrb[52].mxu1 %vm1222_vm0, %v3769_v22 }
  0xb0   : > { %1587 = vmatprep.mubr.bf16.mxu0 %v6573_v2  ;;  %2260 = vmatprep.mubr.bf16.mxu1 %v6573_v2 }
  0xb7   : > { %3569 = vmatmul.mubr.msk.bf16.gmra.mrb[56].mxu0 %vm1222_vm0, %v3770_v23  ;;  %3633 = vmatmul.mubr.msk.bf16.gmra.mrb[56].mxu1 %vm1222_vm0, %v3770_v23 }
  0xb8   : > { %1597 = vmatprep.mubr.bf16.mxu0 %v6573_v2  ;;  %2270 = vmatprep.mubr.bf16.mxu1 %v6573_v2 }
  0xbf   : > { %3570 = vmatmul.mubr.msk.bf16.gmra.mrb[60].mxu0 %vm1222_vm0, %v3771_v24  ;;  %3634 = vmatmul.mubr.msk.bf16.gmra.mrb[60].mxu1 %vm1222_vm0, %v3771_v24 }
  0xc0   : > { %1607 = vmatprep.mubr.bf16.mxu0 %v6573_v2  ;;  %2280 = vmatprep.mubr.bf16.mxu1 %v6573_v2 }
  0xc7   : > { %3571 = vmatmul.mubr.msk.bf16.gmra.mrb[64].mxu0 %vm1222_vm0, %v3772_v25  ;;  %3635 = vmatmul.mubr.msk.bf16.gmra.mrb[64].mxu1 %vm1222_vm0, %v3772_v25  ;;  %v3789_v25 = vld [vmem:[%s4060_s23 + $0x108] sm:$0xff]  }
  0xc8   : > { %1617 = vmatprep.mubr.bf16.mxu0 %v6573_v2  ;;  %2290 = vmatprep.mubr.bf16.mxu1 %v6573_v2 }
  0xcf   : > { %3572 = vmatmul.mubr.msk.bf16.gmra.mrb[68].mxu0 %vm1222_vm0, %v3773_v26  ;;  %3636 = vmatmul.mubr.msk.bf16.gmra.mrb[68].mxu1 %vm1222_vm0, %v3773_v26 }
  0xd0   : > { %1627 = vmatprep.mubr.bf16.mxu0 %v6573_v2  ;;  %2300 = vmatprep.mubr.bf16.mxu1 %v6573_v2 }
  0xd7   : > { %3573 = vmatmul.mubr.msk.bf16.gmra.mrb[72].mxu0 %vm1222_vm0, %v3774_v27  ;;  %3637 = vmatmul.mubr.msk.bf16.gmra.mrb[72].mxu1 %vm1222_vm0, %v3774_v27 }
  0xd8   : > { %1637 = vmatprep.mubr.bf16.mxu0 %v6573_v2  ;;  %2310 = vmatprep.mubr.bf16.mxu1 %v6573_v2 }
  0xdf   : > { %3574 = vmatmul.mubr.msk.bf16.gmra.mrb[76].mxu0 %vm1222_vm0, %v3775_v28  ;;  %3638 = vmatmul.mubr.msk.bf16.gmra.mrb[76].mxu1 %vm1222_vm0, %v3775_v28 }
  0xe0   : > { %1647 = vmatprep.mubr.bf16.mxu0 %v6573_v2  ;;  %2320 = vmatprep.mubr.bf16.mxu1 %v6573_v2 }
  0xe7   : > { %3575 = vmatmul.mubr.msk.bf16.gmra.mrb[80].mxu0 %vm1222_vm0, %v3776_v29  ;;  %3639 = vmatmul.mubr.msk.bf16.gmra.mrb[80].mxu1 %vm1222_vm0, %v3776_v29 }
  0xe8   : > { %1657 = vmatprep.mubr.bf16.mxu0 %v6573_v2  ;;  %2330 = vmatprep.mubr.bf16.mxu1 %v6573_v2 }
  0xef   : > { %3576 = vmatmul.mubr.msk.bf16.gmra.mrb[84].mxu0 %vm1222_vm0, %v3777_v30  ;;  %3640 = vmatmul.mubr.msk.bf16.gmra.mrb[84].mxu1 %vm1222_vm0, %v3777_v30 }
  0xf0   : > { %1667 = vmatprep.mubr.bf16.mxu0 %v6573_v2  ;;  %2340 = vmatprep.mubr.bf16.mxu1 %v6573_v2 }
  0xf7   : > { %3577 = vmatmul.mubr.msk.bf16.gmra.mrb[88].mxu0 %vm1222_vm0, %v3778_v31  ;;  %3641 = vmatmul.mubr.msk.bf16.gmra.mrb[88].mxu1 %vm1222_vm0, %v3778_v31 }
  0xf8   : > { %1677 = vmatprep.mubr.bf16.mxu0 %v6573_v2  ;;  %2350 = vmatprep.mubr.bf16.mxu1 %v6573_v2 }
  0xff   : > { %3578 = vmatmul.mubr.msk.bf16.gmra.mrb[92].mxu0 %vm1222_vm0, %v3779_v32  ;;  %3642 = vmatmul.mubr.msk.bf16.gmra.mrb[92].mxu1 %vm1222_vm0, %v3779_v32  ;;  %v3788_v32 = vld [vmem:[%s4060_s23 + $0x100] sm:$0xff]  }
 0x100   : > { %1687 = vmatprep.mubr.bf16.mxu0 %v6573_v2  ;;  %2360 = vmatprep.mubr.bf16.mxu1 %v6573_v2 }
 0x107   : > { %3579 = vmatmul.mubr.msk.bf16.gmra.mrb[96].mxu0 %vm1222_vm0, %v3780_v33  ;;  %3643 = vmatmul.mubr.msk.bf16.gmra.mrb[96].mxu1 %vm1222_vm0, %v3780_v33 }
 0x108   : > { %1697 = vmatprep.mubr.bf16.mxu0 %v6573_v2  ;;  %2370 = vmatprep.mubr.bf16.mxu1 %v6573_v2 }
 0x10f   : > { %3580 = vmatmul.mubr.msk.bf16.gmra.mrb[100].mxu0 %vm1222_vm0, %v3781_v34  ;;  %3644 = vmatmul.mubr.msk.bf16.gmra.mrb[100].mxu1 %vm1222_vm0, %v3781_v34 }
 0x110   : > { %1707 = vmatprep.mubr.bf16.mxu0 %v6573_v2  ;;  %2380 = vmatprep.mubr.bf16.mxu1 %v6573_v2 }
 0x117   : > { %3581 = vmatmul.mubr.msk.bf16.gmra.mrb[104].mxu0 %vm1222_vm0, %v3782_v35  ;;  %3645 = vmatmul.mubr.msk.bf16.gmra.mrb[104].mxu1 %vm1222_vm0, %v3782_v35 }
 0x118   : > { %1717 = vmatprep.mubr.bf16.mxu0 %v6573_v2  ;;  %2390 = vmatprep.mubr.bf16.mxu1 %v6573_v2 }
 0x11a   : > { %v4197_v36 = vpop.f32.mrb[0].mxu0  ;;  %v4199_v37 = vpop.f32.mrb[0].mxu1 }
 0x11b   : > { %v4201_v38 = vpop.f32.mrb[1].mxu0  ;;  %v4203_v39 = vpop.f32.mrb[1].mxu1 }
 0x11c   : > { %v4206_v41 = vpop.f32.mrb[2].mxu0  ;;  %v4208_v42 = vpop.f32.mrb[2].mxu1 }
 0x11d   : > { %v4210_v43 = vpop.f32.mrb[3].mxu0  ;;  %v4212_v44 = vpop.f32.mrb[3].mxu1 }
 0x11f   : > { %3582 = vmatmul.mubr.msk.bf16.gmra.mrb[108].mxu0 %vm1222_vm0, %v3783_v40  ;;  %3646 = vmatmul.mubr.msk.bf16.gmra.mrb[108].mxu1 %vm1222_vm0, %v3783_v40 }
 0x120   : > { %1727 = vmatprep.mubr.bf16.mxu0 %v6573_v2  ;;  %2400 = vmatprep.mubr.bf16.mxu1 %v6573_v2 }
 0x122   : > { %v4218_v45 = vpop.f32.mrb[4].mxu0  ;;  %v4220_v46 = vpop.f32.mrb[4].mxu1 }
 0x123   : > { %v4222_v47 = vpop.f32.mrb[5].mxu0  ;;  %v4224_v48 = vpop.f32.mrb[5].mxu1 }
 0x124   : > { %v4227_v50 = vpop.f32.mrb[6].mxu0  ;;  %v4229_v51 = vpop.f32.mrb[6].mxu1 }
 0x125   : > { %v4231_v52 = vpop.f32.mrb[7].mxu0  ;;  %v4233_v53 = vpop.f32.mrb[7].mxu1 }
 0x127   : > { %3583 = vmatmul.mubr.msk.bf16.gmra.mrb[112].mxu0 %vm1222_vm0, %v3784_v49  ;;  %3647 = vmatmul.mubr.msk.bf16.gmra.mrb[112].mxu1 %vm1222_vm0, %v3784_v49 }
 0x128   : > { %1737 = vmatprep.mubr.bf16.mxu0 %v6573_v2  ;;  %2410 = vmatprep.mubr.bf16.mxu1 %v6573_v2 }
 0x12a   : > { %v4239_v54 = vpop.f32.mrb[8].mxu0  ;;  %v4241_v55 = vpop.f32.mrb[8].mxu1 }
 0x12b   : > { %v4243_v56 = vpop.f32.mrb[9].mxu0  ;;  %v4245_v57 = vpop.f32.mrb[9].mxu1 }
 0x12c   : > { %v4248_v59 = vpop.f32.mrb[10].mxu0  ;;  %v4250_v60 = vpop.f32.mrb[10].mxu1 }
 0x12d   : > { %v4252_v61 = vpop.f32.mrb[11].mxu0  ;;  %v4254_v62 = vpop.f32.mrb[11].mxu1 }
 0x12e   : > { %6666 = vst [vmem:[#allocation3_spill] sm:$0xff] %v4254_v62 }
 0x12f   : > { %3584 = vmatmul.mubr.msk.bf16.gmra.mrb[116].mxu0 %vm1222_vm0, %v3785_v58  ;;  %3648 = vmatmul.mubr.msk.bf16.gmra.mrb[116].mxu1 %vm1222_vm0, %v3785_v58 }
 0x130   : > { %1747 = vmatprep.mubr.bf16.mxu0 %v6573_v2  ;;  %2420 = vmatprep.mubr.bf16.mxu1 %v6573_v2 }
 0x132   : > { %v4260_v63 = vpop.f32.mrb[12].mxu0  ;;  %v4262_v0 = vpop.f32.mrb[12].mxu1 }
 0x133   : > { %6667 = vst [vmem:[#allocation4_spill] sm:$0xff] %v4262_v0  ;;  %v4264_v1 = vpop.f32.mrb[13].mxu0  ;;  %v4266_v3 = vpop.f32.mrb[13].mxu1 }
 0x134   : > { %v4269_v5 = vpop.f32.mrb[14].mxu0  ;;  %v4271_v6 = vpop.f32.mrb[14].mxu1 }
 0x135   : > { %6668 = vst [vmem:[#allocation5_spill] sm:$0xff] %v4269_v5  ;;  %6669 = vst [vmem:[#allocation6_spill] sm:$0xff] %v4271_v6  ;;  %v4273_v7 = vpop.f32.mrb[15].mxu0  ;;  %v4275_v8 = vpop.f32.mrb[15].mxu1 }
 0x136   : > { %6670 = vst [vmem:[#allocation7_spill] sm:$0xff] %v4273_v7  ;;  %6671 = vst [vmem:[#allocation8_spill] sm:$0xff] %v4275_v8  ;;  %v3791_v8 = vld [vmem:[%s4060_s23 + $0x118] sm:$0xff]  }
 0x137   : > { %3585 = vmatmul.mubr.msk.bf16.gmra.mrb[120].mxu0 %vm1222_vm0, %v3786_v4  ;;  %3649 = vmatmul.mubr.msk.bf16.gmra.mrb[120].mxu1 %vm1222_vm0, %v3786_v4 }
 0x138   : > { %1757 = vmatprep.mubr.bf16.mxu0 %v6573_v2  ;;  %2430 = vmatprep.mubr.bf16.mxu1 %v6573_v2 }
 0x13a   : > { %v4281_v9 = vpop.f32.mrb[16].mxu0  ;;  %v4283_v10 = vpop.f32.mrb[16].mxu1 }
 0x13b   : > { %v4289_v13 = vpop.f32.mrb[17].mxu0  ;;  %v4291_v14 = vpop.f32.mrb[17].mxu1 }
 0x13c   : > { %v4298_v18 = vpop.f32.mrb[18].mxu0  ;;  %v4300_v19 = vpop.f32.mrb[18].mxu1 }
 0x13d   : > { %v4306_v22 = vpop.f32.mrb[19].mxu0  ;;  %v4308_v23 = vpop.f32.mrb[19].mxu1 }
 0x13f   : > { %3586 = vmatmul.mubr.msk.bf16.gmra.mrb[124].mxu0 %vm1222_vm0, %v3787_v15  ;;  %3650 = vmatmul.mubr.msk.bf16.gmra.mrb[124].mxu1 %vm1222_vm0, %v3787_v15 }
 0x140   : > { %1767 = vmatprep.mubr.bf16.mxu0 %v6573_v2  ;;  %2440 = vmatprep.mubr.bf16.mxu1 %v6573_v2 }
 0x142   : > { %v4318_v26 = vpop.f32.mrb[20].mxu0  ;;  %v4320_v27 = vpop.f32.mrb[20].mxu1 }
 0x143   : > { %v4326_v30 = vpop.f32.mrb[21].mxu0  ;;  %v4328_v31 = vpop.f32.mrb[21].mxu1 }
 0x144   : > { %v4335_v35 = vpop.f32.mrb[22].mxu0  ;;  %v4337_v40 = vpop.f32.mrb[22].mxu1 }
 0x145   : > { %v4343_v4 = vpop.f32.mrb[23].mxu0  ;;  %v4345_v15 = vpop.f32.mrb[23].mxu1 }
 0x147   : > { %3587 = vmatmul.mubr.msk.bf16.gmra.mrb[128].mxu0 %vm1222_vm0, %v3788_v32  ;;  %3651 = vmatmul.mubr.msk.bf16.gmra.mrb[128].mxu1 %vm1222_vm0, %v3788_v32 }
 0x148   : > { %1777 = vmatprep.mubr.bf16.mxu0 %v6573_v2  ;;  %2450 = vmatprep.mubr.bf16.mxu1 %v6573_v2 }
 0x14a   : > { %v4355_v49 = vpop.f32.mrb[24].mxu0  ;;  %v4357_v58 = vpop.f32.mrb[24].mxu1 }
 0x14b   : > { %v4363_v28 = vpop.f32.mrb[25].mxu0  ;;  %v4365_v34 = vpop.f32.mrb[25].mxu1 }
 0x14c   : > { %v4372_v21 = vpop.f32.mrb[26].mxu0  ;;  %v4374_v20 = vpop.f32.mrb[26].mxu1 }
 0x14d   : > { %v4380_v17 = vpop.f32.mrb[27].mxu0  ;;  %v4382_v16 = vpop.f32.mrb[27].mxu1 }
 0x14e   : > { %6672 = vst [vmem:[#allocation9_spill] sm:$0xff] %v4380_v17  ;;  %6673 = vst [vmem:[#allocation10_spill] sm:$0xff] %v4382_v16  ;;  %v3790_v16 = vld [vmem:[%s4060_s23 + $0x110] sm:$0xff]  }
 0x14f   : > { %3588 = vmatmul.mubr.msk.bf16.gmra.mrb[132].mxu0 %vm1222_vm0, %v3789_v25  ;;  %3652 = vmatmul.mubr.msk.bf16.gmra.mrb[132].mxu1 %vm1222_vm0, %v3789_v25  ;;  %v6682_v25 = vmax.f32 %v4199_v37, %v4283_v10  ;;  %v6685_v37 = vmax.f32 %v4206_v41, %v4298_v18 }
 0x150   : > { %1787 = vmatprep.mubr.bf16.mxu0 %v6573_v2  ;;  %2460 = vmatprep.mubr.bf16.mxu1 %v6573_v2 }
 0x152   : > { %v4392_v29 = vpop.f32.mrb[28].mxu0  ;;  %v4394_v33 = vpop.f32.mrb[28].mxu1 }
 0x153   : > { %6674 = vst [vmem:[#allocation11_spill] sm:$0xff] %v4394_v33  ;;  %v4400_v11 = vpop.f32.mrb[29].mxu0  ;;  %v4402_v24 = vpop.f32.mrb[29].mxu1 }
 0x154   : > { %6675 = vst [vmem:[#allocation12_spill] sm:$0xff] %v4402_v24  ;;  %v4409_v62 = vpop.f32.mrb[30].mxu0  ;;  %v4411_v17 = vpop.f32.mrb[30].mxu1  ;;  %v6680_v24 = vmov 0  }
 0x155   : > { %6676 = vst [vmem:[#allocation13_spill] sm:$0xff] %v4409_v62  ;;  %6677 = vst [vmem:[#allocation14_spill] sm:$0xff] %v4411_v17  ;;  %v4417_v33 = vpop.f32.mrb[31].mxu0  ;;  %v4419_v0 = vpop.f32.mrb[31].mxu1  ;;  %v6681_v17 = vmax.f32 %v4197_v36, %v4281_v9  ;;  %v6684_v62 = vmax.f32 %v4203_v39, %v4291_v14  ;;  %v6687_v39 = vmax.f32 %v4210_v43, %v4306_v22 }
 0x156   : > { %6678 = vst [vmem:[#allocation15_spill] sm:$0xff] %v4417_v33  ;;  %6679 = vst [vmem:[#allocation16_spill] sm:$0xff] %v4419_v0  ;;  %v6689_v43 = vmax.f32 %v4218_v45, %v4318_v26 }
 0x157   : > { %3589 = vmatmul.mubr.msk.bf16.gmra.mrb[136].mxu0 %vm1222_vm0, %v3790_v16  ;;  %3653 = vmatmul.mubr.msk.bf16.gmra.mrb[136].mxu1 %vm1222_vm0, %v3790_v16  ;;  %v6683_v16 = vmax.f32 %v4201_v38, %v4289_v13 }
 0x158   : > { %1797 = vmatprep.mubr.bf16.mxu0 %v6680_v24  ;;  %2470 = vmatprep.mubr.bf16.mxu1 %v6680_v24 }
 0x15a   : > { %v1529_v12 = vpop.f32.mrb[32].mxu0  ;;  %v2202_v32 = vpop.f32.mrb[32].mxu1 }
 0x15b   : > { %v4432_v6 = vmax.f32 %v6681_v17, %v1529_v12  ;;  %v4437_v33 = vmax.f32 %v6682_v25, %v2202_v32  ;;  %v1531_v2 = vpop.f32.mrb[33].mxu0  ;;  %v2204_v0 = vpop.f32.mrb[33].mxu1  ;;  %v6686_v12 = vmax.f32 %v4208_v42, %v4300_v19  ;;  %v6692_v25 = vmax.f32 %v4224_v48, %v4328_v31 }
 0x15c   : > { %v4443_v7 = vmax.f32 %v6683_v16, %v1531_v2  ;;  %v4448_v5 = vmax.f32 %v6684_v62, %v2204_v0  ;;  %v1533_v36 = vpop.f32.mrb[34].mxu0  ;;  %v2206_v9 = vpop.f32.mrb[34].mxu1  ;;  %v6688_v0 = vmax.f32 %v4212_v44, %v4308_v23  ;;  %v6690_v44 = vmax.f32 %v4220_v46, %v4320_v27  ;;  %v3792_v23 = vld [vmem:[%s4060_s23 + $0x120] sm:$0xff]  }
 0x15d   : > { %v4453_v10 = vmax.f32 %v6685_v37, %v1533_v36  ;;  %v4458_v17 = vmax.f32 %v6686_v12, %v2206_v9  ;;  %v1535_v2 = vpop.f32.mrb[35].mxu0  ;;  %v2208_v38 = vpop.f32.mrb[35].mxu1  ;;  %v6693_v46 = vmax.f32 %v4227_v50, %v4335_v35  ;;  %v6694_v36 = vmax.f32 %v4229_v51, %v4337_v40 }
 0x15e   : > { %v4463_v62 = vmax.f32 %v6687_v39, %v1535_v2  ;;  %v4468_v13 = vmax.f32 %v6688_v0, %v2208_v38  ;;  %v6695_v48 = vmax.f32 %v4231_v52, %v4343_v4  ;;  %v6696_v37 = vmax.f32 %v4233_v53, %v4345_v15  ;;  %v3793_v2 = vld [vmem:[%s4060_s23 + $0x128] sm:$0xff]  }
 0x15f   : > { %3590 = vmatmul.mubr.msk.bf16.gmra.mrb[140].mxu0 %vm1222_vm0, %v3791_v8  ;;  %3654 = vmatmul.mubr.msk.bf16.gmra.mrb[140].mxu1 %vm1222_vm0, %v3791_v8  ;;  %v6691_v8 = vmax.f32 %v4222_v47, %v4326_v30  ;;  %v6697_v52 = vmax.f32 %v4239_v54, %v4355_v49  ;;  %v6698_v53 = vmax.f32 %v4241_v55, %v4357_v58 }
 0x160   : > { %1807 = vmatprep.mubr.bf16.mxu0 %v6680_v24  ;;  %2480 = vmatprep.mubr.bf16.mxu1 %v6680_v24  ;;  %v6699_v38 = vmax.f32 %v4243_v56, %v4363_v28  ;;  %v6700_v0 = vmax.f32 %v4245_v57, %v4365_v34  ;;  %v6701_v55 = vmax.f32 %v4248_v59, %v4372_v21  ;;  %v6711_v21 = vld [vmem:[#allocation4_spill] sm:$0xff] }
 0x162   : > { %v1539_v41 = vpop.f32.mrb[36].mxu0  ;;  %v2212_v42 = vpop.f32.mrb[36].mxu1 }
 0x163   : > { %v4477_v14 = vmax.f32 %v6689_v43, %v1539_v41  ;;  %v4482_v18 = vmax.f32 %v6690_v44, %v2212_v42  ;;  %v1541_v19 = vpop.f32.mrb[37].mxu0  ;;  %v2214_v22 = vpop.f32.mrb[37].mxu1  ;;  %v6702_v42 = vmax.f32 %v4250_v60, %v4374_v20  ;;  %v6703_v44 = vld [vmem:[#allocation9_spill] sm:$0xff] }
 0x164   : > { %v4488_v32 = vmax.f32 %v6691_v8, %v1541_v19  ;;  %v4493_v16 = vmax.f32 %v6692_v25, %v2214_v22  ;;  %v1543_v45 = vpop.f32.mrb[38].mxu0  ;;  %v2216_v26 = vpop.f32.mrb[38].mxu1  ;;  %v6704_v57 = vmax.f32 %v4252_v61, %v6703_v44  ;;  %v6706_v19 = vld [vmem:[#allocation3_spill] sm:$0xff]  ;;  %v6707_v22 = vld [vmem:[#allocation10_spill] sm:$0xff]  ;;  %v6710_v61 = vmax.f32 %v4260_v63, %v4392_v29 }
 0x165   : > { %v4498_v27 = vmax.f32 %v6693_v46, %v1543_v45  ;;  %v4503_v9 = vmax.f32 %v6694_v36, %v2216_v26  ;;  %v1545_v47 = vpop.f32.mrb[39].mxu0  ;;  %v2218_v30 = vpop.f32.mrb[39].mxu1  ;;  %v6712_v25 = vld [vmem:[#allocation11_spill] sm:$0xff] }
 0x166   : > { %v4508_v31 = vmax.f32 %v6695_v48, %v1545_v47  ;;  %v4513_v12 = vmax.f32 %v6696_v37, %v2218_v30  ;;  %v6713_v45 = vmax.f32 %v6711_v21, %v6712_v25  ;;  %v3794_v47 = vld [vmem:[%s4060_s23 + $0x130] sm:$0xff]   ;;  %v6715_v30 = vmax.f32 %v4264_v1, %v4400_v11  ;;  %v6716_v37 = vld [vmem:[#allocation12_spill] sm:$0xff]  ;;  %v3795_v21 = vld [vmem:[%s4060_s23 + $0x138] sm:$0xff]  }
 0x167   : > { %3591 = vmatmul.mubr.msk.bf16.gmra.mrb[144].mxu0 %vm1222_vm0, %v3792_v23  ;;  %3655 = vmatmul.mubr.msk.bf16.gmra.mrb[144].mxu1 %vm1222_vm0, %v3792_v23  ;;  %v6708_v23 = vmax.f32 %v6706_v19, %v6707_v22 }
 0x168   : > { %1817 = vmatprep.mubr.bf16.mxu0 %v6680_v24  ;;  %2490 = vmatprep.mubr.bf16.mxu1 %v6680_v24 }
 0x16a   : > { %v1549_v50 = vpop.f32.mrb[40].mxu0  ;;  %v2222_v51 = vpop.f32.mrb[40].mxu1 }
 0x16b   : > { %v4522_v35 = vmax.f32 %v6697_v52, %v1549_v50  ;;  %v4527_v40 = vmax.f32 %v6698_v53, %v2222_v51  ;;  %v1551_v4 = vpop.f32.mrb[41].mxu0  ;;  %v2224_v15 = vpop.f32.mrb[41].mxu1  ;;  %v6717_v50 = vmax.f32 %v4266_v3, %v6716_v37  ;;  %v6718_v52 = vld [vmem:[#allocation5_spill] sm:$0xff] }
 0x16c   : > { %v4533_v39 = vmax.f32 %v6699_v38, %v1551_v4  ;;  %v4538_v41 = vmax.f32 %v6700_v0, %v2224_v15  ;;  %v1553_v54 = vpop.f32.mrb[42].mxu0  ;;  %v2226_v49 = vpop.f32.mrb[42].mxu1  ;;  %v6719_v53 = vld [vmem:[#allocation13_spill] sm:$0xff]  ;;  %v6723_v38 = vld [vmem:[#allocation14_spill] sm:$0xff] }
 0x16d   : > { %v4543_v58 = vmax.f32 %v6701_v55, %v1553_v54  ;;  %v4548_v43 = vmax.f32 %v6702_v42, %v2226_v49  ;;  %v1555_v56 = vpop.f32.mrb[43].mxu0  ;;  %v2228_v28 = vpop.f32.mrb[43].mxu1  ;;  %v6720_v4 = vmax.f32 %v6718_v52, %v6719_v53  ;;  %v6726_v49 = vld [vmem:[#allocation7_spill] sm:$0xff] }
 0x16e   : > { %v4553_v34 = vmax.f32 %v6704_v57, %v1555_v56  ;;  %v4558_v8 = vmax.f32 %v6708_v23, %v2228_v28  ;;  %v6727_v55 = vld [vmem:[#allocation15_spill] sm:$0xff]  ;;  %v6730_v56 = vld [vmem:[#allocation8_spill] sm:$0xff] }
 0x16f   : > { %3592 = vmatmul.mubr.msk.bf16.gmra.mrb[148].mxu0 %vm1222_vm0, %v3793_v2  ;;  %3656 = vmatmul.mubr.msk.bf16.gmra.mrb[148].mxu1 %vm1222_vm0, %v3793_v2  ;;  %v6722_v2 = vld [vmem:[#allocation6_spill] sm:$0xff]  ;;  %v6728_v3 = vmax.f32 %v6726_v49, %v6727_v55  ;;  %v6731_v28 = vld [vmem:[#allocation16_spill] sm:$0xff] }
 0x170   : > { %6705 = vst [vmem:[#allocation9_spill] sm:$0xff] %v4553_v34  ;;  %6709 = vst [vmem:[#allocation3_spill] sm:$0xff] %v4558_v8  ;;  %1827 = vmatprep.mubr.bf16.mxu0 %v6680_v24  ;;  %2500 = vmatprep.mubr.bf16.mxu1 %v6680_v24  ;;  %v6724_v0 = vmax.f32 %v6722_v2, %v6723_v38  ;;  %v6732_v44 = vmax.f32 %v6730_v56, %v6731_v28 }
 0x172   : > { %v1559_v59 = vpop.f32.mrb[44].mxu0  ;;  %v2232_v60 = vpop.f32.mrb[44].mxu1 }
 0x173   : > { %v4567_v20 = vmax.f32 %v6710_v61, %v1559_v59  ;;  %v4572_v26 = vmax.f32 %v6713_v45, %v2232_v60  ;;  %v1561_v46 = vpop.f32.mrb[45].mxu0  ;;  %v2234_v36 = vpop.f32.mrb[45].mxu1 }
 0x174   : > { %v4578_v48 = vmax.f32 %v6715_v30, %v1561_v46  ;;  %v4583_v51 = vmax.f32 %v6717_v50, %v2234_v36  ;;  %v1563_v63 = vpop.f32.mrb[46].mxu0  ;;  %v2236_v29 = vpop.f32.mrb[46].mxu1 }
 0x175   : > { %6714 = vst [vmem:[#allocation10_spill] sm:$0xff] %v4572_v26  ;;  %v4588_v15 = vmax.f32 %v6720_v4, %v1563_v63  ;;  %v4593_v54 = vmax.f32 %v6724_v0, %v2236_v29  ;;  %v1565_v1 = vpop.f32.mrb[47].mxu0  ;;  %v2238_v11 = vpop.f32.mrb[47].mxu1  ;;  %v3797_v29 = vld [vmem:[%s4060_s23 + $0x148] sm:$0xff]  }
 0x176   : > { %v4598_v42 = vmax.f32 %v6728_v3, %v1565_v1  ;;  %v4603_v57 = vmax.f32 %v6732_v44, %v2238_v11  ;;  %v3796_v1 = vld [vmem:[%s4060_s23 + $0x140] sm:$0xff]  }
 0x177   : > { %6721 = vst [vmem:[#allocation4_spill] sm:$0xff] %v4588_v15  ;;  %6725 = vst [vmem:[#allocation11_spill] sm:$0xff] %v4593_v54  ;;  %3593 = vmatmul.mubr.msk.bf16.gmra.mrb[152].mxu0 %vm1222_vm0, %v3794_v47  ;;  %3657 = vmatmul.mubr.msk.bf16.gmra.mrb[152].mxu1 %vm1222_vm0, %v3794_v47 }
 0x178   : > { %6729 = vst [vmem:[#allocation12_spill] sm:$0xff] %v4598_v42  ;;  %6733 = vst [vmem:[#allocation5_spill] sm:$0xff] %v4603_v57  ;;  %1837 = vmatprep.mubr.bf16.mxu0 %v6680_v24  ;;  %2510 = vmatprep.mubr.bf16.mxu1 %v6680_v24  ;;  %v3799_v57 = vld [vmem:[%s4060_s23 + $0x158] sm:$0xff]  }
 0x17a   : > { %v4609_v19 = vpop.f32.mrb[48].mxu0  ;;  %v4611_v22 = vpop.f32.mrb[48].mxu1 }
 0x17b   : > { %v4617_v60 = vpop.f32.mrb[49].mxu0  ;;  %v4619_v61 = vpop.f32.mrb[49].mxu1 }
 0x17c   : > { %v4626_v46 = vpop.f32.mrb[50].mxu0  ;;  %v4628_v36 = vpop.f32.mrb[50].mxu1 }
 0x17d   : > { %v4634_v37 = vpop.f32.mrb[51].mxu0  ;;  %v4636_v50 = vpop.f32.mrb[51].mxu1 }
 0x17f   : > { %3594 = vmatmul.mubr.msk.bf16.gmra.mrb[156].mxu0 %vm1222_vm0, %v3795_v21  ;;  %3658 = vmatmul.mubr.msk.bf16.gmra.mrb[156].mxu1 %vm1222_vm0, %v3795_v21 }
 0x180   : > { %1847 = vmatprep.mubr.bf16.mxu0 %v6680_v24  ;;  %2520 = vmatprep.mubr.bf16.mxu1 %v6680_v24 }
 0x182   : > { %v4646_v52 = vpop.f32.mrb[52].mxu0  ;;  %v4648_v53 = vpop.f32.mrb[52].mxu1 }
 0x183   : > { %v4654_v38 = vpop.f32.mrb[53].mxu0  ;;  %v4656_v0 = vpop.f32.mrb[53].mxu1 }
 0x184   : > { %v4663_v55 = vpop.f32.mrb[54].mxu0  ;;  %v4665_v3 = vpop.f32.mrb[54].mxu1 }
 0x185   : > { %v4671_v44 = vpop.f32.mrb[55].mxu0  ;;  %v4673_v21 = vpop.f32.mrb[55].mxu1 }
 0x187   : > { %3595 = vmatmul.mubr.msk.bf16.gmra.mrb[160].mxu0 %vm1222_vm0, %v3796_v1  ;;  %3659 = vmatmul.mubr.msk.bf16.gmra.mrb[160].mxu1 %vm1222_vm0, %v3796_v1 }
 0x188   : > { %1857 = vmatprep.mubr.bf16.mxu0 %v6680_v24  ;;  %2530 = vmatprep.mubr.bf16.mxu1 %v6680_v24 }
 0x18a   : > { %v4683_v56 = vpop.f32.mrb[56].mxu0  ;;  %v4685_v28 = vpop.f32.mrb[56].mxu1 }
 0x18b   : > { %v4691_v4 = vpop.f32.mrb[57].mxu0  ;;  %v4693_v49 = vpop.f32.mrb[57].mxu1 }
 0x18c   : > { %v4700_v30 = vpop.f32.mrb[58].mxu0  ;;  %v4702_v47 = vpop.f32.mrb[58].mxu1 }
 0x18d   : > { %v4708_v45 = vpop.f32.mrb[59].mxu0  ;;  %v4710_v25 = vpop.f32.mrb[59].mxu1 }
 0x18e   : > { %6734 = vst [vmem:[#allocation13_spill] sm:$0xff] %v4708_v45  ;;  %6735 = vst [vmem:[#allocation6_spill] sm:$0xff] %v4710_v25  ;;  %v3798_v25 = vld [vmem:[%s4060_s23 + $0x150] sm:$0xff]  }
 0x18f   : > { %3596 = vmatmul.mubr.msk.bf16.gmra.mrb[164].mxu0 %vm1222_vm0, %v3797_v29  ;;  %3660 = vmatmul.mubr.msk.bf16.gmra.mrb[164].mxu1 %vm1222_vm0, %v3797_v29  ;;  %v6742_v29 = vmax.f32 %v4437_v33, %v4611_v22  ;;  %v6745_v33 = vmax.f32 %v4453_v10, %v4626_v46  ;;  %v6746_v22 = vmax.f32 %v4458_v17, %v4628_v36 }
 0x190   : > { %1867 = vmatprep.mubr.bf16.mxu0 %v6680_v24  ;;  %2540 = vmatprep.mubr.bf16.mxu1 %v6680_v24 }
 0x192   : > { %v4720_v2 = vpop.f32.mrb[60].mxu0  ;;  %v4722_v11 = vpop.f32.mrb[60].mxu1 }
 0x193   : > { %6736 = vst [vmem:[#allocation14_spill] sm:$0xff] %v4722_v11  ;;  %v4728_v23 = vpop.f32.mrb[61].mxu0  ;;  %v4730_v63 = vpop.f32.mrb[61].mxu1 }
 0x194   : > { %v4737_v45 = vpop.f32.mrb[62].mxu0  ;;  %v4739_v34 = vpop.f32.mrb[62].mxu1 }
 0x195   : > { %6737 = vst [vmem:[#allocation7_spill] sm:$0xff] %v4737_v45  ;;  %6738 = vst [vmem:[#allocation15_spill] sm:$0xff] %v4739_v34  ;;  %v4745_v11 = vpop.f32.mrb[63].mxu0  ;;  %v4747_v26 = vpop.f32.mrb[63].mxu1  ;;  %v6741_v34 = vmax.f32 %v4432_v6, %v4609_v19  ;;  %v6744_v45 = vmax.f32 %v4448_v5, %v4619_v61  ;;  %v6747_v5 = vmax.f32 %v4463_v62, %v4634_v37 }
 0x196   : > { %6739 = vst [vmem:[#allocation8_spill] sm:$0xff] %v4745_v11  ;;  %6740 = vst [vmem:[#allocation16_spill] sm:$0xff] %v4747_v26  ;;  %v6749_v62 = vmax.f32 %v4477_v14, %v4646_v52 }
 0x197   : > { %3597 = vmatmul.mubr.msk.bf16.gmra.mrb[168].mxu0 %vm1222_vm0, %v3798_v25  ;;  %3661 = vmatmul.mubr.msk.bf16.gmra.mrb[168].mxu1 %vm1222_vm0, %v3798_v25  ;;  %v6743_v25 = vmax.f32 %v4443_v7, %v4617_v60  ;;  %v6748_v60 = vmax.f32 %v4468_v13, %v4636_v50  ;;  %v6750_v13 = vmax.f32 %v4482_v18, %v4648_v53  ;;  %v3800_v50 = vld [vmem:[%s4060_s23 + $0x160] sm:$0xff]  }
 0x198   : > { %1877 = vmatprep.mubr.bf16.mxu0 %v6680_v24  ;;  %2550 = vmatprep.mubr.bf16.mxu1 %v6680_v24  ;;  %v6753_v18 = vmax.f32 %v4498_v27, %v4663_v55 }
 0x19a   : > { %v1609_v59 = vpop.f32.mrb[64].mxu0  ;;  %v2282_v1 = vpop.f32.mrb[64].mxu1 }
 0x19b   : > { %v4760_v54 = vmax.f32 %v6741_v34, %v1609_v59  ;;  %v4765_v11 = vmax.f32 %v6742_v29, %v2282_v1  ;;  %v1611_v8 = vpop.f32.mrb[65].mxu0  ;;  %v2284_v26 = vpop.f32.mrb[65].mxu1  ;;  %v6752_v29 = vmax.f32 %v4493_v16, %v4656_v0  ;;  %v6755_v16 = vmax.f32 %v4508_v31, %v4671_v44 }
 0x19c   : > { %v4771_v42 = vmax.f32 %v6743_v25, %v1611_v8  ;;  %v4776_v15 = vmax.f32 %v6744_v45, %v2284_v26  ;;  %v1613_v6 = vpop.f32.mrb[66].mxu0  ;;  %v2286_v34 = vpop.f32.mrb[66].mxu1  ;;  %v6757_v31 = vmax.f32 %v4522_v35, %v4683_v56 }
 0x19d   : > { %v4781_v19 = vmax.f32 %v6745_v33, %v1613_v6  ;;  %v4786_v59 = vmax.f32 %v6746_v22, %v2286_v34  ;;  %v1615_v7 = vpop.f32.mrb[67].mxu0  ;;  %v2288_v8 = vpop.f32.mrb[67].mxu1  ;;  %v6754_v6 = vmax.f32 %v4503_v9, %v4665_v3  ;;  %v6756_v33 = vmax.f32 %v4513_v12, %v4673_v21 }
 0x19e   : > { %v4791_v26 = vmax.f32 %v6747_v5, %v1615_v7  ;;  %v4796_v61 = vmax.f32 %v6748_v60, %v2288_v8  ;;  %v6758_v12 = vmax.f32 %v4527_v40, %v4685_v28  ;;  %v3801_v7 = vld [vmem:[%s4060_s23 + $0x168] sm:$0xff]   ;;  %v6759_v8 = vmax.f32 %v4533_v39, %v4691_v4 }
 0x19f   : > { %3598 = vmatmul.mubr.msk.bf16.gmra.mrb[172].mxu0 %vm1222_vm0, %v3799_v57  ;;  %3662 = vmatmul.mubr.msk.bf16.gmra.mrb[172].mxu1 %vm1222_vm0, %v3799_v57  ;;  %v6751_v57 = vmax.f32 %v4488_v32, %v4654_v38  ;;  %v6760_v60 = vmax.f32 %v4538_v41, %v4693_v49  ;;  %v6761_v40 = vmax.f32 %v4543_v58, %v4700_v30 }
 0x1a0   : > { %1887 = vmatprep.mubr.bf16.mxu0 %v6680_v24  ;;  %2560 = vmatprep.mubr.bf16.mxu1 %v6680_v24 }
 0x1a2   : > { %v1619_v10 = vpop.f32.mrb[68].mxu0  ;;  %v2292_v17 = vpop.f32.mrb[68].mxu1 }
 0x1a3   : > { %v4805_v45 = vmax.f32 %v6749_v62, %v1619_v10  ;;  %v4810_v46 = vmax.f32 %v6750_v13, %v2292_v17  ;;  %v1621_v36 = vpop.f32.mrb[69].mxu0  ;;  %v2294_v37 = vpop.f32.mrb[69].mxu1  ;;  %v6762_v17 = vmax.f32 %v4548_v43, %v4702_v47  ;;  %v6763_v13 = vld [vmem:[#allocation9_spill] sm:$0xff]  ;;  %v6771_v47 = vmax.f32 %v4567_v20, %v4720_v2 }
 0x1a4   : > { %v4816_v1 = vmax.f32 %v6751_v57, %v1621_v36  ;;  %v4821_v25 = vmax.f32 %v6752_v29, %v2294_v37  ;;  %v1623_v14 = vpop.f32.mrb[70].mxu0  ;;  %v2296_v52 = vpop.f32.mrb[70].mxu1  ;;  %v6764_v36 = vld [vmem:[#allocation13_spill] sm:$0xff]  ;;  %v6767_v37 = vld [vmem:[#allocation3_spill] sm:$0xff] }
 0x1a5   : > { %v4826_v53 = vmax.f32 %v6753_v18, %v1623_v14  ;;  %v4831_v34 = vmax.f32 %v6754_v6, %v2296_v52  ;;  %v1625_v32 = vpop.f32.mrb[71].mxu0  ;;  %v2298_v38 = vpop.f32.mrb[71].mxu1  ;;  %v6765_v41 = vmax.f32 %v6763_v13, %v6764_v36  ;;  %v6772_v14 = vld [vmem:[#allocation10_spill] sm:$0xff] }
 0x1a6   : > { %v4836_v0 = vmax.f32 %v6755_v16, %v1625_v32  ;;  %v4841_v22 = vmax.f32 %v6756_v33, %v2298_v38  ;;  %v6773_v52 = vld [vmem:[#allocation14_spill] sm:$0xff]  ;;  %v3802_v16 = vld [vmem:[%s4060_s23 + $0x170] sm:$0xff]   ;;  %v6776_v33 = vmax.f32 %v4578_v48, %v4728_v23 }
 0x1a7   : > { %3599 = vmatmul.mubr.msk.bf16.gmra.mrb[176].mxu0 %vm1222_vm0, %v3800_v50  ;;  %3663 = vmatmul.mubr.msk.bf16.gmra.mrb[176].mxu1 %vm1222_vm0, %v3800_v50  ;;  %v6768_v50 = vld [vmem:[#allocation6_spill] sm:$0xff]  ;;  %v6774_v18 = vmax.f32 %v6772_v14, %v6773_v52 }
 0x1a8   : > { %1897 = vmatprep.mubr.bf16.mxu0 %v6680_v24  ;;  %2570 = vmatprep.mubr.bf16.mxu1 %v6680_v24  ;;  %v6769_v57 = vmax.f32 %v6767_v37, %v6768_v50 }
 0x1aa   : > { %v1629_v27 = vpop.f32.mrb[72].mxu0  ;;  %v2302_v9 = vpop.f32.mrb[72].mxu1 }
 0x1ab   : > { %v4850_v55 = vmax.f32 %v6757_v31, %v1629_v27  ;;  %v4855_v3 = vmax.f32 %v6758_v12, %v2302_v9  ;;  %v1631_v44 = vpop.f32.mrb[73].mxu0  ;;  %v2304_v21 = vpop.f32.mrb[73].mxu1  ;;  %v6777_v9 = vmax.f32 %v4583_v51, %v4730_v63  ;;  %v6778_v12 = vld [vmem:[#allocation4_spill] sm:$0xff] }
 0x1ac   : > { %v4861_v5 = vmax.f32 %v6759_v8, %v1631_v44  ;;  %v4866_v10 = vmax.f32 %v6760_v60, %v2304_v21  ;;  %v1633_v35 = vpop.f32.mrb[74].mxu0  ;;  %v2306_v56 = vpop.f32.mrb[74].mxu1  ;;  %v6779_v44 = vld [vmem:[#allocation7_spill] sm:$0xff] }
 0x1ad   : > { %v4871_v28 = vmax.f32 %v6761_v40, %v1633_v35  ;;  %v4876_v62 = vmax.f32 %v6762_v17, %v2306_v56  ;;  %v1635_v39 = vpop.f32.mrb[75].mxu0  ;;  %v2308_v4 = vpop.f32.mrb[75].mxu1  ;;  %v6780_v21 = vmax.f32 %v6778_v12, %v6779_v44  ;;  %v6782_v8 = vld [vmem:[#allocation11_spill] sm:$0xff]  ;;  %v6786_v40 = vld [vmem:[#allocation12_spill] sm:$0xff] }
 0x1ae   : > { %v4881_v49 = vmax.f32 %v6765_v41, %v1635_v39  ;;  %v4886_v29 = vmax.f32 %v6769_v57, %v2308_v4  ;;  %v6783_v60 = vld [vmem:[#allocation15_spill] sm:$0xff]  ;;  %v6787_v17 = vld [vmem:[#allocation8_spill] sm:$0xff]  ;;  %v6790_v39 = vld [vmem:[#allocation5_spill] sm:$0xff] }
 0x1af   : > { %3600 = vmatmul.mubr.msk.bf16.gmra.mrb[180].mxu0 %vm1222_vm0, %v3801_v7  ;;  %3664 = vmatmul.mubr.msk.bf16.gmra.mrb[180].mxu1 %vm1222_vm0, %v3801_v7  ;;  %v6784_v35 = vmax.f32 %v6782_v8, %v6783_v60  ;;  %v6788_v51 = vmax.f32 %v6786_v40, %v6787_v17  ;;  %v6791_v4 = vld [vmem:[#allocation16_spill] sm:$0xff] }
 0x1b0   : > { %6766 = vst [vmem:[#allocation9_spill] sm:$0xff] %v4881_v49  ;;  %6770 = vst [vmem:[#allocation13_spill] sm:$0xff] %v4886_v29  ;;  %1907 = vmatprep.mubr.bf16.mxu0 %v6680_v24  ;;  %2580 = vmatprep.mubr.bf16.mxu1 %v6680_v24  ;;  %v6792_v13 = vmax.f32 %v6790_v39, %v6791_v4 }
 0x1b2   : > { %v1639_v58 = vpop.f32.mrb[76].mxu0  ;;  %v2312_v43 = vpop.f32.mrb[76].mxu1 }
 0x1b3   : > { %v4895_v30 = vmax.f32 %v6771_v47, %v1639_v58  ;;  %v4900_v6 = vmax.f32 %v6774_v18, %v2312_v43  ;;  %v1641_v32 = vpop.f32.mrb[77].mxu0  ;;  %v2314_v38 = vpop.f32.mrb[77].mxu1  ;;  %v3803_v47 = vld [vmem:[%s4060_s23 + $0x178] sm:$0xff]  }
 0x1b4   : > { %v4906_v27 = vmax.f32 %v6776_v33, %v1641_v32  ;;  %v4911_v31 = vmax.f32 %v6777_v9, %v2314_v38  ;;  %v1643_v20 = vpop.f32.mrb[78].mxu0  ;;  %v2316_v2 = vpop.f32.mrb[78].mxu1 }
 0x1b5   : > { %6775 = vst [vmem:[#allocation3_spill] sm:$0xff] %v4900_v6  ;;  %v4916_v7 = vmax.f32 %v6780_v21, %v1643_v20  ;;  %v4921_v56 = vmax.f32 %v6784_v35, %v2316_v2  ;;  %v1645_v48 = vpop.f32.mrb[79].mxu0  ;;  %v2318_v23 = vpop.f32.mrb[79].mxu1  ;;  %v3805_v2 = vld [vmem:[%s4060_s23 + $0x188] sm:$0xff]  }
 0x1b6   : > { %v4926_v63 = vmax.f32 %v6788_v51, %v1645_v48  ;;  %v4931_v36 = vmax.f32 %v6792_v13, %v2318_v23  ;;  %v3804_v48 = vld [vmem:[%s4060_s23 + $0x180] sm:$0xff]  }
 0x1b7   : > { %6781 = vst [vmem:[#allocation6_spill] sm:$0xff] %v4916_v7  ;;  %6785 = vst [vmem:[#allocation10_spill] sm:$0xff] %v4921_v56  ;;  %3601 = vmatmul.mubr.msk.bf16.gmra.mrb[184].mxu0 %vm1222_vm0, %v3802_v16  ;;  %3665 = vmatmul.mubr.msk.bf16.gmra.mrb[184].mxu1 %vm1222_vm0, %v3802_v16 }
 0x1b8   : > { %6789 = vst [vmem:[#allocation14_spill] sm:$0xff] %v4926_v63  ;;  %6793 = vst [vmem:[#allocation4_spill] sm:$0xff] %v4931_v36  ;;  %1917 = vmatprep.mubr.bf16.mxu0 %v6680_v24  ;;  %2590 = vmatprep.mubr.bf16.mxu1 %v6680_v24  ;;  %v3807_v36 = vld [vmem:[%s4060_s23 + $0x198] sm:$0xff]  }
 0x1ba   : > { %v4937_v41 = vpop.f32.mrb[80].mxu0  ;;  %v4939_v37 = vpop.f32.mrb[80].mxu1 }
 0x1bb   : > { %v4945_v58 = vpop.f32.mrb[81].mxu0  ;;  %v4947_v43 = vpop.f32.mrb[81].mxu1 }
 0x1bc   : > { %v4954_v18 = vpop.f32.mrb[82].mxu0  ;;  %v4956_v32 = vpop.f32.mrb[82].mxu1 }
 0x1bd   : > { %v4962_v33 = vpop.f32.mrb[83].mxu0  ;;  %v4964_v9 = vpop.f32.mrb[83].mxu1 }
 0x1bf   : > { %3602 = vmatmul.mubr.msk.bf16.gmra.mrb[188].mxu0 %vm1222_vm0, %v3803_v47  ;;  %3666 = vmatmul.mubr.msk.bf16.gmra.mrb[188].mxu1 %vm1222_vm0, %v3803_v47 }
 0x1c0   : > { %1927 = vmatprep.mubr.bf16.mxu0 %v6680_v24  ;;  %2600 = vmatprep.mubr.bf16.mxu1 %v6680_v24 }
 0x1c2   : > { %v4974_v12 = vpop.f32.mrb[84].mxu0  ;;  %v4976_v44 = vpop.f32.mrb[84].mxu1 }
 0x1c3   : > { %v4982_v60 = vpop.f32.mrb[85].mxu0  ;;  %v4984_v35 = vpop.f32.mrb[85].mxu1 }
 0x1c4   : > { %v4991_v17 = vpop.f32.mrb[86].mxu0  ;;  %v4993_v51 = vpop.f32.mrb[86].mxu1 }
 0x1c5   : > { %v4999_v13 = vpop.f32.mrb[87].mxu0  ;;  %v5001_v47 = vpop.f32.mrb[87].mxu1 }
 0x1c7   : > { %3603 = vmatmul.mubr.msk.bf16.gmra.mrb[192].mxu0 %vm1222_vm0, %v3804_v48  ;;  %3667 = vmatmul.mubr.msk.bf16.gmra.mrb[192].mxu1 %vm1222_vm0, %v3804_v48 }
 0x1c8   : > { %1937 = vmatprep.mubr.bf16.mxu0 %v6680_v24  ;;  %2610 = vmatprep.mubr.bf16.mxu1 %v6680_v24 }
 0x1ca   : > { %v5011_v39 = vpop.f32.mrb[88].mxu0  ;;  %v5013_v4 = vpop.f32.mrb[88].mxu1 }
 0x1cb   : > { %v5019_v21 = vpop.f32.mrb[89].mxu0  ;;  %v5021_v40 = vpop.f32.mrb[89].mxu1 }
 0x1cc   : > { %v5028_v16 = vpop.f32.mrb[90].mxu0  ;;  %v5030_v38 = vpop.f32.mrb[90].mxu1 }
 0x1cd   : > { %v5036_v52 = vpop.f32.mrb[91].mxu0  ;;  %v5038_v14 = vpop.f32.mrb[91].mxu1 }
 0x1ce   : > { %6794 = vst [vmem:[#allocation7_spill] sm:$0xff] %v5036_v52  ;;  %6795 = vst [vmem:[#allocation11_spill] sm:$0xff] %v5038_v14  ;;  %v3806_v14 = vld [vmem:[%s4060_s23 + $0x190] sm:$0xff]  }
 0x1cf   : > { %3604 = vmatmul.mubr.msk.bf16.gmra.mrb[196].mxu0 %vm1222_vm0, %v3805_v2  ;;  %3668 = vmatmul.mubr.msk.bf16.gmra.mrb[196].mxu1 %vm1222_vm0, %v3805_v2  ;;  %v6802_v2 = vmax.f32 %v4765_v11, %v4939_v37  ;;  %v6805_v11 = vmax.f32 %v4781_v19, %v4954_v18  ;;  %v6806_v37 = vmax.f32 %v4786_v59, %v4956_v32 }
 0x1d0   : > { %1947 = vmatprep.mubr.bf16.mxu0 %v6680_v24  ;;  %2620 = vmatprep.mubr.bf16.mxu1 %v6680_v24 }
 0x1d2   : > { %v5048_v8 = vpop.f32.mrb[92].mxu0  ;;  %v5050_v23 = vpop.f32.mrb[92].mxu1 }
 0x1d3   : > { %6796 = vst [vmem:[#allocation15_spill] sm:$0xff] %v5050_v23  ;;  %v5056_v50 = vpop.f32.mrb[93].mxu0  ;;  %v5058_v20 = vpop.f32.mrb[93].mxu1 }
 0x1d4   : > { %v5065_v52 = vpop.f32.mrb[94].mxu0  ;;  %v5067_v49 = vpop.f32.mrb[94].mxu1 }
 0x1d5   : > { %6797 = vst [vmem:[#allocation12_spill] sm:$0xff] %v5065_v52  ;;  %6798 = vst [vmem:[#allocation8_spill] sm:$0xff] %v5067_v49  ;;  %v5073_v23 = vpop.f32.mrb[95].mxu0  ;;  %v5075_v6 = vpop.f32.mrb[95].mxu1  ;;  %v6801_v49 = vmax.f32 %v4760_v54, %v4937_v41  ;;  %v6804_v52 = vmax.f32 %v4776_v15, %v4947_v43  ;;  %v6807_v15 = vmax.f32 %v4791_v26, %v4962_v33 }
 0x1d6   : > { %6799 = vst [vmem:[#allocation5_spill] sm:$0xff] %v5073_v23  ;;  %6800 = vst [vmem:[#allocation16_spill] sm:$0xff] %v5075_v6  ;;  %v6809_v26 = vmax.f32 %v4805_v45, %v4974_v12 }
 0x1d7   : > { %3605 = vmatmul.mubr.msk.bf16.gmra.mrb[200].mxu0 %vm1222_vm0, %v3806_v14  ;;  %3669 = vmatmul.mubr.msk.bf16.gmra.mrb[200].mxu1 %vm1222_vm0, %v3806_v14  ;;  %v6803_v14 = vmax.f32 %v4771_v42, %v4945_v58  ;;  %v6808_v58 = vmax.f32 %v4796_v61, %v4964_v9  ;;  %v6810_v61 = vmax.f32 %v4810_v46, %v4976_v44  ;;  %v3808_v9 = vld [vmem:[%s4060_s23 + $0x1a0] sm:$0xff]  }
 0x1d8   : > { %1957 = vmatprep.mubr.bf16.mxu0 %v6680_v24  ;;  %2630 = vmatprep.mubr.bf16.mxu1 %v6680_v24  ;;  %v6813_v46 = vmax.f32 %v4826_v53, %v4991_v17 }
 0x1da   : > { %v1689_v57 = vpop.f32.mrb[96].mxu0  ;;  %v2362_v48 = vpop.f32.mrb[96].mxu1 }
 0x1db   : > { %v5088_v56 = vmax.f32 %v6801_v49, %v1689_v57  ;;  %v5093_v23 = vmax.f32 %v6802_v2, %v2362_v48  ;;  %v1691_v29 = vpop.f32.mrb[97].mxu0  ;;  %v2364_v6 = vpop.f32.mrb[97].mxu1  ;;  %v6812_v2 = vmax.f32 %v4821_v25, %v4984_v35  ;;  %v6815_v25 = vmax.f32 %v4836_v0, %v4999_v13 }
 0x1dc   : > { %v5099_v63 = vmax.f32 %v6803_v14, %v1691_v29  ;;  %v5104_v7 = vmax.f32 %v6804_v52, %v2364_v6  ;;  %v1693_v54 = vpop.f32.mrb[98].mxu0  ;;  %v2366_v49 = vpop.f32.mrb[98].mxu1  ;;  %v6817_v0 = vmax.f32 %v4850_v55, %v5011_v39 }
 0x1dd   : > { %v5109_v41 = vmax.f32 %v6805_v11, %v1693_v54  ;;  %v5114_v57 = vmax.f32 %v6806_v37, %v2366_v49  ;;  %v1695_v42 = vpop.f32.mrb[99].mxu0  ;;  %v2368_v29 = vpop.f32.mrb[99].mxu1  ;;  %v6814_v54 = vmax.f32 %v4831_v34, %v4993_v51  ;;  %v6816_v11 = vmax.f32 %v4841_v22, %v5001_v47 }
 0x1de   : > { %v5119_v6 = vmax.f32 %v6807_v15, %v1695_v42  ;;  %v5124_v43 = vmax.f32 %v6808_v58, %v2368_v29  ;;  %v6818_v22 = vmax.f32 %v4855_v3, %v5013_v4  ;;  %v3809_v42 = vld [vmem:[%s4060_s23 + $0x1a8] sm:$0xff]   ;;  %v6819_v29 = vmax.f32 %v4861_v5, %v5019_v21 }
 0x1df   : > { %3606 = vmatmul.mubr.msk.bf16.gmra.mrb[204].mxu0 %vm1222_vm0, %v3807_v36  ;;  %3670 = vmatmul.mubr.msk.bf16.gmra.mrb[204].mxu1 %vm1222_vm0, %v3807_v36  ;;  %v6811_v36 = vmax.f32 %v4816_v1, %v4982_v60  ;;  %v6820_v58 = vmax.f32 %v4866_v10, %v5021_v40  ;;  %v6821_v3 = vmax.f32 %v4871_v28, %v5028_v16 }
 0x1e0   : > { %1967 = vmatprep.mubr.bf16.mxu0 %v6680_v24  ;;  %2640 = vmatprep.mubr.bf16.mxu1 %v6680_v24 }
 0x1e2   : > { %v1699_v19 = vpop.f32.mrb[100].mxu0  ;;  %v2372_v59 = vpop.f32.mrb[100].mxu1 }
 0x1e3   : > { %v5133_v52 = vmax.f32 %v6809_v26, %v1699_v19  ;;  %v5138_v18 = vmax.f32 %v6810_v61, %v2372_v59  ;;  %v1701_v32 = vpop.f32.mrb[101].mxu0  ;;  %v2374_v33 = vpop.f32.mrb[101].mxu1  ;;  %v6822_v59 = vmax.f32 %v4876_v62, %v5030_v38  ;;  %v6823_v61 = vld [vmem:[#allocation9_spill] sm:$0xff]  ;;  %v6831_v38 = vmax.f32 %v4895_v30, %v5048_v8 }
 0x1e4   : > { %v5144_v48 = vmax.f32 %v6811_v36, %v1701_v32  ;;  %v5149_v14 = vmax.f32 %v6812_v2, %v2374_v33  ;;  %v1703_v45 = vpop.f32.mrb[102].mxu0  ;;  %v2376_v12 = vpop.f32.mrb[102].mxu1  ;;  %v6824_v32 = vld [vmem:[#allocation7_spill] sm:$0xff]  ;;  %v6827_v33 = vld [vmem:[#allocation13_spill] sm:$0xff] }
 0x1e5   : > { %v5154_v44 = vmax.f32 %v6813_v46, %v1703_v45  ;;  %v5159_v49 = vmax.f32 %v6814_v54, %v2376_v12  ;;  %v1705_v1 = vpop.f32.mrb[103].mxu0  ;;  %v2378_v60 = vpop.f32.mrb[103].mxu1  ;;  %v6825_v10 = vmax.f32 %v6823_v61, %v6824_v32  ;;  %v6832_v45 = vld [vmem:[#allocation3_spill] sm:$0xff] }
 0x1e6   : > { %v5164_v35 = vmax.f32 %v6815_v25, %v1705_v1  ;;  %v5169_v37 = vmax.f32 %v6816_v11, %v2378_v60  ;;  %v6833_v12 = vld [vmem:[#allocation15_spill] sm:$0xff]  ;;  %v3810_v25 = vld [vmem:[%s4060_s23 + $0x1b0] sm:$0xff]   ;;  %v6836_v11 = vmax.f32 %v4906_v27, %v5056_v50 }
 0x1e7   : > { %3607 = vmatmul.mubr.msk.bf16.gmra.mrb[208].mxu0 %vm1222_vm0, %v3808_v9  ;;  %3671 = vmatmul.mubr.msk.bf16.gmra.mrb[208].mxu1 %vm1222_vm0, %v3808_v9  ;;  %v6828_v9 = vld [vmem:[#allocation11_spill] sm:$0xff]  ;;  %v6834_v46 = vmax.f32 %v6832_v45, %v6833_v12 }
 0x1e8   : > { %1977 = vmatprep.mubr.bf16.mxu0 %v6680_v24  ;;  %2650 = vmatprep.mubr.bf16.mxu1 %v6680_v24  ;;  %v6829_v36 = vmax.f32 %v6827_v33, %v6828_v9 }
 0x1ea   : > { %v1709_v53 = vpop.f32.mrb[104].mxu0  ;;  %v2382_v34 = vpop.f32.mrb[104].mxu1 }
 0x1eb   : > { %v5178_v17 = vmax.f32 %v6817_v0, %v1709_v53  ;;  %v5183_v51 = vmax.f32 %v6818_v22, %v2382_v34  ;;  %v1711_v13 = vpop.f32.mrb[105].mxu0  ;;  %v2384_v47 = vpop.f32.mrb[105].mxu1  ;;  %v6837_v34 = vmax.f32 %v4911_v31, %v5058_v20  ;;  %v6838_v22 = vld [vmem:[#allocation6_spill] sm:$0xff] }
 0x1ec   : > { %v5189_v15 = vmax.f32 %v6819_v29, %v1711_v13  ;;  %v5194_v19 = vmax.f32 %v6820_v58, %v2384_v47  ;;  %v1713_v55 = vpop.f32.mrb[106].mxu0  ;;  %v2386_v39 = vpop.f32.mrb[106].mxu1  ;;  %v6839_v13 = vld [vmem:[#allocation12_spill] sm:$0xff]  ;;  %v6842_v29 = vld [vmem:[#allocation10_spill] sm:$0xff] }
 0x1ed   : > { %v5199_v4 = vmax.f32 %v6821_v3, %v1713_v55  ;;  %v5204_v26 = vmax.f32 %v6822_v59, %v2386_v39  ;;  %v1715_v5 = vpop.f32.mrb[107].mxu0  ;;  %v2388_v21 = vpop.f32.mrb[107].mxu1  ;;  %v6840_v47 = vmax.f32 %v6838_v22, %v6839_v13  ;;  %v6843_v58 = vld [vmem:[#allocation8_spill] sm:$0xff]  ;;  %v6846_v3 = vld [vmem:[#allocation14_spill] sm:$0xff]  ;;  %v6847_v59 = vld [vmem:[#allocation5_spill] sm:$0xff] }
 0x1ee   : > { %v5209_v40 = vmax.f32 %v6825_v10, %v1715_v5  ;;  %v5214_v2 = vmax.f32 %v6829_v36, %v2388_v21  ;;  %v6844_v55 = vmax.f32 %v6842_v29, %v6843_v58  ;;  %v6848_v31 = vmax.f32 %v6846_v3, %v6847_v59  ;;  %v6850_v5 = vld [vmem:[#allocation4_spill] sm:$0xff] }
 0x1ef   : > { %3608 = vmatmul.mubr.msk.bf16.gmra.mrb[212].mxu0 %vm1222_vm0, %v3809_v42  ;;  %3672 = vmatmul.mubr.msk.bf16.gmra.mrb[212].mxu1 %vm1222_vm0, %v3809_v42  ;;  %v6851_v21 = vld [vmem:[#allocation16_spill] sm:$0xff] }
 0x1f0   : > { %6826 = vst [vmem:[#allocation9_spill] sm:$0xff] %v5209_v40  ;;  %6830 = vst [vmem:[#allocation7_spill] sm:$0xff] %v5214_v2  ;;  %1987 = vmatprep.mubr.bf16.mxu0 %v6680_v24  ;;  %2660 = vmatprep.mubr.bf16.mxu1 %v6680_v24  ;;  %v6852_v61 = vmax.f32 %v6850_v5, %v6851_v21 }
 0x1f2   : > { %v1719_v28 = vpop.f32.mrb[108].mxu0  ;;  %v2392_v62 = vpop.f32.mrb[108].mxu1 }
 0x1f3   : > { %v5223_v16 = vmax.f32 %v6831_v38, %v1719_v28  ;;  %v5228_v54 = vmax.f32 %v6834_v46, %v2392_v62  ;;  %v1721_v1 = vpop.f32.mrb[109].mxu0  ;;  %v2394_v60 = vpop.f32.mrb[109].mxu1  ;;  %v3811_v38 = vld [vmem:[%s4060_s23 + $0x1b8] sm:$0xff]  }
 0x1f4   : > { %v5234_v53 = vmax.f32 %v6836_v11, %v1721_v1  ;;  %v5239_v0 = vmax.f32 %v6837_v34, %v2394_v60  ;;  %v1723_v30 = vpop.f32.mrb[110].mxu0  ;;  %v2396_v8 = vpop.f32.mrb[110].mxu1 }
 0x1f5   : > { %6835 = vst [vmem:[#allocation13_spill] sm:$0xff] %v5228_v54  ;;  %v5244_v42 = vmax.f32 %v6840_v47, %v1723_v30  ;;  %v5249_v39 = vmax.f32 %v6844_v55, %v2396_v8  ;;  %v1725_v27 = vpop.f32.mrb[111].mxu0  ;;  %v2398_v50 = vpop.f32.mrb[111].mxu1  ;;  %v3813_v8 = vld [vmem:[%s4060_s23 + $0x1c8] sm:$0xff]  }
 0x1f6   : > { %v5254_v20 = vmax.f32 %v6848_v31, %v1725_v27  ;;  %v5259_v32 = vmax.f32 %v6852_v61, %v2398_v50  ;;  %v3812_v27 = vld [vmem:[%s4060_s23 + $0x1c0] sm:$0xff]  }
 0x1f7   : > { %6841 = vst [vmem:[#allocation11_spill] sm:$0xff] %v5244_v42  ;;  %6845 = vst [vmem:[#allocation3_spill] sm:$0xff] %v5249_v39  ;;  %3609 = vmatmul.mubr.msk.bf16.gmra.mrb[216].mxu0 %vm1222_vm0, %v3810_v25  ;;  %3673 = vmatmul.mubr.msk.bf16.gmra.mrb[216].mxu1 %vm1222_vm0, %v3810_v25 }
 0x1f8   : > { %6849 = vst [vmem:[#allocation15_spill] sm:$0xff] %v5254_v20  ;;  %6853 = vst [vmem:[#allocation6_spill] sm:$0xff] %v5259_v32  ;;  %1997 = vmatprep.mubr.bf16.mxu0 %v6680_v24  ;;  %2670 = vmatprep.mubr.bf16.mxu1 %v6680_v24  ;;  %v3815_v32 = vld [vmem:[%s4060_s23 + $0x1d8] sm:$0xff]  }
 0x1fa   : > { %v5265_v10 = vpop.f32.mrb[112].mxu0  ;;  %v5267_v33 = vpop.f32.mrb[112].mxu1 }
 0x1fb   : > { %v5273_v28 = vpop.f32.mrb[113].mxu0  ;;  %v5275_v62 = vpop.f32.mrb[113].mxu1 }
 0x1fc   : > { %v5282_v46 = vpop.f32.mrb[114].mxu0  ;;  %v5284_v1 = vpop.f32.mrb[114].mxu1 }
 0x1fd   : > { %v5290_v11 = vpop.f32.mrb[115].mxu0  ;;  %v5292_v34 = vpop.f32.mrb[115].mxu1 }
 0x1ff   : > { %3610 = vmatmul.mubr.msk.bf16.gmra.mrb[220].mxu0 %vm1222_vm0, %v3811_v38  ;;  %3674 = vmatmul.mubr.msk.bf16.gmra.mrb[220].mxu1 %vm1222_vm0, %v3811_v38 }
 0x200   : > { %2007 = vmatprep.mubr.bf16.mxu0 %v6680_v24  ;;  %2680 = vmatprep.mubr.bf16.mxu1 %v6680_v24 }
 0x202   : > { %v5302_v22 = vpop.f32.mrb[116].mxu0  ;;  %v5304_v13 = vpop.f32.mrb[116].mxu1 }
 0x203   : > { %v5310_v58 = vpop.f32.mrb[117].mxu0  ;;  %v5312_v55 = vpop.f32.mrb[117].mxu1 }
 0x204   : > { %v5319_v59 = vpop.f32.mrb[118].mxu0  ;;  %v5321_v31 = vpop.f32.mrb[118].mxu1 }
 0x205   : > { %v5327_v61 = vpop.f32.mrb[119].mxu0  ;;  %v5329_v38 = vpop.f32.mrb[119].mxu1 }
 0x207   : > { %3611 = vmatmul.mubr.msk.bf16.gmra.mrb[224].mxu0 %vm1222_vm0, %v3812_v27  ;;  %3675 = vmatmul.mubr.msk.bf16.gmra.mrb[224].mxu1 %vm1222_vm0, %v3812_v27 }
 0x208   : > { %2017 = vmatprep.mubr.bf16.mxu0 %v6680_v24  ;;  %2690 = vmatprep.mubr.bf16.mxu1 %v6680_v24 }
 0x20a   : > { %v5339_v5 = vpop.f32.mrb[120].mxu0  ;;  %v5341_v21 = vpop.f32.mrb[120].mxu1 }
 0x20b   : > { %v5347_v47 = vpop.f32.mrb[121].mxu0  ;;  %v5349_v3 = vpop.f32.mrb[121].mxu1 }
 0x20c   : > { %v5356_v25 = vpop.f32.mrb[122].mxu0  ;;  %v5358_v60 = vpop.f32.mrb[122].mxu1 }
 0x20d   : > { %v5364_v12 = vpop.f32.mrb[123].mxu0  ;;  %v5366_v45 = vpop.f32.mrb[123].mxu1 }
 0x20e   : > { %6854 = vst [vmem:[#allocation12_spill] sm:$0xff] %v5364_v12  ;;  %6855 = vst [vmem:[#allocation10_spill] sm:$0xff] %v5366_v45  ;;  %v3814_v45 = vld [vmem:[%s4060_s23 + $0x1d0] sm:$0xff]  }
 0x20f   : > { %3612 = vmatmul.mubr.msk.bf16.gmra.mrb[228].mxu0 %vm1222_vm0, %v3813_v8  ;;  %3676 = vmatmul.mubr.msk.bf16.gmra.mrb[228].mxu1 %vm1222_vm0, %v3813_v8  ;;  %v6862_v8 = vmax.f32 %v5093_v23, %v5267_v33  ;;  %v6865_v23 = vmax.f32 %v5109_v41, %v5282_v46  ;;  %v6866_v33 = vmax.f32 %v5114_v57, %v5284_v1 }
 0x210   : > { %2027 = vmatprep.mubr.bf16.mxu0 %v6680_v24  ;;  %2700 = vmatprep.mubr.bf16.mxu1 %v6680_v24 }
 0x212   : > { %v5376_v29 = vpop.f32.mrb[124].mxu0  ;;  %v5378_v50 = vpop.f32.mrb[124].mxu1 }
 0x213   : > { %6856 = vst [vmem:[#allocation8_spill] sm:$0xff] %v5378_v50  ;;  %v5384_v9 = vpop.f32.mrb[125].mxu0  ;;  %v5386_v30 = vpop.f32.mrb[125].mxu1 }
 0x214   : > { %v5393_v12 = vpop.f32.mrb[126].mxu0  ;;  %v5395_v40 = vpop.f32.mrb[126].mxu1 }
 0x215   : > { %6857 = vst [vmem:[#allocation14_spill] sm:$0xff] %v5393_v12  ;;  %6858 = vst [vmem:[#allocation5_spill] sm:$0xff] %v5395_v40  ;;  %v5401_v50 = vpop.f32.mrb[127].mxu0  ;;  %v5403_v54 = vpop.f32.mrb[127].mxu1  ;;  %v6861_v40 = vmax.f32 %v5088_v56, %v5265_v10  ;;  %v6864_v12 = vmax.f32 %v5104_v7, %v5275_v62  ;;  %v6867_v7 = vmax.f32 %v5119_v6, %v5290_v11 }
 0x216   : > { %6859 = vst [vmem:[#allocation4_spill] sm:$0xff] %v5401_v50  ;;  %6860 = vst [vmem:[#allocation16_spill] sm:$0xff] %v5403_v54  ;;  %v6869_v6 = vmax.f32 %v5133_v52, %v5302_v22 }
 0x217   : > { %3613 = vmatmul.mubr.msk.bf16.gmra.mrb[232].mxu0 %vm1222_vm0, %v3814_v45  ;;  %3677 = vmatmul.mubr.msk.bf16.gmra.mrb[232].mxu1 %vm1222_vm0, %v3814_v45  ;;  %v6863_v45 = vmax.f32 %v5099_v63, %v5273_v28  ;;  %v6868_v28 = vmax.f32 %v5124_v43, %v5292_v34  ;;  %v6870_v43 = vmax.f32 %v5138_v18, %v5304_v13  ;;  %v3816_v34 = vld [vmem:[%s4060_s23 + $0x1e0] sm:$0xff]  }
 0x218   : > { %2037 = vmatprep.mubr.bf16.mxu0 %v6680_v24  ;;  %2710 = vmatprep.mubr.bf16.mxu1 %v6680_v24  ;;  %v6873_v18 = vmax.f32 %v5154_v44, %v5319_v59 }
 0x21a   : > { %v1769_v36 = vpop.f32.mrb[128].mxu0  ;;  %v2442_v27 = vpop.f32.mrb[128].mxu1 }
 0x21b   : > { %v5416_v39 = vmax.f32 %v6861_v40, %v1769_v36  ;;  %v5421_v50 = vmax.f32 %v6862_v8, %v2442_v27  ;;  %v1771_v2 = vpop.f32.mrb[129].mxu0  ;;  %v2444_v54 = vpop.f32.mrb[129].mxu1  ;;  %v6872_v8 = vmax.f32 %v5149_v14, %v5312_v55  ;;  %v6875_v14 = vmax.f32 %v5164_v35, %v5327_v61 }
 0x21c   : > { %v5427_v20 = vmax.f32 %v6863_v45, %v1771_v2  ;;  %v5432_v42 = vmax.f32 %v6864_v12, %v2444_v54  ;;  %v1773_v56 = vpop.f32.mrb[130].mxu0  ;;  %v2446_v40 = vpop.f32.mrb[130].mxu1  ;;  %v6877_v35 = vmax.f32 %v5178_v17, %v5339_v5 }
 0x21d   : > { %v5437_v10 = vmax.f32 %v6865_v23, %v1773_v56  ;;  %v5442_v36 = vmax.f32 %v6866_v33, %v2446_v40  ;;  %v1775_v63 = vpop.f32.mrb[131].mxu0  ;;  %v2448_v2 = vpop.f32.mrb[131].mxu1  ;;  %v6874_v56 = vmax.f32 %v5159_v49, %v5321_v31  ;;  %v6876_v23 = vmax.f32 %v5169_v37, %v5329_v38 }
 0x21e   : > { %v5447_v54 = vmax.f32 %v6867_v7, %v1775_v63  ;;  %v5452_v62 = vmax.f32 %v6868_v28, %v2448_v2  ;;  %v6878_v37 = vmax.f32 %v5183_v51, %v5341_v21  ;;  %v3817_v63 = vld [vmem:[%s4060_s23 + $0x1e8] sm:$0xff]   ;;  %v6879_v2 = vmax.f32 %v5189_v15, %v5347_v47 }
 0x21f   : > { %3614 = vmatmul.mubr.msk.bf16.gmra.mrb[236].mxu0 %vm1222_vm0, %v3815_v32  ;;  %3678 = vmatmul.mubr.msk.bf16.gmra.mrb[236].mxu1 %vm1222_vm0, %v3815_v32  ;;  %v6871_v32 = vmax.f32 %v5144_v48, %v5310_v58  ;;  %v6880_v28 = vmax.f32 %v5194_v19, %v5349_v3  ;;  %v6881_v51 = vmax.f32 %v5199_v4, %v5356_v25 }
 0x220   : > { %2047 = vmatprep.mubr.bf16.mxu0 %v6680_v24  ;;  %2720 = vmatprep.mubr.bf16.mxu1 %v6680_v24 }
 0x222   : > { %v1779_v41 = vpop.f32.mrb[132].mxu0  ;;  %v2452_v57 = vpop.f32.mrb[132].mxu1 }
 0x223   : > { %v5461_v12 = vmax.f32 %v6869_v6, %v1779_v41  ;;  %v5466_v46 = vmax.f32 %v6870_v43, %v2452_v57  ;;  %v1781_v1 = vpop.f32.mrb[133].mxu0  ;;  %v2454_v11 = vpop.f32.mrb[133].mxu1  ;;  %v6882_v57 = vmax.f32 %v5204_v26, %v5358_v60  ;;  %v6883_v43 = vld [vmem:[#allocation9_spill] sm:$0xff]  ;;  %v6890_v60 = vmax.f32 %v5223_v16, %v5376_v29 }
 0x224   : > { %v5472_v27 = vmax.f32 %v6871_v32, %v1781_v1  ;;  %v5477_v45 = vmax.f32 %v6872_v8, %v2454_v11  ;;  %v1783_v52 = vpop.f32.mrb[134].mxu0  ;;  %v2456_v22 = vpop.f32.mrb[134].mxu1  ;;  %v6884_v1 = vld [vmem:[#allocation12_spill] sm:$0xff]  ;;  %v6886_v11 = vld [vmem:[#allocation7_spill] sm:$0xff] }
 0x225   : > { %v5482_v13 = vmax.f32 %v6873_v18, %v1783_v52  ;;  %v5487_v40 = vmax.f32 %v6874_v56, %v2456_v22  ;;  %v1785_v48 = vpop.f32.mrb[135].mxu0  ;;  %v2458_v58 = vpop.f32.mrb[135].mxu1  ;;  %v6885_v19 = vmax.f32 %v6883_v43, %v6884_v1  ;;  %v6891_v52 = vld [vmem:[#allocation13_spill] sm:$0xff]  ;;  %v6892_v22 = vld [vmem:[#allocation8_spill] sm:$0xff] }
 0x226   : > { %v5492_v55 = vmax.f32 %v6875_v14, %v1785_v48  ;;  %v5497_v33 = vmax.f32 %v6876_v23, %v2458_v58  ;;  %v6893_v18 = vmax.f32 %v6891_v52, %v6892_v22  ;;  %v3818_v14 = vld [vmem:[%s4060_s23 + $0x1f0] sm:$0xff]   ;;  %v6895_v23 = vmax.f32 %v5234_v53, %v5384_v9 }
 0x227   : > { %3615 = vmatmul.mubr.msk.bf16.gmra.mrb[240].mxu0 %vm1222_vm0, %v3816_v34  ;;  %3679 = vmatmul.mubr.msk.bf16.gmra.mrb[240].mxu1 %vm1222_vm0, %v3816_v34  ;;  %v6887_v34 = vld [vmem:[#allocation10_spill] sm:$0xff] }
 0x228   : > { %2057 = vmatprep.mubr.bf16.mxu0 %v6680_v24  ;;  %2730 = vmatprep.mubr.bf16.mxu1 %v6680_v24  ;;  %v6888_v32 = vmax.f32 %v6886_v11, %v6887_v34 }
 0x22a   : > { %v1789_v44 = vpop.f32.mrb[136].mxu0  ;;  %v2462_v49 = vpop.f32.mrb[136].mxu1 }
 0x22b   : > { %v5506_v59 = vmax.f32 %v6877_v35, %v1789_v44  ;;  %v5511_v31 = vmax.f32 %v6878_v37, %v2462_v49  ;;  %v1791_v61 = vpop.f32.mrb[137].mxu0  ;;  %v2464_v38 = vpop.f32.mrb[137].mxu1  ;;  %v6897_v49 = vmax.f32 %v5239_v0, %v5386_v30  ;;  %v6899_v37 = vld [vmem:[#allocation11_spill] sm:$0xff] }
 0x22c   : > { %v5517_v7 = vmax.f32 %v6879_v2, %v1791_v61  ;;  %v5522_v41 = vmax.f32 %v6880_v28, %v2464_v38  ;;  %v1793_v17 = vpop.f32.mrb[138].mxu0  ;;  %v2466_v5 = vpop.f32.mrb[138].mxu1  ;;  %v6900_v61 = vld [vmem:[#allocation14_spill] sm:$0xff]  ;;  %v6902_v2 = vld [vmem:[#allocation3_spill] sm:$0xff]  ;;  %v6903_v28 = vld [vmem:[#allocation5_spill] sm:$0xff] }
 0x22d   : > { %v5527_v21 = vmax.f32 %v6881_v51, %v1793_v17  ;;  %v5532_v6 = vmax.f32 %v6882_v57, %v2466_v5  ;;  %v1795_v15 = vpop.f32.mrb[139].mxu0  ;;  %v2468_v47 = vpop.f32.mrb[139].mxu1  ;;  %v6901_v38 = vmax.f32 %v6899_v37, %v6900_v61  ;;  %v6904_v17 = vmax.f32 %v6902_v2, %v6903_v28  ;;  %v6906_v51 = vld [vmem:[#allocation15_spill] sm:$0xff]  ;;  %v6907_v57 = vld [vmem:[#allocation4_spill] sm:$0xff] }
 0x22e   : > { %v5537_v3 = vmax.f32 %v6885_v19, %v1795_v15  ;;  %v5542_v8 = vmax.f32 %v6888_v32, %v2468_v47  ;;  %v6908_v0 = vmax.f32 %v6906_v51, %v6907_v57  ;;  %v6909_v15 = vld [vmem:[#allocation6_spill] sm:$0xff]  ;;  %v6910_v47 = vld [vmem:[#allocation16_spill] sm:$0xff] }
 0x22f   : > { %3616 = vmatmul.mubr.msk.bf16.gmra.mrb[244].mxu0 %vm1222_vm0, %v3817_v63  ;;  %3680 = vmatmul.mubr.msk.bf16.gmra.mrb[244].mxu1 %vm1222_vm0, %v3817_v63  ;;  %v6911_v43 = vmax.f32 %v6909_v15, %v6910_v47 }
 0x230   : > { %6889 = vst [vmem:[#allocation9_spill] sm:$0xff] %v5542_v8  ;;  %2067 = vmatprep.mubr.bf16.mxu0 %v6680_v24  ;;  %2740 = vmatprep.mubr.bf16.mxu1 %v6680_v24 }
 0x232   : > { %v1799_v4 = vpop.f32.mrb[140].mxu0  ;;  %v2472_v26 = vpop.f32.mrb[140].mxu1 }
 0x233   : > { %v5551_v25 = vmax.f32 %v6890_v60, %v1799_v4  ;;  %v5556_v56 = vmax.f32 %v6893_v18, %v2472_v26  ;;  %v1801_v48 = vpop.f32.mrb[141].mxu0  ;;  %v2474_v58 = vpop.f32.mrb[141].mxu1  ;;  %v3819_v60 = vld [vmem:[%s4060_s23 + $0x1f8] sm:$0xff]  }
 0x234   : > { %v5562_v44 = vmax.f32 %v6895_v23, %v1801_v48  ;;  %v5567_v35 = vmax.f32 %v6897_v49, %v2474_v58  ;;  %v1803_v16 = vpop.f32.mrb[142].mxu0  ;;  %v2476_v29 = vpop.f32.mrb[142].mxu1 }
 0x235   : > { %6894 = vst [vmem:[#allocation12_spill] sm:$0xff] %v5556_v56  ;;  %v5572_v63 = vmax.f32 %v6901_v38, %v1803_v16  ;;  %v5577_v5 = vmax.f32 %v6904_v17, %v2476_v29  ;;  %v1805_v53 = vpop.f32.mrb[143].mxu0  ;;  %v2478_v9 = vpop.f32.mrb[143].mxu1 }
 0x236   : > { %6896 = vst [vmem:[#allocation7_spill] sm:$0xff] %v5562_v44  ;;  %6898 = vst [vmem:[#allocation10_spill] sm:$0xff] %v5567_v35  ;;  %v5582_v30 = vmax.f32 %v6908_v0, %v1805_v53  ;;  %v5587_v1 = vmax.f32 %v6911_v43, %v2478_v9 }
 0x237   : > { %6905 = vst [vmem:[#allocation13_spill] sm:$0xff] %v5577_v5  ;;  %3617 = vmatmul.mubr.msk.bf16.gmra.mrb[248].mxu0 %vm1222_vm0, %v3818_v14  ;;  %3681 = vmatmul.mubr.msk.bf16.gmra.mrb[248].mxu1 %vm1222_vm0, %v3818_v14 }
 0x238   : > { %2077 = vmatprep.mubr.bf16.mxu0 %v6680_v24  ;;  %2750 = vmatprep.mubr.bf16.mxu1 %v6680_v24 }
 0x23a   : > { %v5593_v19 = vpop.f32.mrb[144].mxu0  ;;  %v5595_v11 = vpop.f32.mrb[144].mxu1 }
 0x23b   : > { %v5601_v4 = vpop.f32.mrb[145].mxu0  ;;  %v5603_v26 = vpop.f32.mrb[145].mxu1  ;;  %v6920_v0 = vmax.f32 %v5421_v50, %v5595_v11 }
 0x23c   : > { %v5610_v22 = vpop.f32.mrb[146].mxu0  ;;  %v5612_v18 = vpop.f32.mrb[146].mxu1  ;;  %v6921_v43 = vmax.f32 %v5427_v20, %v5601_v4 }
 0x23d   : > { %v5618_v14 = vpop.f32.mrb[147].mxu0  ;;  %v5620_v23 = vpop.f32.mrb[147].mxu1 }
 0x23f   : > { %3618 = vmatmul.mubr.msk.bf16.gmra.mrb[252].mxu0 %vm1222_vm0, %v3819_v60  ;;  %3682 = vmatmul.mubr.msk.bf16.gmra.mrb[252].mxu1 %vm1222_vm0, %v3819_v60  ;;  %v6922_v60 = vmax.f32 %v5432_v42, %v5603_v26 }
 0x242   : > { %v5628_v29 = vpop.f32.mrb[148].mxu0  ;;  %v5630_v37 = vpop.f32.mrb[148].mxu1 }
 0x243   : > { %v5636_v2 = vpop.f32.mrb[149].mxu0  ;;  %v5638_v28 = vpop.f32.mrb[149].mxu1 }
 0x244   : > { %v5644_v9 = vpop.f32.mrb[150].mxu0  ;;  %v5646_v51 = vpop.f32.mrb[150].mxu1 }
 0x245   : > { %v5652_v15 = vpop.f32.mrb[151].mxu0  ;;  %v5654_v47 = vpop.f32.mrb[151].mxu1 }
 0x24a   : > { %v5660_v53 = vpop.f32.mrb[152].mxu0  ;;  %v5662_v17 = vpop.f32.mrb[152].mxu1 }
 0x24b   : > { %v5668_v38 = vpop.f32.mrb[153].mxu0  ;;  %v5670_v61 = vpop.f32.mrb[153].mxu1 }
 0x24c   : > { %v5676_v16 = vpop.f32.mrb[154].mxu0  ;;  %v5678_v49 = vpop.f32.mrb[154].mxu1 }
 0x24d   : > { %v5684_v58 = vpop.f32.mrb[155].mxu0  ;;  %v5686_v48 = vpop.f32.mrb[155].mxu1 }
 0x24e   : > { %6912 = vst [vmem:[#allocation8_spill] sm:$0xff] %v5686_v48 }
 0x252   : > { %v5692_v24 = vpop.f32.mrb[156].mxu0  ;;  %v5694_v52 = vpop.f32.mrb[156].mxu1 }
 0x253   : > { %6913 = vst [vmem:[#allocation11_spill] sm:$0xff] %v5694_v52  ;;  %v5700_v32 = vpop.f32.mrb[157].mxu0  ;;  %v5702_v34 = vpop.f32.mrb[157].mxu1 }
 0x254   : > { %6914 = vst [vmem:[#allocation14_spill] sm:$0xff] %v5700_v32  ;;  %6915 = vst [vmem:[#allocation3_spill] sm:$0xff] %v5702_v34  ;;  %v5708_v48 = vpop.f32.mrb[158].mxu0  ;;  %v5710_v8 = vpop.f32.mrb[158].mxu1  ;;  %v6919_v32 = vmax.f32 %v5416_v39, %v5593_v19 }
 0x255   : > { %6916 = vst [vmem:[#allocation5_spill] sm:$0xff] %v5710_v8  ;;  %v5716_v52 = vpop.f32.mrb[159].mxu0  ;;  %v5718_v56 = vpop.f32.mrb[159].mxu1 }
 0x256   : > { %6917 = vst [vmem:[#allocation15_spill] sm:$0xff] %v5716_v52  ;;  %6918 = vst [vmem:[#allocation4_spill] sm:$0xff] %v5718_v56 }
 0x25a   : > { %v1849_v34 = vpop.f32.mrb[160].mxu0  ;;  %v2522_v35 = vpop.f32.mrb[160].mxu1 }
 0x25b   : > { %v5727_v44 = vmax.f32 %v6919_v32, %v1849_v34  ;;  %v5732_v57 = vmax.f32 %v6920_v0, %v2522_v35  ;;  %v1851_v8 = vpop.f32.mrb[161].mxu0  ;;  %v2524_v5 = vpop.f32.mrb[161].mxu1  ;;  %v6923_v34 = vmax.f32 %v5437_v10, %v5610_v22  ;;  %v6924_v35 = vmax.f32 %v5442_v36, %v5612_v18 }
 0x25c   : > { %v5737_v52 = vmax.f32 %v6921_v43, %v1851_v8  ;;  %v5742_v56 = vmax.f32 %v6922_v60, %v2524_v5  ;;  %v1853_v39 = vpop.f32.mrb[162].mxu0  ;;  %v2526_v19 = vpop.f32.mrb[162].mxu1  ;;  %v6925_v32 = vmax.f32 %v5447_v54, %v5618_v14  ;;  %v6926_v5 = vmax.f32 %v5452_v62, %v5620_v23 }
 0x25d   : > { %v5747_v50 = vmax.f32 %v6923_v34, %v1853_v39  ;;  %v5752_v11 = vmax.f32 %v6924_v35, %v2526_v19  ;;  %v1855_v20 = vpop.f32.mrb[163].mxu0  ;;  %v2528_v8 = vpop.f32.mrb[163].mxu1  ;;  %v6927_v22 = vmax.f32 %v5461_v12, %v5628_v29  ;;  %v6928_v18 = vmax.f32 %v5466_v46, %v5630_v37 }
 0x25e   : > { %v5757_v42 = vmax.f32 %v6925_v32, %v1855_v20  ;;  %v5762_v4 = vmax.f32 %v6926_v5, %v2528_v8  ;;  %v6929_v43 = vmax.f32 %v5472_v27, %v5636_v2  ;;  %v6930_v23 = vmax.f32 %v5477_v45, %v5638_v28 }
 0x25f   : > { %v6931_v39 = vmax.f32 %v5482_v13, %v5644_v9  ;;  %v6932_v37 = vmax.f32 %v5487_v40, %v5646_v51  ;;  %v6933_v34 = vmax.f32 %v5492_v55, %v5652_v15  ;;  %v6934_v28 = vmax.f32 %v5497_v33, %v5654_v47 }
 0x260   : > { %v6935_v20 = vmax.f32 %v5506_v59, %v5660_v53  ;;  %v6936_v51 = vmax.f32 %v5511_v31, %v5662_v17  ;;  %v6937_v32 = vmax.f32 %v5517_v7, %v5668_v38  ;;  %v6938_v47 = vmax.f32 %v5522_v41, %v5670_v61  ;;  %v6942_v61 = vld [vmem:[#allocation9_spill] sm:$0xff] }
 0x261   : > { %v6940_v17 = vmax.f32 %v5532_v6, %v5678_v49  ;;  %v6947_v49 = vld [vmem:[#allocation12_spill] sm:$0xff] }
 0x262   : > { %v1859_v10 = vpop.f32.mrb[164].mxu0  ;;  %v2532_v26 = vpop.f32.mrb[164].mxu1 }
 0x263   : > { %v5767_v36 = vmax.f32 %v6927_v22, %v1859_v10  ;;  %v5772_v0 = vmax.f32 %v6928_v18, %v2532_v26  ;;  %v1861_v54 = vpop.f32.mrb[165].mxu0  ;;  %v2534_v14 = vpop.f32.mrb[165].mxu1  ;;  %v6939_v10 = vmax.f32 %v5527_v21, %v5676_v16  ;;  %v6941_v22 = vmax.f32 %v5537_v3, %v5684_v58  ;;  %v6943_v18 = vld [vmem:[#allocation8_spill] sm:$0xff] }
 0x264   : > { %v5777_v62 = vmax.f32 %v6929_v43, %v1861_v54  ;;  %v5782_v60 = vmax.f32 %v6930_v23, %v2534_v14  ;;  %v1863_v12 = vpop.f32.mrb[166].mxu0  ;;  %v2536_v29 = vpop.f32.mrb[166].mxu1  ;;  %v6944_v54 = vmax.f32 %v6942_v61, %v6943_v18  ;;  %v6946_v43 = vmax.f32 %v5551_v25, %v5692_v24  ;;  %v6948_v23 = vld [vmem:[#allocation11_spill] sm:$0xff] }
 0x265   : > { %v5787_v46 = vmax.f32 %v6931_v39, %v1863_v12  ;;  %v5792_v19 = vmax.f32 %v6932_v37, %v2536_v29  ;;  %v1865_v27 = vpop.f32.mrb[167].mxu0  ;;  %v2538_v2 = vpop.f32.mrb[167].mxu1  ;;  %v6949_v12 = vmax.f32 %v6947_v49, %v6948_v23  ;;  %v6951_v39 = vld [vmem:[#allocation7_spill] sm:$0xff]  ;;  %v6952_v37 = vld [vmem:[#allocation14_spill] sm:$0xff] }
 0x266   : > { %v5797_v45 = vmax.f32 %v6933_v34, %v1865_v27  ;;  %v5802_v35 = vmax.f32 %v6934_v28, %v2538_v2  ;;  %v6953_v27 = vmax.f32 %v6951_v39, %v6952_v37  ;;  %v6955_v34 = vld [vmem:[#allocation10_spill] sm:$0xff]  ;;  %v6956_v28 = vld [vmem:[#allocation3_spill] sm:$0xff] }
 0x26a   : > { %v1869_v13 = vpop.f32.mrb[168].mxu0  ;;  %v2542_v9 = vpop.f32.mrb[168].mxu1 }
 0x26b   : > { %v5807_v40 = vmax.f32 %v6935_v20, %v1869_v13  ;;  %v5812_v8 = vmax.f32 %v6936_v51, %v2542_v9  ;;  %v1871_v55 = vpop.f32.mrb[169].mxu0  ;;  %v2544_v15 = vpop.f32.mrb[169].mxu1  ;;  %v6957_v13 = vmax.f32 %v6955_v34, %v6956_v28  ;;  %v6959_v20 = vmax.f32 %v5572_v63, %v5708_v48 }
 0x26c   : > { %v5817_v33 = vmax.f32 %v6937_v32, %v1871_v55  ;;  %v5822_v5 = vmax.f32 %v6938_v47, %v2544_v15  ;;  %v1873_v59 = vpop.f32.mrb[170].mxu0  ;;  %v2546_v53 = vpop.f32.mrb[170].mxu1  ;;  %v6960_v55 = vld [vmem:[#allocation13_spill] sm:$0xff] }
 0x26d   : > { %v5827_v31 = vmax.f32 %v6939_v10, %v1873_v59  ;;  %v5832_v26 = vmax.f32 %v6940_v17, %v2546_v53  ;;  %v1875_v7 = vpop.f32.mrb[171].mxu0  ;;  %v2548_v38 = vpop.f32.mrb[171].mxu1  ;;  %v6961_v15 = vld [vmem:[#allocation5_spill] sm:$0xff]  ;;  %v6964_v10 = vld [vmem:[#allocation15_spill] sm:$0xff] }
 0x26e   : > { %v5837_v41 = vmax.f32 %v6941_v22, %v1875_v7  ;;  %v5842_v14 = vmax.f32 %v6944_v54, %v2548_v38  ;;  %v6962_v32 = vmax.f32 %v6960_v55, %v6961_v15  ;;  %v6965_v17 = vmax.f32 %v5582_v30, %v6964_v10  ;;  %v6966_v38 = vld [vmem:[#allocation4_spill] sm:$0xff] }
 0x26f   : > { %v6967_v22 = vmax.f32 %v5587_v1, %v6966_v38 }
 0x270   : > { %6945 = vst [vmem:[#allocation6_spill] sm:$0xff] %v5842_v14 }
 0x272   : > { %v1879_v21 = vpop.f32.mrb[172].mxu0  ;;  %v2552_v16 = vpop.f32.mrb[172].mxu1 }
 0x273   : > { %v5847_v6 = vmax.f32 %v6946_v43, %v1879_v21  ;;  %v5852_v29 = vmax.f32 %v6949_v12, %v2552_v16  ;;  %v1881_v3 = vpop.f32.mrb[173].mxu0  ;;  %v2554_v58 = vpop.f32.mrb[173].mxu1 }
 0x274   : > { %v5857_v2 = vmax.f32 %v6953_v27, %v1881_v3  ;;  %v5862_v9 = vmax.f32 %v6957_v13, %v2554_v58  ;;  %v1883_v25 = vpop.f32.mrb[174].mxu0  ;;  %v2556_v24 = vpop.f32.mrb[174].mxu1 }
 0x275   : > { %6950 = vst [vmem:[#allocation16_spill] sm:$0xff] %v5852_v29  ;;  %v5867_v51 = vmax.f32 %v6959_v20, %v1883_v25  ;;  %v5872_v47 = vmax.f32 %v6962_v32, %v2556_v24  ;;  %v1885_v59 = vpop.f32.mrb[175].mxu0  ;;  %v2558_v53 = vpop.f32.mrb[175].mxu1 }
 0x276   : > { %6954 = vst [vmem:[#allocation9_spill] sm:$0xff] %v5857_v2  ;;  %6958 = vst [vmem:[#allocation8_spill] sm:$0xff] %v5862_v9  ;;  %v5877_v7 = vmax.f32 %v6965_v17, %v1885_v59  ;;  %v5882_v61 = vmax.f32 %v6967_v22, %v2558_v53 }
 0x277   : > { %6963 = vst [vmem:[#allocation12_spill] sm:$0xff] %v5872_v47 }
 0x27a   : > { %v5884_v63 = vpop.f32.mrb[176].mxu0  ;;  %v5886_v48 = vpop.f32.mrb[176].mxu1 }
 0x27b   : > { %v5892_v21 = vpop.f32.mrb[177].mxu0  ;;  %v5894_v30 = vpop.f32.mrb[177].mxu1  ;;  %v6976_v53 = vmax.f32 %v5732_v57, %v5886_v48 }
 0x27c   : > { %v5900_v43 = vpop.f32.mrb[178].mxu0  ;;  %v5902_v49 = vpop.f32.mrb[178].mxu1  ;;  %v6977_v38 = vmax.f32 %v5737_v52, %v5892_v21  ;;  %v6978_v22 = vmax.f32 %v5742_v56, %v5894_v30 }
 0x27d   : > { %v5908_v3 = vpop.f32.mrb[179].mxu0  ;;  %v5910_v58 = vpop.f32.mrb[179].mxu1 }
 0x282   : > { %v5916_v27 = vpop.f32.mrb[180].mxu0  ;;  %v5918_v34 = vpop.f32.mrb[180].mxu1 }
 0x283   : > { %v5924_v25 = vpop.f32.mrb[181].mxu0  ;;  %v5926_v24 = vpop.f32.mrb[181].mxu1 }
 0x284   : > { %v5932_v15 = vpop.f32.mrb[182].mxu0  ;;  %v5934_v32 = vpop.f32.mrb[182].mxu1 }
 0x285   : > { %v5940_v10 = vpop.f32.mrb[183].mxu0  ;;  %v5942_v17 = vpop.f32.mrb[183].mxu1 }
 0x28a   : > { %v5948_v55 = vpop.f32.mrb[184].mxu0  ;;  %v5950_v20 = vpop.f32.mrb[184].mxu1 }
 0x28b   : > { %v5956_v13 = vpop.f32.mrb[185].mxu0  ;;  %v5958_v28 = vpop.f32.mrb[185].mxu1 }
 0x28c   : > { %v5964_v37 = vpop.f32.mrb[186].mxu0  ;;  %v5966_v39 = vpop.f32.mrb[186].mxu1 }
 0x28d   : > { %v5972_v12 = vpop.f32.mrb[187].mxu0  ;;  %v5974_v23 = vpop.f32.mrb[187].mxu1 }
 0x28e   : > { %6968 = vst [vmem:[#allocation11_spill] sm:$0xff] %v5974_v23 }
 0x292   : > { %v5980_v1 = vpop.f32.mrb[188].mxu0  ;;  %v5982_v16 = vpop.f32.mrb[188].mxu1 }
 0x293   : > { %6969 = vst [vmem:[#allocation7_spill] sm:$0xff] %v5982_v16  ;;  %v5988_v54 = vpop.f32.mrb[189].mxu0  ;;  %v5990_v18 = vpop.f32.mrb[189].mxu1 }
 0x294   : > { %6970 = vst [vmem:[#allocation14_spill] sm:$0xff] %v5988_v54  ;;  %6971 = vst [vmem:[#allocation10_spill] sm:$0xff] %v5990_v18  ;;  %v5996_v23 = vpop.f32.mrb[190].mxu0  ;;  %v5998_v14 = vpop.f32.mrb[190].mxu1  ;;  %v6975_v54 = vmax.f32 %v5727_v44, %v5884_v63 }
 0x295   : > { %6972 = vst [vmem:[#allocation3_spill] sm:$0xff] %v5998_v14  ;;  %v6004_v16 = vpop.f32.mrb[191].mxu0  ;;  %v6006_v29 = vpop.f32.mrb[191].mxu1 }
 0x296   : > { %6973 = vst [vmem:[#allocation13_spill] sm:$0xff] %v6004_v16  ;;  %6974 = vst [vmem:[#allocation5_spill] sm:$0xff] %v6006_v29 }
 0x29a   : > { %v1929_v18 = vpop.f32.mrb[192].mxu0  ;;  %v2602_v9 = vpop.f32.mrb[192].mxu1 }
 0x29b   : > { %v6015_v2 = vmax.f32 %v6975_v54, %v1929_v18  ;;  %v6020_v59 = vmax.f32 %v6976_v53, %v2602_v9  ;;  %v1931_v14 = vpop.f32.mrb[193].mxu0  ;;  %v2604_v47 = vpop.f32.mrb[193].mxu1  ;;  %v6979_v18 = vmax.f32 %v5747_v50, %v5900_v43  ;;  %v6980_v9 = vmax.f32 %v5752_v11, %v5902_v49 }
 0x29c   : > { %v6025_v16 = vmax.f32 %v6977_v38, %v1931_v14  ;;  %v6030_v29 = vmax.f32 %v6978_v22, %v2604_v47  ;;  %v1933_v44 = vpop.f32.mrb[194].mxu0  ;;  %v2606_v63 = vpop.f32.mrb[194].mxu1  ;;  %v6981_v54 = vmax.f32 %v5757_v42, %v5908_v3  ;;  %v6982_v47 = vmax.f32 %v5762_v4, %v5910_v58 }
 0x29d   : > { %v6035_v57 = vmax.f32 %v6979_v18, %v1933_v44  ;;  %v6040_v48 = vmax.f32 %v6980_v9, %v2606_v63  ;;  %v1935_v52 = vpop.f32.mrb[195].mxu0  ;;  %v2608_v14 = vpop.f32.mrb[195].mxu1  ;;  %v6983_v43 = vmax.f32 %v5767_v36, %v5916_v27  ;;  %v6984_v49 = vmax.f32 %v5772_v0, %v5918_v34 }
 0x29e   : > { %v6045_v56 = vmax.f32 %v6981_v54, %v1935_v52  ;;  %v6050_v21 = vmax.f32 %v6982_v47, %v2608_v14  ;;  %v6985_v38 = vmax.f32 %v5777_v62, %v5924_v25  ;;  %v6986_v58 = vmax.f32 %v5782_v60, %v5926_v24 }
 0x29f   : > { %v6987_v44 = vmax.f32 %v5787_v46, %v5932_v15  ;;  %v6988_v34 = vmax.f32 %v5792_v19, %v5934_v32  ;;  %v6989_v18 = vmax.f32 %v5797_v45, %v5940_v10  ;;  %v6990_v24 = vmax.f32 %v5802_v35, %v5942_v17 }
 0x2a0   : > { %v6991_v52 = vmax.f32 %v5807_v40, %v5948_v55  ;;  %v6992_v32 = vmax.f32 %v5812_v8, %v5950_v20  ;;  %v6993_v54 = vmax.f32 %v5817_v33, %v5956_v13  ;;  %v6994_v17 = vmax.f32 %v5822_v5, %v5958_v28  ;;  %v6998_v28 = vld [vmem:[#allocation6_spill] sm:$0xff] }
 0x2a1   : > { %v6996_v20 = vmax.f32 %v5832_v26, %v5966_v39  ;;  %v7003_v39 = vld [vmem:[#allocation16_spill] sm:$0xff] }
 0x2a2   : > { %v1939_v50 = vpop.f32.mrb[196].mxu0  ;;  %v2612_v30 = vpop.f32.mrb[196].mxu1 }
 0x2a3   : > { %v6055_v11 = vmax.f32 %v6983_v43, %v1939_v50  ;;  %v6060_v53 = vmax.f32 %v6984_v49, %v2612_v30  ;;  %v1941_v42 = vpop.f32.mrb[197].mxu0  ;;  %v2614_v3 = vpop.f32.mrb[197].mxu1  ;;  %v6995_v50 = vmax.f32 %v5827_v31, %v5964_v37  ;;  %v6997_v43 = vmax.f32 %v5837_v41, %v5972_v12  ;;  %v6999_v49 = vld [vmem:[#allocation11_spill] sm:$0xff] }
 0x2a4   : > { %v6065_v4 = vmax.f32 %v6985_v38, %v1941_v42  ;;  %v6070_v22 = vmax.f32 %v6986_v58, %v2614_v3  ;;  %v1943_v36 = vpop.f32.mrb[198].mxu0  ;;  %v2616_v27 = vpop.f32.mrb[198].mxu1  ;;  %v7000_v42 = vmax.f32 %v6998_v28, %v6999_v49  ;;  %v7002_v38 = vmax.f32 %v5847_v6, %v5980_v1  ;;  %v7004_v58 = vld [vmem:[#allocation7_spill] sm:$0xff] }
 0x2a5   : > { %v6075_v0 = vmax.f32 %v6987_v44, %v1943_v36  ;;  %v6080_v63 = vmax.f32 %v6988_v34, %v2616_v27  ;;  %v1945_v62 = vpop.f32.mrb[199].mxu0  ;;  %v2618_v25 = vpop.f32.mrb[199].mxu1  ;;  %v7005_v36 = vmax.f32 %v7003_v39, %v7004_v58  ;;  %v7007_v44 = vld [vmem:[#allocation9_spill] sm:$0xff]  ;;  %v7008_v34 = vld [vmem:[#allocation14_spill] sm:$0xff] }
 0x2a6   : > { %v6085_v60 = vmax.f32 %v6989_v18, %v1945_v62  ;;  %v6090_v9 = vmax.f32 %v6990_v24, %v2618_v25  ;;  %v7009_v62 = vmax.f32 %v7007_v44, %v7008_v34  ;;  %v7011_v18 = vld [vmem:[#allocation8_spill] sm:$0xff]  ;;  %v7012_v24 = vld [vmem:[#allocation10_spill] sm:$0xff] }
 0x2aa   : > { %v1949_v46 = vpop.f32.mrb[200].mxu0  ;;  %v2622_v15 = vpop.f32.mrb[200].mxu1 }
 0x2ab   : > { %v6095_v19 = vmax.f32 %v6991_v52, %v1949_v46  ;;  %v6100_v14 = vmax.f32 %v6992_v32, %v2622_v15  ;;  %v1951_v45 = vpop.f32.mrb[201].mxu0  ;;  %v2624_v10 = vpop.f32.mrb[201].mxu1  ;;  %v7013_v46 = vmax.f32 %v7011_v18, %v7012_v24  ;;  %v7015_v52 = vmax.f32 %v5867_v51, %v5996_v23 }
 0x2ac   : > { %v6105_v35 = vmax.f32 %v6993_v54, %v1951_v45  ;;  %v6110_v47 = vmax.f32 %v6994_v17, %v2624_v10  ;;  %v1953_v40 = vpop.f32.mrb[202].mxu0  ;;  %v2626_v55 = vpop.f32.mrb[202].mxu1  ;;  %v7016_v45 = vld [vmem:[#allocation12_spill] sm:$0xff]  ;;  %v7017_v10 = vld [vmem:[#allocation3_spill] sm:$0xff] }
 0x2ad   : > { %v6115_v8 = vmax.f32 %v6995_v50, %v1953_v40  ;;  %v6120_v30 = vmax.f32 %v6996_v20, %v2626_v55  ;;  %v1955_v33 = vpop.f32.mrb[203].mxu0  ;;  %v2628_v13 = vpop.f32.mrb[203].mxu1  ;;  %v7018_v54 = vmax.f32 %v7016_v45, %v7017_v10  ;;  %v7020_v50 = vld [vmem:[#allocation13_spill] sm:$0xff] }
 0x2ae   : > { %v6125_v5 = vmax.f32 %v6997_v43, %v1955_v33  ;;  %v6130_v3 = vmax.f32 %v7000_v42, %v2628_v13  ;;  %v7021_v20 = vmax.f32 %v5877_v7, %v7020_v50  ;;  %v7022_v13 = vld [vmem:[#allocation5_spill] sm:$0xff] }
 0x2af   : > { %v7023_v43 = vmax.f32 %v5882_v61, %v7022_v13 }
 0x2b0   : > { %7001 = vst [vmem:[#allocation15_spill] sm:$0xff] %v6130_v3 }
 0x2b2   : > { %v1959_v31 = vpop.f32.mrb[204].mxu0  ;;  %v2632_v37 = vpop.f32.mrb[204].mxu1 }
 0x2b3   : > { %v6135_v26 = vmax.f32 %v7002_v38, %v1959_v31  ;;  %v6140_v27 = vmax.f32 %v7005_v36, %v2632_v37  ;;  %v1961_v41 = vpop.f32.mrb[205].mxu0  ;;  %v2634_v12 = vpop.f32.mrb[205].mxu1 }
 0x2b4   : > { %v6145_v25 = vmax.f32 %v7009_v62, %v1961_v41  ;;  %v6150_v15 = vmax.f32 %v7013_v46, %v2634_v12  ;;  %v1963_v6 = vpop.f32.mrb[206].mxu0  ;;  %v2636_v1 = vpop.f32.mrb[206].mxu1 }
 0x2b5   : > { %7006 = vst [vmem:[#allocation4_spill] sm:$0xff] %v6140_v27  ;;  %v6155_v32 = vmax.f32 %v7015_v52, %v1963_v6  ;;  %v6160_v17 = vmax.f32 %v7018_v54, %v2636_v1  ;;  %v1965_v40 = vpop.f32.mrb[207].mxu0  ;;  %v2638_v55 = vpop.f32.mrb[207].mxu1 }
 0x2b6   : > { %7010 = vst [vmem:[#allocation6_spill] sm:$0xff] %v6145_v25  ;;  %7014 = vst [vmem:[#allocation11_spill] sm:$0xff] %v6150_v15  ;;  %v6165_v33 = vmax.f32 %v7021_v20, %v1965_v40  ;;  %v6170_v28 = vmax.f32 %v7023_v43, %v2638_v55 }
 0x2b7   : > { %7019 = vst [vmem:[#allocation16_spill] sm:$0xff] %v6160_v17 }
 0x2ba   : > { %v6172_v51 = vpop.f32.mrb[208].mxu0  ;;  %v6174_v23 = vpop.f32.mrb[208].mxu1 }
 0x2bb   : > { %v6180_v31 = vpop.f32.mrb[209].mxu0  ;;  %v6182_v7 = vpop.f32.mrb[209].mxu1  ;;  %v7032_v55 = vmax.f32 %v6020_v59, %v6174_v23 }
 0x2bc   : > { %v6188_v38 = vpop.f32.mrb[210].mxu0  ;;  %v6190_v39 = vpop.f32.mrb[210].mxu1  ;;  %v7033_v13 = vmax.f32 %v6025_v16, %v6180_v31  ;;  %v7034_v43 = vmax.f32 %v6030_v29, %v6182_v7 }
 0x2bd   : > { %v6196_v41 = vpop.f32.mrb[211].mxu0  ;;  %v6198_v12 = vpop.f32.mrb[211].mxu1 }
 0x2c2   : > { %v6204_v62 = vpop.f32.mrb[212].mxu0  ;;  %v6206_v18 = vpop.f32.mrb[212].mxu1 }
 0x2c3   : > { %v6212_v6 = vpop.f32.mrb[213].mxu0  ;;  %v6214_v1 = vpop.f32.mrb[213].mxu1 }
 0x2c4   : > { %v6220_v10 = vpop.f32.mrb[214].mxu0  ;;  %v6222_v54 = vpop.f32.mrb[214].mxu1 }
 0x2c5   : > { %v6228_v50 = vpop.f32.mrb[215].mxu0  ;;  %v6230_v20 = vpop.f32.mrb[215].mxu1 }
 0x2ca   : > { %v6236_v45 = vpop.f32.mrb[216].mxu0  ;;  %v6238_v52 = vpop.f32.mrb[216].mxu1 }
 0x2cb   : > { %v6244_v46 = vpop.f32.mrb[217].mxu0  ;;  %v6246_v24 = vpop.f32.mrb[217].mxu1 }
 0x2cc   : > { %v6252_v34 = vpop.f32.mrb[218].mxu0  ;;  %v6254_v44 = vpop.f32.mrb[218].mxu1 }
 0x2cd   : > { %v6260_v36 = vpop.f32.mrb[219].mxu0  ;;  %v6262_v58 = vpop.f32.mrb[219].mxu1 }
 0x2ce   : > { %7024 = vst [vmem:[#allocation7_spill] sm:$0xff] %v6262_v58 }
 0x2d2   : > { %v6268_v61 = vpop.f32.mrb[220].mxu0  ;;  %v6270_v37 = vpop.f32.mrb[220].mxu1 }
 0x2d3   : > { %7025 = vst [vmem:[#allocation9_spill] sm:$0xff] %v6270_v37  ;;  %v6276_v42 = vpop.f32.mrb[221].mxu0  ;;  %v6278_v49 = vpop.f32.mrb[221].mxu1 }
 0x2d4   : > { %7026 = vst [vmem:[#allocation14_spill] sm:$0xff] %v6276_v42  ;;  %7027 = vst [vmem:[#allocation8_spill] sm:$0xff] %v6278_v49  ;;  %v6284_v58 = vpop.f32.mrb[222].mxu0  ;;  %v6286_v3 = vpop.f32.mrb[222].mxu1  ;;  %v7031_v42 = vmax.f32 %v6015_v2, %v6172_v51 }
 0x2d5   : > { %7028 = vst [vmem:[#allocation10_spill] sm:$0xff] %v6286_v3  ;;  %v6292_v37 = vpop.f32.mrb[223].mxu0  ;;  %v6294_v27 = vpop.f32.mrb[223].mxu1 }
 0x2d6   : > { %7029 = vst [vmem:[#allocation12_spill] sm:$0xff] %v6292_v37  ;;  %7030 = vst [vmem:[#allocation3_spill] sm:$0xff] %v6294_v27 }
 0x2da   : > { %v2009_v49 = vpop.f32.mrb[224].mxu0  ;;  %v2682_v15 = vpop.f32.mrb[224].mxu1 }
 0x2db   : > { %v6303_v25 = vmax.f32 %v7031_v42, %v2009_v49  ;;  %v6308_v40 = vmax.f32 %v7032_v55, %v2682_v15  ;;  %v2011_v3 = vpop.f32.mrb[225].mxu0  ;;  %v2684_v17 = vpop.f32.mrb[225].mxu1  ;;  %v7035_v49 = vmax.f32 %v6035_v57, %v6188_v38  ;;  %v7036_v15 = vmax.f32 %v6040_v48, %v6190_v39 }
 0x2dc   : > { %v6313_v37 = vmax.f32 %v7033_v13, %v2011_v3  ;;  %v6318_v27 = vmax.f32 %v7034_v43, %v2684_v17  ;;  %v2013_v2 = vpop.f32.mrb[226].mxu0  ;;  %v2686_v51 = vpop.f32.mrb[226].mxu1  ;;  %v7037_v42 = vmax.f32 %v6045_v56, %v6196_v41  ;;  %v7038_v17 = vmax.f32 %v6050_v21, %v6198_v12 }
 0x2dd   : > { %v6323_v59 = vmax.f32 %v7035_v49, %v2013_v2  ;;  %v6328_v23 = vmax.f32 %v7036_v15, %v2686_v51  ;;  %v2015_v16 = vpop.f32.mrb[227].mxu0  ;;  %v2688_v3 = vpop.f32.mrb[227].mxu1  ;;  %v7039_v38 = vmax.f32 %v6055_v11, %v6204_v62  ;;  %v7040_v39 = vmax.f32 %v6060_v53, %v6206_v18 }
 0x2de   : > { %v6333_v29 = vmax.f32 %v7037_v42, %v2015_v16  ;;  %v6338_v31 = vmax.f32 %v7038_v17, %v2688_v3  ;;  %v7041_v13 = vmax.f32 %v6065_v4, %v6212_v6  ;;  %v7042_v12 = vmax.f32 %v6070_v22, %v6214_v1 }
 0x2df   : > { %v7043_v2 = vmax.f32 %v6075_v0, %v6220_v10  ;;  %v7044_v18 = vmax.f32 %v6080_v63, %v6222_v54  ;;  %v7045_v49 = vmax.f32 %v6085_v60, %v6228_v50  ;;  %v7046_v1 = vmax.f32 %v6090_v9, %v6230_v20 }
 0x2e0   : > { %v7047_v16 = vmax.f32 %v6095_v19, %v6236_v45  ;;  %v7048_v54 = vmax.f32 %v6100_v14, %v6238_v52  ;;  %v7049_v9 = vmax.f32 %v6105_v35, %v6244_v46  ;;  %v7050_v42 = vmax.f32 %v6110_v47, %v6246_v24 }
 0x2e1   : > { %v7051_v14 = vmax.f32 %v6115_v8, %v6252_v34  ;;  %v7053_v47 = vmax.f32 %v6125_v5, %v6260_v36 }
 0x2e2   : > { %v2019_v57 = vpop.f32.mrb[228].mxu0  ;;  %v2692_v7 = vpop.f32.mrb[228].mxu1 }
 0x2e3   : > { %v6343_v48 = vmax.f32 %v7039_v38, %v2019_v57  ;;  %v6348_v55 = vmax.f32 %v7040_v39, %v2692_v7  ;;  %v2021_v56 = vpop.f32.mrb[229].mxu0  ;;  %v2694_v41 = vpop.f32.mrb[229].mxu1  ;;  %v7052_v57 = vmax.f32 %v6120_v30, %v6254_v44  ;;  %v3243_v38 = vlaneseq  ;;  %v7054_v39 = vld [vmem:[#allocation15_spill] sm:$0xff] }
 0x2e4   : > { %v6353_v21 = vmax.f32 %v7041_v13, %v2021_v56  ;;  %v6358_v43 = vmax.f32 %v7042_v12, %v2694_v41  ;;  %v2023_v11 = vpop.f32.mrb[230].mxu0  ;;  %v2696_v62 = vpop.f32.mrb[230].mxu1  ;;  %v7055_v56 = vld [vmem:[#allocation7_spill] sm:$0xff]  ;;  %v7057_v44 = vmax.f32 %v6135_v26, %v6268_v61 }
 0x2e5   : > { %v6363_v53 = vmax.f32 %v7043_v2, %v2023_v11  ;;  %v6368_v51 = vmax.f32 %v7044_v18, %v2696_v62  ;;  %v2025_v4 = vpop.f32.mrb[231].mxu0  ;;  %v2698_v6 = vpop.f32.mrb[231].mxu1  ;;  %v7056_v41 = vmax.f32 %v7054_v39, %v7055_v56  ;;  %v3244_v8 = vshrl.u32 %v3243_v38, 7  ;;  %v7058_v11 = vld [vmem:[#allocation4_spill] sm:$0xff]  ;;  %v7059_v62 = vld [vmem:[#allocation9_spill] sm:$0xff]  ;;  %v7073_v56 = vld [vmem:[#allocation3_spill] sm:$0xff] }
 0x2e6   : > { %v6373_v22 = vmax.f32 %v7045_v49, %v2025_v4  ;;  %v6378_v15 = vmax.f32 %v7046_v1, %v2698_v6  ;;  %v7060_v5 = vmax.f32 %v7058_v11, %v7059_v62  ;;  %v7061_v4 = vld [vmem:[#allocation6_spill] sm:$0xff]  ;;  %v7071_v38 = vld [vmem:[#allocation12_spill] sm:$0xff] }
 0x2e7   : > { %v7062_v6 = vld [vmem:[#allocation14_spill] sm:$0xff] }
 0x2e8   : > { %v7063_v49 = vmax.f32 %v7061_v4, %v7062_v6 }
 0x2ea   : > { %v2029_v0 = vpop.f32.mrb[232].mxu0  ;;  %v2702_v10 = vpop.f32.mrb[232].mxu1 }
 0x2eb   : > { %v6383_v63 = vmax.f32 %v7047_v16, %v2029_v0  ;;  %v6388_v3 = vmax.f32 %v7048_v54, %v2702_v10  ;;  %v2031_v60 = vpop.f32.mrb[233].mxu0  ;;  %v2704_v50 = vpop.f32.mrb[233].mxu1  ;;  %v7064_v0 = vld [vmem:[#allocation11_spill] sm:$0xff]  ;;  %v7065_v10 = vld [vmem:[#allocation8_spill] sm:$0xff] }
 0x2ec   : > { %v6393_v20 = vmax.f32 %v7049_v9, %v2031_v60  ;;  %v6398_v17 = vmax.f32 %v7050_v42, %v2704_v50  ;;  %v2033_v19 = vpop.f32.mrb[234].mxu0  ;;  %v2706_v45 = vpop.f32.mrb[234].mxu1  ;;  %v7066_v16 = vmax.f32 %v7064_v0, %v7065_v10  ;;  %v7067_v60 = vmax.f32 %v6155_v32, %v6284_v58  ;;  %v7068_v9 = vld [vmem:[#allocation16_spill] sm:$0xff]  ;;  %v7069_v42 = vld [vmem:[#allocation10_spill] sm:$0xff]  ;;  %v3241_v58 = vld [vmem:[%s6570_s2] sm:$0xf] }
 0x2ed   : > { %v6403_v52 = vmax.f32 %v7051_v14, %v2033_v19  ;;  %v6408_v7 = vmax.f32 %v7052_v57, %v2706_v45  ;;  %v2035_v35 = vpop.f32.mrb[235].mxu0  ;;  %v2708_v46 = vpop.f32.mrb[235].mxu1  ;;  %v7070_v19 = vmax.f32 %v7068_v9, %v7069_v42 }
 0x2ee   : > { %v6413_v24 = vmax.f32 %v7053_v47, %v2035_v35  ;;  %v6418_v13 = vmax.f32 %v7056_v41, %v2708_v46  ;;  %v3245_v35 = vsub.s32 0, %v3244_v8  ;;  %v3253_v46 = vsub.s32 2, %v3244_v8 }
 0x2ef   : > { %v7072_v47 = vmax.f32 %v6165_v33, %v7071_v38  ;;  %v7074_v41 = vmax.f32 %v6170_v28, %v7073_v56 }
 0x2f0   : > { %v6467_v11 = vrot.slane %v3241_v58, %v3253_v46 }
 0x2f2   : > { %v2039_v34 = vpop.f32.mrb[236].mxu0  ;;  %v2712_v30 = vpop.f32.mrb[236].mxu1 }
 0x2f3   : > { %v6425_v12 = vmax.f32 %v7057_v44, %v2039_v34  ;;  %v6430_v36 = vmax.f32 %v7060_v5, %v2712_v30  ;;  %v2041_v2 = vpop.f32.mrb[237].mxu0  ;;  %v2714_v18 = vpop.f32.mrb[237].mxu1  ;;  %v3249_v34 = vsub.s32 1, %v3244_v8  ;;  %v3257_v30 = vsub.s32 3, %v3244_v8 }
 0x2f4   : > { %v6435_v1 = vmax.f32 %v7063_v49, %v2041_v2  ;;  %v6440_v54 = vmax.f32 %v7066_v16, %v2714_v18  ;;  %v2043_v26 = vpop.f32.mrb[238].mxu0  ;;  %v2716_v61 = vpop.f32.mrb[238].mxu1  ;;  %v6465_v44 = vrot.slane %v3241_v58, %v3245_v35 }
 0x2f5   : > { %v6445_v50 = vmax.f32 %v7067_v60, %v2043_v26  ;;  %v6450_v45 = vmax.f32 %v7070_v19, %v2716_v61  ;;  %v2045_v14 = vpop.f32.mrb[239].mxu0  ;;  %v2718_v57 = vpop.f32.mrb[239].mxu1  ;;  %v6469_v5 = vrot.slane %v3241_v58, %v3249_v34  ;;  %v6471_v2 = vrot.slane %v3241_v58, %v3257_v30 }
 0x2f6   : > { %v6455_v39 = vmax.f32 %v7072_v47, %v2045_v14  ;;  %v6460_v32 = vmax.f32 %v7074_v41, %v2718_v57 }
 0x2fa   : > { %v2049_v62 = vpop.f32.mrb[240].mxu0  ;;  %v2722_v33 = vpop.f32.mrb[240].mxu1 }
 0x2fb   : > { %v3209_v28 = vmax.f32 %v6303_v25, %v2049_v62  ;;  %v3211_v18 = vmax.f32 %v6308_v40, %v2722_v33  ;;  %v2051_v4 = vpop.f32.mrb[241].mxu0  ;;  %v2724_v6 = vpop.f32.mrb[241].mxu1 }
 0x2fc   : > { %v3210_v8 = vmax.f32 %v6313_v37, %v2051_v4  ;;  %v3212_v49 = vmax.f32 %v6318_v27, %v2724_v6  ;;  %v2053_v0 = vpop.f32.mrb[242].mxu0  ;;  %v2726_v10 = vpop.f32.mrb[242].mxu1 }
 0x2fd   : > { %v3263_v16 = vadd.f32 %v6465_v44, %v3209_v28  ;;  %v3265_v26 = vadd.f32 %v6467_v11, %v3211_v18  ;;  %v3213_v61 = vmax.f32 %v6323_v59, %v2053_v0  ;;  %v3215_v60 = vmax.f32 %v6328_v23, %v2726_v10  ;;  %v2055_v25 = vpop.f32.mrb[243].mxu0  ;;  %v2728_v9 = vpop.f32.mrb[243].mxu1 }
 0x2fe   : > { %v3264_v40 = vadd.f32 %v6469_v5, %v3210_v8  ;;  %v3266_v42 = vadd.f32 %v6471_v2, %v3212_v49  ;;  %v3214_v37 = vmax.f32 %v6333_v29, %v2055_v25  ;;  %v3216_v27 = vmax.f32 %v6338_v31, %v2728_v9 }
 0x2ff   : > { %v3267_v59 = vadd.f32 %v6465_v44, %v3213_v61  ;;  %v3269_v23 = vadd.f32 %v6467_v11, %v3215_v60 }
 0x300   : > { %v3703_v19 = vpack.c.bf16 %v3264_v40, %v3263_v16  ;;  %v3704_v14 = vpack.c.bf16 %v3266_v42, %v3265_v26  ;;  %v3268_v57 = vadd.f32 %v6469_v5, %v3214_v37  ;;  %v3270_v29 = vadd.f32 %v6471_v2, %v3216_v27 }
 0x302   : > { %3391 = vst [vmem:[%s6488_s28] sm:$0xff] %v3703_v19  ;;  %3392 = vst [vmem:[%s6488_s28 + $0x8] sm:$0xff] %v3704_v14  ;;  %v3705_v31 = vpack.c.bf16 %v3268_v57, %v3267_v59  ;;  %v3706_v35 = vpack.c.bf16 %v3270_v29, %v3269_v23  ;;  %v2059_v46 = vpop.f32.mrb[244].mxu0  ;;  %v2732_v38 = vpop.f32.mrb[244].mxu1 }
 0x303   : > { %v3217_v47 = vmax.f32 %v6343_v48, %v2059_v46  ;;  %v3219_v56 = vmax.f32 %v6348_v55, %v2732_v38  ;;  %v2061_v41 = vpop.f32.mrb[245].mxu0  ;;  %v2734_v58 = vpop.f32.mrb[245].mxu1 }
 0x304   : > { %3393 = vst [vmem:[%s6488_s28 + $0x10] sm:$0xff] %v3705_v31  ;;  %3394 = vst [vmem:[%s6488_s28 + $0x18] sm:$0xff] %v3706_v35  ;;  %v3218_v34 = vmax.f32 %v6353_v21, %v2061_v41  ;;  %v3220_v30 = vmax.f32 %v6358_v43, %v2734_v58  ;;  %v2063_v62 = vpop.f32.mrb[246].mxu0  ;;  %v2736_v33 = vpop.f32.mrb[246].mxu1 }
 0x305   : > { %v3271_v28 = vadd.f32 %v6465_v44, %v3217_v47  ;;  %v3273_v18 = vadd.f32 %v6467_v11, %v3219_v56  ;;  %v3221_v48 = vmax.f32 %v6363_v53, %v2063_v62  ;;  %v3223_v55 = vmax.f32 %v6368_v51, %v2736_v33  ;;  %v2065_v4 = vpop.f32.mrb[247].mxu0  ;;  %v2738_v6 = vpop.f32.mrb[247].mxu1 }
 0x306   : > { %v3272_v8 = vadd.f32 %v6469_v5, %v3218_v34  ;;  %v3274_v21 = vadd.f32 %v6471_v2, %v3220_v30  ;;  %v3222_v43 = vmax.f32 %v6373_v22, %v2065_v4  ;;  %v3224_v49 = vmax.f32 %v6378_v15, %v2738_v6 }
 0x307   : > { %v3275_v0 = vadd.f32 %v6465_v44, %v3221_v48  ;;  %v3277_v10 = vadd.f32 %v6467_v11, %v3223_v55 }
 0x308   : > { %v3707_v16 = vpack.c.bf16 %v3272_v8, %v3271_v28  ;;  %v3708_v53 = vpack.c.bf16 %v3274_v21, %v3273_v18  ;;  %v3276_v51 = vadd.f32 %v6469_v5, %v3222_v43  ;;  %v3278_v26 = vadd.f32 %v6471_v2, %v3224_v49 }
 0x30a   : > { %3395 = vst [vmem:[%s6488_s28 + $0x20] sm:$0xff] %v3707_v16  ;;  %3396 = vst [vmem:[%s6488_s28 + $0x28] sm:$0xff] %v3708_v53  ;;  %v3709_v61 = vpack.c.bf16 %v3276_v51, %v3275_v0  ;;  %v3710_v60 = vpack.c.bf16 %v3278_v26, %v3277_v10  ;;  %v2069_v25 = vpop.f32.mrb[248].mxu0  ;;  %v2742_v22 = vpop.f32.mrb[248].mxu1 }
 0x30b   : > { %v3225_v15 = vmax.f32 %v6383_v63, %v2069_v25  ;;  %v3227_v9 = vmax.f32 %v6388_v3, %v2742_v22  ;;  %v2071_v40 = vpop.f32.mrb[249].mxu0  ;;  %v2744_v42 = vpop.f32.mrb[249].mxu1 }
 0x30c   : > { %3397 = vst [vmem:[%s6488_s28 + $0x30] sm:$0xff] %v3709_v61  ;;  %3398 = vst [vmem:[%s6488_s28 + $0x38] sm:$0xff] %v3710_v60  ;;  %v3226_v37 = vmax.f32 %v6393_v20, %v2071_v40  ;;  %v3228_v27 = vmax.f32 %v6398_v17, %v2744_v42  ;;  %v2073_v59 = vpop.f32.mrb[250].mxu0  ;;  %v2746_v23 = vpop.f32.mrb[250].mxu1 }
 0x30d   : > { %v3279_v19 = vadd.f32 %v6465_v44, %v3225_v15  ;;  %v3281_v14 = vadd.f32 %v6467_v11, %v3227_v9  ;;  %v3229_v63 = vmax.f32 %v6403_v52, %v2073_v59  ;;  %v3231_v3 = vmax.f32 %v6408_v7, %v2746_v23  ;;  %v2075_v57 = vpop.f32.mrb[251].mxu0  ;;  %v2748_v29 = vpop.f32.mrb[251].mxu1 }
 0x30e   : > { %v3280_v31 = vadd.f32 %v6469_v5, %v3226_v37  ;;  %v3282_v20 = vadd.f32 %v6471_v2, %v3228_v27  ;;  %v3230_v17 = vmax.f32 %v6413_v24, %v2075_v57  ;;  %v3232_v35 = vmax.f32 %v6418_v13, %v2748_v29 }
 0x30f   : > { %v3283_v46 = vadd.f32 %v6465_v44, %v3229_v63  ;;  %v3285_v38 = vadd.f32 %v6467_v11, %v3231_v3 }
 0x310   : > { %v3711_v47 = vpack.c.bf16 %v3280_v31, %v3279_v19  ;;  %v3712_v52 = vpack.c.bf16 %v3282_v20, %v3281_v14  ;;  %v3284_v7 = vadd.f32 %v6469_v5, %v3230_v17  ;;  %v3286_v56 = vadd.f32 %v6471_v2, %v3232_v35 }
 0x312   : > { %3399 = vst [vmem:[%s6488_s28 + $0x40] sm:$0xff] %v3711_v47  ;;  %3400 = vst [vmem:[%s6488_s28 + $0x48] sm:$0xff] %v3712_v52  ;;  %v3713_v41 = vpack.c.bf16 %v3284_v7, %v3283_v46  ;;  %v3714_v58 = vpack.c.bf16 %v3286_v56, %v3285_v38  ;;  %v2079_v34 = vpop.f32.mrb[252].mxu0  ;;  %v2752_v24 = vpop.f32.mrb[252].mxu1 }
 0x313   : > { %v3233_v13 = vmax.f32 %v6425_v12, %v2079_v34  ;;  %v3235_v30 = vmax.f32 %v6430_v36, %v2752_v24  ;;  %v2081_v62 = vpop.f32.mrb[253].mxu0  ;;  %v2754_v33 = vpop.f32.mrb[253].mxu1 }
 0x314   : > { %3401 = vst [vmem:[%s6488_s28 + $0x50] sm:$0xff] %v3713_v41  ;;  %3402 = vst [vmem:[%s6488_s28 + $0x58] sm:$0xff] %v3714_v58  ;;  %v3234_v28 = vmax.f32 %v6435_v1, %v2081_v62  ;;  %v3236_v18 = vmax.f32 %v6440_v54, %v2754_v33  ;;  %v2083_v48 = vpop.f32.mrb[254].mxu0  ;;  %v2756_v55 = vpop.f32.mrb[254].mxu1 }
 0x315   : > { %v3287_v4 = vadd.f32 %v6465_v44, %v3233_v13  ;;  %v3289_v6 = vadd.f32 %v6467_v11, %v3235_v30  ;;  %v3237_v12 = vmax.f32 %v6445_v50, %v2083_v48  ;;  %v3239_v36 = vmax.f32 %v6450_v45, %v2756_v55  ;;  %v2085_v8 = vpop.f32.mrb[255].mxu0  ;;  %v2758_v21 = vpop.f32.mrb[255].mxu1 }
 0x316   : > { %v3288_v1 = vadd.f32 %v6469_v5, %v3234_v28  ;;  %v3290_v54 = vadd.f32 %v6471_v2, %v3236_v18  ;;  %v3238_v43 = vmax.f32 %v6455_v39, %v2085_v8  ;;  %v3240_v49 = vmax.f32 %v6460_v32, %v2758_v21 }
 0x317   : > { %v3291_v0 = vadd.f32 %v6465_v44, %v3237_v12  ;;  %v3293_v10 = vadd.f32 %v6467_v11, %v3239_v36 }
 0x318   : > { %v3715_v16 = vpack.c.bf16 %v3288_v1, %v3287_v4  ;;  %v3716_v50 = vpack.c.bf16 %v3290_v54, %v3289_v6  ;;  %v3292_v45 = vadd.f32 %v6469_v5, %v3238_v43  ;;  %v3294_v53 = vadd.f32 %v6471_v2, %v3240_v49 }
 0x31a   : > { %3403 = vst [vmem:[%s6488_s28 + $0x60] sm:$0xff] %v3715_v16  ;;  %3404 = vst [vmem:[%s6488_s28 + $0x68] sm:$0xff] %v3716_v50  ;;  %v3717_v51 = vpack.c.bf16 %v3292_v45, %v3291_v0  ;;  %v3718_v26 = vpack.c.bf16 %v3294_v53, %v3293_v10 }
 0x31c   : > { %3405 = vst [vmem:[%s6488_s28 + $0x70] sm:$0xff] %v3717_v51  ;;  %3406 = vst [vmem:[%s6488_s28 + $0x78] sm:$0xff] %v3718_v26 }
 0x31d PF: > { %p10_p9 = scmp.ge.s32.totalorder %s3882_s16, 4   ;;  %s7075_s12 = smov %s3838_s13 }
 0x31e   : > { %s7076_s13 = smov %s3891_s19  ;;  %s7077_s14 = smov %s3882_s16 }
 0x31f   :  { %12 = sbr.rel (!%p10_p9) target bundleno = 2 (0x2), region = 108 }

// kernel: local_content_extractor.5
= control target key start
LH: loop header
LB: loop body
LE: loop exit
PB: predicated region body
PF: predicated region fallthrough
CT: control target
= control target key end

     0   :  { %v1254_v3 = vmov 0.0|0.0   ;;  %v1255_v4 = vmov 0.0   ;;  %vm1256_vm0 = vmmov 0   ;;  %s1668_s1 = inlined_call_operand.vmem [shape: f32[128,384], index: 1, kind: input, shape index: {}]   ;;  %s1669_s2 = inlined_call_operand.vmem [shape: f32[1,384], index: 2, kind: input, shape index: {}]   ;;  %s1670_s0 = inlined_call_operand.vmem [shape: f32[4,2,384], index: 0, kind: input, shape index: {}]   ;;  %s1671_s3 = inlined_call_operand.vmem [shape: f32[4,2,128], index: 3, kind: output, shape index: {}]  }
   0x1   :  { %v15_v0 = vld [vmem:[%s1668_s1 + $0x8] sm:$0xff]  ;;  %v18_v1 = vld [vmem:[%s1668_s1 + $0x20] sm:$0xff]  ;;  %1019 = vmatprep.subr.bf16.mxu1 %v1254_v3  ;;  %144 = vmatprep.mubr.f32.mxu0 %v1255_v4  ;;  %v17_v6 = vld [vmem:[%s1668_s1 + $0x18] sm:$0xff] }
   0x2   :  { %v14_v2 = vld [vmem:[%s1668_s1] sm:$0xff]  ;;  %v1288_v5 = vpack.c.bf16 %v18_v1, %v15_v0  ;;  %v21_v7 = vld [vmem:[%s1668_s1 + $0x38] sm:$0xff]  ;;  %v24_v8 = vld [vmem:[%s1668_s1 + $0x50] sm:$0xff]  ;;  %879 = vmatprep.mubr.msk.f32.mxu1 %vm1256_vm0, %v1255_v4 }
   0x3   :  { %v1301_v9 = vpack.c.bf16 %v17_v6, %v14_v2  ;;  %v1303_v10 = vpack.c.bf16 %v24_v8, %v21_v7  ;;  %v20_v11 = vld [vmem:[%s1668_s1 + $0x30] sm:$0xff]  ;;  %v23_v12 = vld [vmem:[%s1668_s1 + $0x48] sm:$0xff]  ;;  %v30_v14 = vld [vmem:[%s1668_s1 + $0x80] sm:$0xff] }
   0x4   :  { %v27_v13 = vld [vmem:[%s1668_s1 + $0x68] sm:$0xff]  ;;  %988 = vmatprep.subr.bf16.mxu0 %v1288_v5  ;;  %v1319_v15 = vpack.c.bf16 %v23_v12, %v20_v11  ;;  %v26_v17 = vld [vmem:[%s1668_s1 + $0x60] sm:$0xff]  ;;  %v29_v18 = vld [vmem:[%s1668_s1 + $0x78] sm:$0xff] }
   0x5   :  { %990 = vmatpush1.bf16.msra.mxu0 %v1301_v9  ;;  %v1322_v16 = vpack.c.bf16 %v30_v14, %v27_v13  ;;  %v33_v19 = vld [vmem:[%s1668_s1 + $0x98] sm:$0xff]  ;;  %v36_v20 = vld [vmem:[%s1668_s1 + $0xb0] sm:$0xff]  ;;  %v1337_v21 = vpack.c.bf16 %v29_v18, %v26_v17  ;;  %v35_v24 = vld [vmem:[%s1668_s1 + $0xa8] sm:$0xff]  ;;  %v65_v17 = vlaneseq }
   0x6   :  { %992 = vmatprep.subr.bf16.mxu0 %v1303_v10  ;;  %v1340_v22 = vpack.c.bf16 %v36_v20, %v33_v19  ;;  %v32_v23 = vld [vmem:[%s1668_s1 + $0x90] sm:$0xff]  ;;  %v39_v25 = vld [vmem:[%s1668_s1 + $0xc8] sm:$0xff]  ;;  %v42_v26 = vld [vmem:[%s1668_s1 + $0xe0] sm:$0xff] }
   0x7   :  { %v16_v27 = vld [vmem:[%s1668_s1 + $0x10] sm:$0xff]  ;;  %v19_v28 = vld [vmem:[%s1668_s1 + $0x28] sm:$0xff]  ;;  %v22_v30 = vld [vmem:[%s1668_s1 + $0x40] sm:$0xff]  ;;  %v1369_v32 = vpack.c.bf16 %v35_v24, %v32_v23  ;;  %v1372_v33 = vpack.c.bf16 %v42_v26, %v39_v25  ;;  %v66_v18 = vshrl.u32 %v65_v17, 7 }
   0x8   :  { %v1360_v29 = vpack.c.bf16 %v19_v28, %v16_v27  ;;  %v25_v31 = vld [vmem:[%s1668_s1 + $0x58] sm:$0xff]  ;;  %v38_v34 = vld [vmem:[%s1668_s1 + $0xc0] sm:$0xff]  ;;  %v48_v38 = vld [vmem:[%s1668_s1 + $0x110] sm:$0xff] }
   0x9   :  { %994 = vmatpush1.bf16.msra.mxu0 %v1319_v15  ;;  %v41_v35 = vld [vmem:[%s1668_s1 + $0xd8] sm:$0xff]  ;;  %v1384_v37 = vpack.c.bf16 %v25_v31, %v22_v30  ;;  %v28_v39 = vld [vmem:[%s1668_s1 + $0x70] sm:$0xff]  ;;  %v31_v40 = vld [vmem:[%s1668_s1 + $0x88] sm:$0xff]  ;;  %v67_v19 = vsub.s32 0, %v66_v18  ;;  %v71_v23 = vsub.s32 1, %v66_v18 }
   0xa   :  { %996 = vmatprep.subr.bf16.mxu0 %v1322_v16  ;;  %v45_v36 = vld [vmem:[%s1668_s1 + $0xf8] sm:$0xff]  ;;  %1021 = vmatpush3.bf16.msra.mxu1 %v1360_v29  ;;  %v1397_v41 = vpack.c.bf16 %v41_v35, %v38_v34  ;;  %v44_v43 = vld [vmem:[%s1668_s1 + $0xf0] sm:$0xff]  ;;  %v47_v44 = vld [vmem:[%s1668_s1 + $0x108] sm:$0xff]  ;;  %v1412_v46 = vpack.c.bf16 %v31_v40, %v28_v39 }
   0xb   :  { %1022 = vmatprep.subr.bf16.mxu1 %v1254_v3  ;;  %v1400_v42 = vpack.c.bf16 %v48_v38, %v45_v36  ;;  %v51_v45 = vld [vmem:[%s1668_s1 + $0x128] sm:$0xff]  ;;  %v54_v47 = vld [vmem:[%s1668_s1 + $0x140] sm:$0xff]  ;;  %v37_v49 = vld [vmem:[%s1668_s1 + $0xb8] sm:$0xff]  ;;  %v1425_v50 = vpack.c.bf16 %v47_v44, %v44_v43 }
   0xc   :  { %v34_v48 = vld [vmem:[%s1668_s1 + $0xa0] sm:$0xff]  ;;  %v1428_v51 = vpack.c.bf16 %v54_v47, %v51_v45  ;;  %v53_v53 = vld [vmem:[%s1668_s1 + $0x138] sm:$0xff]  ;;  %v60_v56 = vld [vmem:[%s1668_s1 + $0x170] sm:$0xff]  ;;  %v75_v47 = vsub.s32 2, %v66_v18 }
   0xd   :  { %998 = vmatpush1.bf16.msra.mxu0 %v1337_v21  ;;  %v50_v52 = vld [vmem:[%s1668_s1 + $0x120] sm:$0xff]  ;;  %v57_v54 = vld [vmem:[%s1668_s1 + $0x158] sm:$0xff]  ;;  %v1440_v55 = vpack.c.bf16 %v37_v49, %v34_v48  ;;  %v40_v57 = vld [vmem:[%s1668_s1 + $0xd0] sm:$0xff] }
   0xe   :  { %1000 = vmatprep.subr.bf16.mxu0 %v1340_v22  ;;  %1024 = vmatpush3.bf16.msra.mxu1 %v1384_v37  ;;  %v43_v58 = vld [vmem:[%s1668_s1 + $0xe8] sm:$0xff]  ;;  %v1453_v59 = vpack.c.bf16 %v53_v53, %v50_v52  ;;  %v1456_v60 = vpack.c.bf16 %v60_v56, %v57_v54  ;;  %v56_v61 = vld [vmem:[%s1668_s1 + $0x150] sm:$0xff]  ;;  %v46_v0 = vld [vmem:[%s1668_s1 + $0x100] sm:$0xff] }
   0xf   :  { %1025 = vmatprep.subr.bf16.mxu1 %v1254_v3  ;;  %v59_v62 = vld [vmem:[%s1668_s1 + $0x168] sm:$0xff]  ;;  %v1465_v63 = vpack.c.bf16 %v43_v58, %v40_v57  ;;  %v49_v1 = vld [vmem:[%s1668_s1 + $0x118] sm:$0xff]  ;;  %v52_v7 = vld [vmem:[%s1668_s1 + $0x130] sm:$0xff] }
  0x10   :  { %v1475_v2 = vpack.c.bf16 %v59_v62, %v56_v61  ;;  %v1479_v6 = vpack.c.bf16 %v49_v1, %v46_v0  ;;  %v55_v8 = vld [vmem:[%s1668_s1 + $0x148] sm:$0xff]  ;;  %v58_v12 = vld [vmem:[%s1668_s1 + $0x160] sm:$0xff]  ;;  %v61_v13 = vld [vmem:[%s1668_s1 + $0x178] sm:$0xff] }
  0x11   :  { %1002 = vmatpush1.bf16.msra.mxu0 %v1369_v32  ;;  %v1490_v11 = vpack.c.bf16 %v55_v8, %v52_v7  ;;  %v1504_v14 = vpack.c.bf16 %v61_v13, %v58_v12  ;;  %v62_v20 = vld [vmem:[%s1669_s2] sm:$0x7]  ;;  %v767_v12 = vld [vmem:[%s1670_s0 + $0x6] sm:$0x3f] }
  0x12   :  { %1004 = vmatprep.subr.bf16.mxu0 %v1372_v33  ;;  %1027 = vmatpush3.bf16.msra.mxu1 %v1412_v46  ;;  %v1546_v24 = vrot.slane %v62_v20, %v67_v19  ;;  %v1548_v25 = vrot.slane %v62_v20, %v71_v23  ;;  %v63_v26 = vld [vmem:[%s1670_s0] sm:$0x3f]  ;;  %v1555_v48 = vrot.slane %v62_v20, %v75_v47 }
  0x13   :  { %1028 = vmatprep.subr.bf16.mxu1 %v1254_v3  ;;  %v229_v34 = vrot.slane %v63_v26, 2  ;;  %v239_v54 = vrot.slane %v63_v26, 4 }
  0x15   :  { %1006 = vmatpush1.bf16.msra.mxu0 %v1397_v41 }
  0x16   :  { %1008 = vmatprep.subr.bf16.mxu0 %v1400_v42  ;;  %1030 = vmatpush3.bf16.msra.mxu1 %v1440_v55 }
  0x17   :  { %1031 = vmatprep.subr.bf16.mxu1 %v1254_v3 }
  0x19   :  { %1010 = vmatpush1.bf16.msra.mxu0 %v1425_v50 }
  0x1a   :  { %1012 = vmatprep.subr.bf16.mxu0 %v1428_v51  ;;  %1033 = vmatpush3.bf16.msra.mxu1 %v1465_v63 }
  0x1b   :  { %1034 = vmatprep.subr.bf16.mxu1 %v1254_v3 }
  0x1d   :  { %1014 = vmatpush1.bf16.msra.mxu0 %v1453_v59 }
  0x1e   :  { %1016 = vmatprep.subr.bf16.mxu0 %v1456_v60  ;;  %1036 = vmatpush3.bf16.msra.mxu1 %v1479_v6 }
  0x1f   :  { %1037 = vmatprep.subr.bf16.mxu1 %v1254_v3 }
  0x21   :  { %1018 = vmatpush1.bf16.msra.mxu0 %v1475_v2 }
  0x22   :  { %1044 = vmatprep.subr.bf16.mxu0 %v1288_v5  ;;  %1039 = vmatpush3.bf16.msra.mxu1 %v1490_v11 }
  0x23   :  { %1040 = vmatprep.subr.bf16.mxu1 %v1254_v3 }
  0x24   :  { %145 = vmatmul.mubr.f32.vlgmr.msra.gmra.mrb[0].mxu0 %v1255_v4 }
  0x25   :  { %1046 = vmatpush1.bf16.msra.mxu0 %v1301_v9  ;;  %314 = vmatprep.mubr.f32.mxu0 %v1255_v4 }
  0x26   :  { %1048 = vmatprep.subr.bf16.mxu0 %v1303_v10  ;;  %1042 = vmatpush3.bf16.msra.mxu1 %v1504_v14 }
  0x27   :  { %1075 = vmatprep.subr.bf16.mxu1 %v1254_v3 }
  0x29   :  { %1050 = vmatpush1.bf16.msra.mxu0 %v1319_v15  ;;  %880 = vmatmul.mubr.f32.vlgmr.msra.gmra.mrb[0].mxu1 %v1255_v4 }
  0x2a   :  { %1052 = vmatprep.subr.bf16.mxu0 %v1322_v16  ;;  %1077 = vmatpush3.bf16.msra.mxu1 %v1360_v29 }
  0x2b   :  { %1078 = vmatprep.subr.bf16.mxu1 %v1254_v3  ;;  %914 = vmatprep.mubr.msk.f32.mxu1 %vm1256_vm0, %v1255_v4 }
  0x2d   :  { %1054 = vmatpush1.bf16.msra.mxu0 %v1337_v21 }
  0x2e   :  { %1056 = vmatprep.subr.bf16.mxu0 %v1340_v22  ;;  %1080 = vmatpush3.bf16.msra.mxu1 %v1384_v37 }
  0x2f   :  { %1081 = vmatprep.subr.bf16.mxu1 %v1254_v3 }
  0x31   :  { %1058 = vmatpush1.bf16.msra.mxu0 %v1369_v32 }
  0x32   :  { %1060 = vmatprep.subr.bf16.mxu0 %v1372_v33  ;;  %1083 = vmatpush3.bf16.msra.mxu1 %v1412_v46 }
  0x33   :  { %1084 = vmatprep.subr.bf16.mxu1 %v1254_v3 }
  0x35   :  { %1062 = vmatpush1.bf16.msra.mxu0 %v1397_v41 }
  0x36   :  { %1064 = vmatprep.subr.bf16.mxu0 %v1400_v42  ;;  %1086 = vmatpush3.bf16.msra.mxu1 %v1440_v55 }
  0x37   :  { %1087 = vmatprep.subr.bf16.mxu1 %v1254_v3 }
  0x39   :  { %1066 = vmatpush1.bf16.msra.mxu0 %v1425_v50 }
  0x3a   :  { %1068 = vmatprep.subr.bf16.mxu0 %v1428_v51  ;;  %1089 = vmatpush3.bf16.msra.mxu1 %v1465_v63 }
  0x3b   :  { %1090 = vmatprep.subr.bf16.mxu1 %v1254_v3 }
  0x3d   :  { %1070 = vmatpush1.bf16.msra.mxu0 %v1453_v59 }
  0x3e   :  { %1072 = vmatprep.subr.bf16.mxu0 %v1456_v60  ;;  %1092 = vmatpush3.bf16.msra.mxu1 %v1479_v6 }
  0x3f   :  { %1093 = vmatprep.subr.bf16.mxu1 %v1254_v3 }
  0x41   :  { %1074 = vmatpush1.bf16.msra.mxu0 %v1475_v2 }
  0x42   :  { %1100 = vmatprep.subr.bf16.mxu0 %v1288_v5  ;;  %1095 = vmatpush3.bf16.msra.mxu1 %v1490_v11 }
  0x43   :  { %1096 = vmatprep.subr.bf16.mxu1 %v1254_v3 }
  0x46   :  { %1098 = vmatpush3.bf16.msra.mxu1 %v1504_v14 }
  0x47   :  { %1131 = vmatprep.subr.bf16.mxu1 %v1254_v3 }
  0xf7   :  { %v146_v27 = vpop.f32.mrb[0].mxu0 }
  0xf8   :  { %v147_v28 = vadd.f32 %v146_v27, %v1546_v24  ;;  %v148_v30 = vpop.f32.mrb[1].mxu0 }
  0xf9   :  { %v149_v31 = vadd.f32 %v148_v30, %v1548_v25 }
  0xfa   :  { %v221_v35 = vadd.f32 %v147_v28, %v63_v26  ;;  %v399_v26 = vrot.slane %v767_v12, 2 }
  0xfb   :  { %v231_v38 = vadd.f32 %v229_v34, %v149_v31 }
  0xfc   :  { %v765_v36 = vmul.f32 -1.442695, %v221_v35  ;;  %v217_v39 = vpop.f32.mrb[0].mxu1 }
  0xfd   :  { %v766_v40 = vmul.f32 -1.442695, %v231_v38  ;;  %v881_v43 = vpop.f32.mrb[1].mxu1  ;;  %v218_v53 = vadd.f32 %v217_v39, %v1555_v48  ;;  %v409_v39 = vrot.slane %v767_v12, 4 }
  0xfe   :  { %1214 = vpow2.f32 %v765_v36 }
  0xff   :  { %1216 = vpow2.f32 %v766_v40 }
 0x108   :  { %v1215_v44 = vpop.eup %1214 }
 0x109   :  { %v225_v45 = vadd.f32 1.0, %v1215_v44  ;;  %v1217_v49 = vpop.eup %1216 }
 0x10a   :  { %v235_v52 = vadd.f32 1.0, %v1217_v49 }
 0x10b   :  { %1218 = vrcp.f32 %v225_v45 }
 0x10c   :  { %1220 = vrcp.f32 %v235_v52 }
 0x115   :  { %v1219_v56 = vpop.eup %1218 }
 0x116   :  { %v238_v57 = vmul.f32 %v1219_v56, %v218_v53  ;;  %v1221_v61 = vpop.eup %1220 }
 0x117   :  { %v243_v62 = vsub.f32 1.0, %v1221_v61  ;;  %v245_v7 = vmul.f32 0.0, %v1221_v61 }
 0x118   :  { %v241_v58 = vadd.f32 %v239_v54, %v238_v57 }
 0x11a   :  { %1222 = vtanh.f32 %v241_v58  ;;  %v775_v58 = vld [vmem:[%s1670_s0 + $0x12] sm:$0x3f] }
 0x124   :  { %v1223_v0 = vpop.eup %1222 }
 0x125   :  { %v244_v1 = vmul.f32 %v1223_v0, %v243_v62 }
 0x127   :  { %v1558_v8 = vadd.f32 %v245_v7, %v244_v1 }
 0x129   :  { %247 = vst [vmem:[%s1671_s3] sm:$0x3] %v1558_v8  ;;  %315 = vmatmul.mubr.f32.vlgmr.msra.gmra.mrb[2].mxu0 %v1558_v8  ;;  %915 = vmatmul.mubr.f32.vlgmr.msra.gmra.mrb[2].mxu1 %v1558_v8 }
 0x12a   :  { %1102 = vmatpush1.bf16.msra.mxu0 %v1301_v9  ;;  %1133 = vmatpush3.bf16.msra.mxu1 %v1360_v29 }
 0x12b   :  { %1104 = vmatprep.subr.bf16.mxu0 %v1303_v10  ;;  %1134 = vmatprep.subr.bf16.mxu1 %v1254_v3 }
 0x12c   :  { %485 = vmatprep.mubr.f32.mxu0 %v1255_v4  ;;  %949 = vmatprep.mubr.msk.f32.mxu1 %vm1256_vm0, %v1255_v4 }
 0x12e   :  { %1106 = vmatpush1.bf16.msra.mxu0 %v1319_v15  ;;  %1136 = vmatpush3.bf16.msra.mxu1 %v1384_v37 }
 0x12f   :  { %1108 = vmatprep.subr.bf16.mxu0 %v1322_v16  ;;  %1137 = vmatprep.subr.bf16.mxu1 %v1254_v3 }
 0x132   :  { %1110 = vmatpush1.bf16.msra.mxu0 %v1337_v21  ;;  %1139 = vmatpush3.bf16.msra.mxu1 %v1412_v46 }
 0x133   :  { %1112 = vmatprep.subr.bf16.mxu0 %v1340_v22  ;;  %1140 = vmatprep.subr.bf16.mxu1 %v1254_v3 }
 0x136   :  { %1114 = vmatpush1.bf16.msra.mxu0 %v1369_v32  ;;  %1142 = vmatpush3.bf16.msra.mxu1 %v1440_v55 }
 0x137   :  { %1116 = vmatprep.subr.bf16.mxu0 %v1372_v33  ;;  %1143 = vmatprep.subr.bf16.mxu1 %v1254_v3 }
 0x13a   :  { %1118 = vmatpush1.bf16.msra.mxu0 %v1397_v41  ;;  %1145 = vmatpush3.bf16.msra.mxu1 %v1465_v63 }
 0x13b   :  { %1120 = vmatprep.subr.bf16.mxu0 %v1400_v42  ;;  %1146 = vmatprep.subr.bf16.mxu1 %v1254_v3 }
 0x13e   :  { %1122 = vmatpush1.bf16.msra.mxu0 %v1425_v50  ;;  %1148 = vmatpush3.bf16.msra.mxu1 %v1479_v6 }
 0x13f   :  { %1124 = vmatprep.subr.bf16.mxu0 %v1428_v51  ;;  %1149 = vmatprep.subr.bf16.mxu1 %v1254_v3 }
 0x142   :  { %1126 = vmatpush1.bf16.msra.mxu0 %v1453_v59  ;;  %1151 = vmatpush3.bf16.msra.mxu1 %v1490_v11 }
 0x143   :  { %1128 = vmatprep.subr.bf16.mxu0 %v1456_v60  ;;  %1152 = vmatprep.subr.bf16.mxu1 %v1254_v3 }
 0x146   :  { %1130 = vmatpush1.bf16.msra.mxu0 %v1475_v2  ;;  %1154 = vmatpush3.bf16.msra.mxu1 %v1504_v14 }
 0x147   :  { %1156 = vmatprep.subr.bf16.mxu0 %v1288_v5  ;;  %1187 = vmatprep.subr.bf16.mxu1 %v1254_v3 }
 0x1fc   :  { %v316_v13 = vpop.f32.mrb[2].mxu0  ;;  %v387_v17 = vpop.f32.mrb[2].mxu1 }
 0x1fd   :  { %v317_v18 = vadd.f32 %v316_v13, %v1546_v24  ;;  %v318_v19 = vpop.f32.mrb[3].mxu0  ;;  %v916_v20 = vpop.f32.mrb[3].mxu1  ;;  %v388_v38 = vadd.f32 %v387_v17, %v1555_v48 }
 0x1fe   :  { %v319_v23 = vadd.f32 %v318_v19, %v1548_v25 }
 0x1ff   :  { %v391_v27 = vadd.f32 %v767_v12, %v317_v18  ;;  %v741_v12 = vrot.slane %v775_v58, 2 }
 0x200   :  { %v401_v30 = vadd.f32 %v399_v26, %v319_v23 }
 0x201   :  { %v768_v28 = vmul.f32 -1.442695, %v391_v27 }
 0x202   :  { %v769_v5 = vmul.f32 -1.442695, %v401_v30  ;;  %v751_v30 = vrot.slane %v775_v58, 4 }
 0x203   :  { %1224 = vpow2.f32 %v768_v28 }
 0x204   :  { %1226 = vpow2.f32 %v769_v5 }
 0x20d   :  { %v1225_v31 = vpop.eup %1224 }
 0x20e   :  { %v395_v34 = vadd.f32 1.0, %v1225_v31  ;;  %v1227_v35 = vpop.eup %1226 }
 0x20f   :  { %v405_v36 = vadd.f32 1.0, %v1227_v35 }
 0x210   :  { %1228 = vrcp.f32 %v395_v34 }
 0x211   :  { %1230 = vrcp.f32 %v405_v36 }
 0x21a   :  { %v1229_v40 = vpop.eup %1228 }
 0x21b   :  { %v408_v43 = vmul.f32 %v1229_v40, %v388_v38  ;;  %v1231_v45 = vpop.eup %1230 }
 0x21c   :  { %v413_v47 = vsub.f32 1.0, %v1231_v45  ;;  %v415_v53 = vmul.f32 %v1231_v45, %v1558_v8 }
 0x21d   :  { %v411_v44 = vadd.f32 %v409_v39, %v408_v43 }
 0x21f   :  { %1232 = vtanh.f32 %v411_v44 }
 0x229   :  { %v1233_v49 = vpop.eup %1232 }
 0x22a   :  { %v414_v52 = vmul.f32 %v1233_v49, %v413_v47 }
 0x22c   :  { %v1608_v54 = vadd.f32 %v415_v53, %v414_v52 }
 0x22e   :  { %770 = vst [vmem:[%s1671_s3 + $0x2] sm:$0x3] %v1608_v54  ;;  %486 = vmatmul.mubr.f32.vlgmr.msra.gmra.mrb[4].mxu0 %v1608_v54  ;;  %950 = vmatmul.mubr.f32.vlgmr.msra.gmra.mrb[4].mxu1 %v1608_v54 }
 0x22f   :  { %1158 = vmatpush1.bf16.msra.mxu0 %v1301_v9  ;;  %1189 = vmatpush3.bf16.msra.mxu1 %v1360_v29 }
 0x230   :  { %1160 = vmatprep.subr.bf16.mxu0 %v1303_v10  ;;  %1190 = vmatprep.subr.bf16.mxu1 %v1254_v3 }
 0x231   :  { %656 = vmatprep.mubr.f32.mxu0 %v1255_v4  ;;  %984 = vmatprep.mubr.msk.f32.mxu1 %vm1256_vm0, %v1255_v4  ;;  %v771_v4 = vld [vmem:[%s1670_s0 + $0xc] sm:$0x3f] }
 0x232   :  { %v570_v29 = vrot.slane %v771_v4, 2 }
 0x233   :  { %1162 = vmatpush1.bf16.msra.mxu0 %v1319_v15  ;;  %1192 = vmatpush3.bf16.msra.mxu1 %v1384_v37 }
 0x234   :  { %1164 = vmatprep.subr.bf16.mxu0 %v1322_v16  ;;  %1193 = vmatprep.subr.bf16.mxu1 %v1254_v3 }
 0x237   :  { %1166 = vmatpush1.bf16.msra.mxu0 %v1337_v21  ;;  %1195 = vmatpush3.bf16.msra.mxu1 %v1412_v46 }
 0x238   :  { %1168 = vmatprep.subr.bf16.mxu0 %v1340_v22  ;;  %1196 = vmatprep.subr.bf16.mxu1 %v1254_v3 }
 0x23b   :  { %1170 = vmatpush1.bf16.msra.mxu0 %v1369_v32  ;;  %1198 = vmatpush3.bf16.msra.mxu1 %v1440_v55  ;;  %v580_v55 = vrot.slane %v771_v4, 4 }
 0x23c   :  { %1172 = vmatprep.subr.bf16.mxu0 %v1372_v33  ;;  %1199 = vmatprep.subr.bf16.mxu1 %v1254_v3 }
 0x23f   :  { %1174 = vmatpush1.bf16.msra.mxu0 %v1397_v41  ;;  %1201 = vmatpush3.bf16.msra.mxu1 %v1465_v63 }
 0x240   :  { %1176 = vmatprep.subr.bf16.mxu0 %v1400_v42  ;;  %1202 = vmatprep.subr.bf16.mxu1 %v1254_v3 }
 0x243   :  { %1178 = vmatpush1.bf16.msra.mxu0 %v1425_v50  ;;  %1204 = vmatpush3.bf16.msra.mxu1 %v1479_v6 }
 0x244   :  { %1180 = vmatprep.subr.bf16.mxu0 %v1428_v51  ;;  %1205 = vmatprep.subr.bf16.mxu1 %v1254_v3 }
 0x247   :  { %1182 = vmatpush1.bf16.msra.mxu0 %v1453_v59  ;;  %1207 = vmatpush3.bf16.msra.mxu1 %v1490_v11 }
 0x248   :  { %1184 = vmatprep.subr.bf16.mxu0 %v1456_v60  ;;  %1208 = vmatprep.subr.bf16.mxu1 %v1254_v3 }
 0x24b   :  { %1186 = vmatpush1.bf16.msra.mxu0 %v1475_v2  ;;  %1210 = vmatpush3.bf16.msra.mxu1 %v1504_v14 }
 0x301   :  { %v487_v9 = vpop.f32.mrb[4].mxu0  ;;  %v558_v10 = vpop.f32.mrb[4].mxu1 }
 0x302   :  { %v488_v15 = vadd.f32 %v487_v9, %v1546_v24  ;;  %v489_v16 = vpop.f32.mrb[5].mxu0  ;;  %v951_v21 = vpop.f32.mrb[5].mxu1  ;;  %v559_v51 = vadd.f32 %v558_v10, %v1555_v48 }
 0x303   :  { %v490_v22 = vadd.f32 %v489_v16, %v1548_v25 }
 0x304   :  { %v562_v32 = vadd.f32 %v771_v4, %v488_v15 }
 0x305   :  { %v572_v3 = vadd.f32 %v570_v29, %v490_v22 }
 0x306   :  { %v772_v33 = vmul.f32 -1.442695, %v562_v32 }
 0x307   :  { %v773_v37 = vmul.f32 -1.442695, %v572_v3 }
 0x308   :  { %1234 = vpow2.f32 %v772_v33 }
 0x309   :  { %1236 = vpow2.f32 %v773_v37 }
 0x312   :  { %v1235_v41 = vpop.eup %1234 }
 0x313   :  { %v566_v42 = vadd.f32 1.0, %v1235_v41  ;;  %v1237_v46 = vpop.eup %1236 }
 0x314   :  { %v576_v50 = vadd.f32 1.0, %v1237_v46 }
 0x315   :  { %1238 = vrcp.f32 %v566_v42 }
 0x316   :  { %1240 = vrcp.f32 %v576_v50 }
 0x31f   :  { %v1239_v59 = vpop.eup %1238 }
 0x320   :  { %v579_v60 = vmul.f32 %v1239_v59, %v559_v51  ;;  %v1241_v2 = vpop.eup %1240 }
 0x321   :  { %v584_v6 = vsub.f32 1.0, %v1241_v2  ;;  %v586_v56 = vmul.f32 %v1241_v2, %v1608_v54 }
 0x322   :  { %v582_v63 = vadd.f32 %v580_v55, %v579_v60 }
 0x324   :  { %1242 = vtanh.f32 %v582_v63 }
 0x32e   :  { %v1243_v11 = vpop.eup %1242 }
 0x32f   :  { %v585_v14 = vmul.f32 %v1243_v11, %v584_v6 }
 0x331   :  { %v587_v57 = vadd.f32 %v586_v56, %v585_v14 }
 0x333   :  { %774 = vst [vmem:[%s1671_s3 + $0x4] sm:$0x3] %v587_v57  ;;  %657 = vmatmul.mubr.f32.vlgmr.msra.gmra.mrb[6].mxu0 %v587_v57  ;;  %985 = vmatmul.mubr.f32.vlgmr.msra.gmra.mrb[6].mxu1 %v587_v57 }
 0x406   :  { %v658_v61 = vpop.f32.mrb[6].mxu0  ;;  %v729_v62 = vpop.f32.mrb[6].mxu1 }
 0x407   :  { %v659_v0 = vadd.f32 %v658_v61, %v1546_v24  ;;  %v660_v1 = vpop.f32.mrb[7].mxu0  ;;  %v986_v7 = vpop.f32.mrb[7].mxu1  ;;  %v730_v28 = vadd.f32 %v729_v62, %v1555_v48 }
 0x408   :  { %v661_v8 = vadd.f32 %v660_v1, %v1548_v25 }
 0x409   :  { %v733_v13 = vadd.f32 %v775_v58, %v659_v0 }
 0x40a   :  { %v743_v18 = vadd.f32 %v741_v12, %v661_v8 }
 0x40b   :  { %v776_v17 = vmul.f32 -1.442695, %v733_v13 }
 0x40c   :  { %v777_v19 = vmul.f32 -1.442695, %v743_v18 }
 0x40d   :  { %1244 = vpow2.f32 %v776_v17 }
 0x40e   :  { %1246 = vpow2.f32 %v777_v19 }
 0x417   :  { %v1245_v20 = vpop.eup %1244 }
 0x418   :  { %v737_v23 = vadd.f32 1.0, %v1245_v20  ;;  %v1247_v26 = vpop.eup %1246 }
 0x419   :  { %v747_v27 = vadd.f32 1.0, %v1247_v26 }
 0x41a   :  { %1248 = vrcp.f32 %v737_v23 }
 0x41b   :  { %1250 = vrcp.f32 %v747_v27 }
 0x424   :  { %v1249_v24 = vpop.eup %1248 }
 0x425   :  { %v750_v5 = vmul.f32 %v1249_v24, %v730_v28  ;;  %v1251_v25 = vpop.eup %1250 }
 0x426   :  { %v755_v34 = vsub.f32 1.0, %v1251_v25  ;;  %v757_v38 = vmul.f32 %v1251_v25, %v587_v57 }
 0x427   :  { %v753_v31 = vadd.f32 %v751_v30, %v750_v5 }
 0x429   :  { %1252 = vtanh.f32 %v753_v31 }
 0x433   :  { %v1253_v35 = vpop.eup %1252 }
 0x434   :  { %v756_v36 = vmul.f32 %v1253_v35, %v755_v34 }
 0x436   :  { %v758_v39 = vadd.f32 %v757_v38, %v756_v36 }
 0x438   :  { %778 = vst [vmem:[%s1671_s3 + $0x6] sm:$0x3] %v758_v39 }

// kernel: local_content_extractor.4
= control target key start
LH: loop header
LB: loop body
LE: loop exit
PB: predicated region body
PF: predicated region fallthrough
CT: control target
= control target key end

     0   :  { %s7790_s12 = smov 0   ;;  %s8485_s0 = inlined_call_operand.vmem [shape: bf16[8,8192], index: 0, kind: input, shape index: {}]   ;;  %s8486_s1 = inlined_call_operand.vmem [shape: bf16[3,8192,128], index: 1, kind: input, shape index: {}]   ;;  %s8487_s2 = inlined_call_operand.vmem [shape: f32[1,384], index: 2, kind: input, shape index: {}]   ;;  %s8488_s3 = inlined_call_operand.vmem [shape: f32[8,384], index: 3, kind: output, shape index: {}]  }
   0x1 LB: > { %s5886_s13 = sadd.s32 4294967295, %s7768_s12   ;;  %p5890_p0 = scmp.ge.s32.totalorder %s7768_s12, 1  ;;  %s7768_s12 = sphi %s7790_s12, %s13_s12  }
   0x2   : > { %p145_p1 = scmp.lt.s32.totalorder %s7768_s12, 4 }
   0x4   : > { %p146_p2 = pnand %p5890_p0, %p145_p1 }
   0x5   : > { %p171_p3 = scmp.lt.s32.totalorder (!%p146_p2), %s5886_s13, 2  ;;  %v7801_v0 = vld [vmem:[%s8485_s0] sm:$0xff] (!%p146_p2)  ;;  %v7806_v1 = vld [vmem:[%s8485_s0 + $0x8] sm:$0xff] (!%p146_p2)  ;;  %v7852_v33 = vld [vmem:[%s8485_s0 + $0x10] sm:$0xff] (!%p146_p2) }
   0x6   : > { %149 = sbr.rel (%p146_p2) target bundleno = 750 (0x2ee), region = 32  ;;  %v5896_v2 = vcombine.high (!%p146_p2), %v7801_v0, %v7801_v0  ;;  %v5898_v3 = vcombine.high (!%p146_p2), %v7806_v1, %v7806_v1  ;;  %v7858_v35 = vld [vmem:[%s8485_s0 + $0x18] sm:$0xff] (!%p146_p2)  ;;  %v5895_v38 = vcombine.low (!%p146_p2), %v7801_v0, %v7801_v0  ;;  %v5897_v39 = vcombine.low (!%p146_p2), %v7806_v1, %v7806_v1 }
   0x7   : > { %v5900_v42 = vcombine.high (!%p146_p2), %v7852_v33, %v7852_v33  ;;  %v5902_v44 = vcombine.high (!%p146_p2), %v7858_v35, %v7858_v35 }
   0x8   : > { %4575 = vmatprep.mubr.bf16.mxu0 (!%p146_p2), %v5896_v2  ;;  %4615 = vmatprep.mubr.bf16.mxu1 (!%p146_p2), %v5898_v3 }
   0xd   : > { %s8490_s13 = smov (!%p171_p3, %s5886_s13), 2 }
   0xe   : > { %s6473_s18 = sshll.u32 %s8490_s13, 12  ;;  %s178_s24 = scalar_lea.vmem %s8487_s2, %s8490_s13 }
   0xf   : > { %s7818_s21 = scalar_lea.vmem %s8486_s1, %s6473_s18 }
  0x10   : > { %v7186_v4 = vld [vmem:[%s7818_s21 + $0x40] sm:$0xff]   ;;  %v7190_v8 = vld [vmem:[%s7818_s21 + $0x48] sm:$0xff]   ;;  %v7194_v12 = vld [vmem:[%s7818_s21 + $0x50] sm:$0xff]  }
  0x11   : > { %v7187_v5 = vld [vmem:[%s7818_s21 + $0xc0] sm:$0xff]   ;;  %6474 = vmatprep.subr.bf16.mxu0 %v7186_v4  ;;  %v7191_v9 = vld [vmem:[%s7818_s21 + $0xc8] sm:$0xff]   ;;  %v7195_v13 = vld [vmem:[%s7818_s21 + $0xd0] sm:$0xff]  }
  0x12   : > { %v7188_v6 = vld [vmem:[%s7818_s21] sm:$0xff]   ;;  %6496 = vmatprep.subr.bf16.mxu1 %v7187_v5  ;;  %v7192_v10 = vld [vmem:[%s7818_s21 + $0x8] sm:$0xff]   ;;  %v7196_v14 = vld [vmem:[%s7818_s21 + $0x10] sm:$0xff]  }
  0x13   : > { %v7189_v7 = vld [vmem:[%s7818_s21 + $0x80] sm:$0xff]   ;;  %6475 = vmatpush3.bf16.msra.mxu0 %v7188_v6  ;;  %v7193_v11 = vld [vmem:[%s7818_s21 + $0x88] sm:$0xff]   ;;  %v7197_v15 = vld [vmem:[%s7818_s21 + $0x90] sm:$0xff]  }
  0x14   : > { %6497 = vmatpush3.bf16.msra.mxu1 %v7189_v7  ;;  %6476 = vmatprep.subr.bf16.mxu0 %v7190_v8  ;;  %v7198_v16 = vld [vmem:[%s7818_s21 + $0x58] sm:$0xff]   ;;  %v7202_v20 = vld [vmem:[%s7818_s21 + $0x60] sm:$0xff]   ;;  %v7206_v24 = vld [vmem:[%s7818_s21 + $0x68] sm:$0xff]  }
  0x15   : > { %6498 = vmatprep.subr.bf16.mxu1 %v7191_v9  ;;  %v7199_v17 = vld [vmem:[%s7818_s21 + $0xd8] sm:$0xff]   ;;  %v7203_v21 = vld [vmem:[%s7818_s21 + $0xe0] sm:$0xff]   ;;  %v7207_v25 = vld [vmem:[%s7818_s21 + $0xe8] sm:$0xff]  }
  0x16   : > { %v7200_v18 = vld [vmem:[%s7818_s21 + $0x18] sm:$0xff]   ;;  %v7204_v22 = vld [vmem:[%s7818_s21 + $0x20] sm:$0xff]   ;;  %v7208_v26 = vld [vmem:[%s7818_s21 + $0x28] sm:$0xff]  }
  0x17   : > { %6477 = vmatpush3.bf16.msra.mxu0 %v7192_v10  ;;  %v7201_v19 = vld [vmem:[%s7818_s21 + $0x98] sm:$0xff]   ;;  %v7205_v23 = vld [vmem:[%s7818_s21 + $0xa0] sm:$0xff]   ;;  %v7209_v27 = vld [vmem:[%s7818_s21 + $0xa8] sm:$0xff]  }
  0x18   : > { %6499 = vmatpush3.bf16.msra.mxu1 %v7193_v11  ;;  %6478 = vmatprep.subr.bf16.mxu0 %v7194_v12  ;;  %v7210_v28 = vld [vmem:[%s7818_s21 + $0x70] sm:$0xff]   ;;  %v7214_v32 = vld [vmem:[%s7818_s21 + $0x78] sm:$0xff]   ;;  %v7222_v40 = vld [vmem:[%s7818_s21 + $0x140] sm:$0xff]   ;;  %v5899_v12 = vcombine.low %v7852_v33, %v7852_v33 }
  0x19   : > { %6500 = vmatprep.subr.bf16.mxu1 %v7195_v13  ;;  %v7211_v29 = vld [vmem:[%s7818_s21 + $0xf0] sm:$0xff]   ;;  %v7215_v34 = vld [vmem:[%s7818_s21 + $0xf8] sm:$0xff]   ;;  %v7223_v41 = vld [vmem:[%s7818_s21 + $0x1c0] sm:$0xff]   ;;  %v5901_v13 = vcombine.low %v7858_v35, %v7858_v35 }
  0x1a   : > { %v7212_v30 = vld [vmem:[%s7818_s21 + $0x30] sm:$0xff]   ;;  %v7216_v36 = vld [vmem:[%s7818_s21 + $0x38] sm:$0xff]   ;;  %v7224_v43 = vld [vmem:[%s7818_s21 + $0x100] sm:$0xff]  }
  0x1b   : > { %6479 = vmatpush3.bf16.msra.mxu0 %v7196_v14  ;;  %v7213_v31 = vld [vmem:[%s7818_s21 + $0xb0] sm:$0xff]   ;;  %v7217_v37 = vld [vmem:[%s7818_s21 + $0xb8] sm:$0xff]   ;;  %v7225_v45 = vld [vmem:[%s7818_s21 + $0x180] sm:$0xff]  }
  0x1c   : > { %6501 = vmatpush3.bf16.msra.mxu1 %v7197_v15  ;;  %6480 = vmatprep.subr.bf16.mxu0 %v7198_v16  ;;  %v7226_v46 = vld [vmem:[%s7818_s21 + $0x148] sm:$0xff]   ;;  %v7230_v50 = vld [vmem:[%s7818_s21 + $0x150] sm:$0xff]   ;;  %v7234_v54 = vld [vmem:[%s7818_s21 + $0x158] sm:$0xff]  }
  0x1d   : > { %6502 = vmatprep.subr.bf16.mxu1 %v7199_v17  ;;  %v7227_v47 = vld [vmem:[%s7818_s21 + $0x1c8] sm:$0xff]   ;;  %v7231_v51 = vld [vmem:[%s7818_s21 + $0x1d0] sm:$0xff]   ;;  %v7235_v55 = vld [vmem:[%s7818_s21 + $0x1d8] sm:$0xff]  }
  0x1e   : > { %v7228_v48 = vld [vmem:[%s7818_s21 + $0x108] sm:$0xff]   ;;  %v7232_v52 = vld [vmem:[%s7818_s21 + $0x110] sm:$0xff]   ;;  %v7236_v56 = vld [vmem:[%s7818_s21 + $0x118] sm:$0xff]  }
  0x1f   : > { %6481 = vmatpush3.bf16.msra.mxu0 %v7200_v18  ;;  %v7229_v49 = vld [vmem:[%s7818_s21 + $0x188] sm:$0xff]   ;;  %v7233_v53 = vld [vmem:[%s7818_s21 + $0x190] sm:$0xff]   ;;  %v7237_v57 = vld [vmem:[%s7818_s21 + $0x198] sm:$0xff]  }
  0x20   : > { %6503 = vmatpush3.bf16.msra.mxu1 %v7201_v19  ;;  %6482 = vmatprep.subr.bf16.mxu0 %v7202_v20  ;;  %v7238_v58 = vld [vmem:[%s7818_s21 + $0x160] sm:$0xff]   ;;  %v7242_v62 = vld [vmem:[%s7818_s21 + $0x168] sm:$0xff]   ;;  %v7246_v2 = vld [vmem:[%s7818_s21 + $0x170] sm:$0xff]  }
  0x21   : > { %6504 = vmatprep.subr.bf16.mxu1 %v7203_v21  ;;  %v7239_v59 = vld [vmem:[%s7818_s21 + $0x1e0] sm:$0xff]   ;;  %v7243_v63 = vld [vmem:[%s7818_s21 + $0x1e8] sm:$0xff]   ;;  %v7247_v3 = vld [vmem:[%s7818_s21 + $0x1f0] sm:$0xff]  }
  0x22   : > { %v7240_v60 = vld [vmem:[%s7818_s21 + $0x120] sm:$0xff]   ;;  %v7244_v0 = vld [vmem:[%s7818_s21 + $0x128] sm:$0xff]   ;;  %v7248_v4 = vld [vmem:[%s7818_s21 + $0x130] sm:$0xff]  }
  0x23   : > { %6483 = vmatpush3.bf16.msra.mxu0 %v7204_v22  ;;  %v7241_v61 = vld [vmem:[%s7818_s21 + $0x1a0] sm:$0xff]   ;;  %v7245_v1 = vld [vmem:[%s7818_s21 + $0x1a8] sm:$0xff]   ;;  %v7249_v5 = vld [vmem:[%s7818_s21 + $0x1b0] sm:$0xff]  }
  0x24   : > { %6505 = vmatpush3.bf16.msra.mxu1 %v7205_v23  ;;  %6484 = vmatprep.subr.bf16.mxu0 %v7206_v24  ;;  %v7250_v6 = vld [vmem:[%s7818_s21 + $0x178] sm:$0xff]   ;;  %v7902_v7 = vld [vmem:[%s8485_s0 + $0x20] sm:$0xff]  ;;  %v7908_v9 = vld [vmem:[%s8485_s0 + $0x28] sm:$0xff] }
  0x25   : > { %6506 = vmatprep.subr.bf16.mxu1 %v7207_v25  ;;  %v7251_v8 = vld [vmem:[%s7818_s21 + $0x1f8] sm:$0xff]   ;;  %v7258_v14 = vld [vmem:[%s7818_s21 + $0x240] sm:$0xff]   ;;  %v5904_v16 = vcombine.high %v7902_v7, %v7902_v7  ;;  %v5906_v18 = vcombine.high %v7908_v9, %v7908_v9  ;;  %v7262_v20 = vld [vmem:[%s7818_s21 + $0x248] sm:$0xff]  }
  0x26   : > { %v7252_v10 = vld [vmem:[%s7818_s21 + $0x138] sm:$0xff]   ;;  %v7259_v15 = vld [vmem:[%s7818_s21 + $0x2c0] sm:$0xff]   ;;  %v7263_v21 = vld [vmem:[%s7818_s21 + $0x2c8] sm:$0xff]  }
  0x27   : > { %6485 = vmatpush3.bf16.msra.mxu0 %v7208_v26  ;;  %v7253_v11 = vld [vmem:[%s7818_s21 + $0x1b8] sm:$0xff]   ;;  %v7260_v17 = vld [vmem:[%s7818_s21 + $0x200] sm:$0xff]   ;;  %v7264_v22 = vld [vmem:[%s7818_s21 + $0x208] sm:$0xff]  }
  0x28   : > { %6507 = vmatpush3.bf16.msra.mxu1 %v7209_v27  ;;  %6486 = vmatprep.subr.bf16.mxu0 %v7210_v28  ;;  %v7261_v19 = vld [vmem:[%s7818_s21 + $0x280] sm:$0xff]   ;;  %v7265_v23 = vld [vmem:[%s7818_s21 + $0x288] sm:$0xff]   ;;  %v7266_v24 = vld [vmem:[%s7818_s21 + $0x250] sm:$0xff]  }
  0x29   : > { %6508 = vmatprep.subr.bf16.mxu1 %v7211_v29  ;;  %v7267_v25 = vld [vmem:[%s7818_s21 + $0x2d0] sm:$0xff]   ;;  %v7270_v28 = vld [vmem:[%s7818_s21 + $0x258] sm:$0xff]   ;;  %v7275_v33 = vld [vmem:[%s7818_s21 + $0x2e0] sm:$0xff]  }
  0x2a   : > { %v7268_v26 = vld [vmem:[%s7818_s21 + $0x210] sm:$0xff]   ;;  %v7271_v29 = vld [vmem:[%s7818_s21 + $0x2d8] sm:$0xff]   ;;  %v7277_v35 = vld [vmem:[%s7818_s21 + $0x2a0] sm:$0xff]  }
  0x2b   : > { %6487 = vmatpush3.bf16.msra.mxu0 %v7212_v30  ;;  %v7269_v27 = vld [vmem:[%s7818_s21 + $0x290] sm:$0xff]   ;;  %v7272_v30 = vld [vmem:[%s7818_s21 + $0x218] sm:$0xff]  }
  0x2c   : > { %6509 = vmatpush3.bf16.msra.mxu1 %v7213_v31  ;;  %6488 = vmatprep.subr.bf16.mxu0 %v7214_v32  ;;  %v7273_v31 = vld [vmem:[%s7818_s21 + $0x298] sm:$0xff]   ;;  %v7274_v32 = vld [vmem:[%s7818_s21 + $0x260] sm:$0xff]  }
  0x2d   : > { %6510 = vmatprep.subr.bf16.mxu1 %v7215_v34  ;;  %v7276_v34 = vld [vmem:[%s7818_s21 + $0x220] sm:$0xff]  }
  0x2f   : > { %6489 = vmatpush3.bf16.msra.mxu0 %v7216_v36  ;;  %v7278_v36 = vld [vmem:[%s7818_s21 + $0x268] sm:$0xff]  }
  0x30   : > { %6511 = vmatpush3.bf16.msra.mxu1 %v7217_v37  ;;  %6518 = vmatprep.subr.bf16.mxu0 %v7222_v40  ;;  %v7279_v37 = vld [vmem:[%s7818_s21 + $0x2e8] sm:$0xff]   ;;  %v7282_v40 = vld [vmem:[%s7818_s21 + $0x270] sm:$0xff]  }
  0x31   : > { %6540 = vmatprep.subr.bf16.mxu1 %v7223_v41  ;;  %v7283_v41 = vld [vmem:[%s7818_s21 + $0x2f0] sm:$0xff]  }
  0x32   : > { %4576 = vmatmul.mubr.bf16.vlgmr.msra.gmra.mrb[0].mxu0 %v5895_v38  ;;  %v7280_v38 = vld [vmem:[%s7818_s21 + $0x228] sm:$0xff]  }
  0x33   : > { %4616 = vmatmul.mubr.bf16.vlgmr.msra.gmra.mrb[0].mxu1 %v5897_v39  ;;  %6519 = vmatpush3.bf16.msra.mxu0 %v7224_v43  ;;  %v7281_v39 = vld [vmem:[%s7818_s21 + $0x2a8] sm:$0xff]   ;;  %v7285_v43 = vld [vmem:[%s7818_s21 + $0x2b0] sm:$0xff]  }
  0x34   : > { %6541 = vmatpush3.bf16.msra.mxu1 %v7225_v45  ;;  %4655 = vmatprep.mubr.bf16.mxu0 %v5900_v42  ;;  %v7284_v42 = vld [vmem:[%s7818_s21 + $0x230] sm:$0xff]   ;;  %v7287_v45 = vld [vmem:[%s7818_s21 + $0x2f8] sm:$0xff]  }
  0x35   : > { %6520 = vmatprep.subr.bf16.mxu0 %v7226_v46  ;;  %4695 = vmatprep.mubr.bf16.mxu1 %v5902_v44  ;;  %v7286_v44 = vld [vmem:[%s7818_s21 + $0x278] sm:$0xff]  }
  0x36   : > { %6542 = vmatprep.subr.bf16.mxu1 %v7227_v47  ;;  %v7288_v46 = vld [vmem:[%s7818_s21 + $0x238] sm:$0xff]  }
  0x37   : > { %6521 = vmatpush3.bf16.msra.mxu0 %v7228_v48  ;;  %v7289_v47 = vld [vmem:[%s7818_s21 + $0x2b8] sm:$0xff]   ;;  %v5903_v48 = vcombine.low %v7902_v7, %v7902_v7  ;;  %v7315_v7 = vld [vmem:[%s7818_s21 + $0x3e8] sm:$0xff]  }
  0x38   : > { %6543 = vmatpush3.bf16.msra.mxu1 %v7229_v49  ;;  %6522 = vmatprep.subr.bf16.mxu0 %v7230_v50  ;;  %v5905_v49 = vcombine.low %v7908_v9, %v7908_v9  ;;  %v7294_v50 = vld [vmem:[%s7818_s21 + $0x340] sm:$0xff]   ;;  %v7317_v9 = vld [vmem:[%s7818_s21 + $0x3a8] sm:$0xff]  }
  0x39   : > { %6544 = vmatprep.subr.bf16.mxu1 %v7231_v51  ;;  %v7295_v51 = vld [vmem:[%s7818_s21 + $0x3c0] sm:$0xff]  }
  0x3b   : > { %6523 = vmatpush3.bf16.msra.mxu0 %v7232_v52  ;;  %v7296_v52 = vld [vmem:[%s7818_s21 + $0x300] sm:$0xff]  }
  0x3c   : > { %6545 = vmatpush3.bf16.msra.mxu1 %v7233_v53  ;;  %6524 = vmatprep.subr.bf16.mxu0 %v7234_v54  ;;  %v7297_v53 = vld [vmem:[%s7818_s21 + $0x380] sm:$0xff]   ;;  %v7298_v54 = vld [vmem:[%s7818_s21 + $0x348] sm:$0xff]  }
  0x3d   : > { %6546 = vmatprep.subr.bf16.mxu1 %v7235_v55  ;;  %v7299_v55 = vld [vmem:[%s7818_s21 + $0x3c8] sm:$0xff]  }
  0x3f   : > { %6525 = vmatpush3.bf16.msra.mxu0 %v7236_v56  ;;  %v7300_v56 = vld [vmem:[%s7818_s21 + $0x308] sm:$0xff]  }
  0x40   : > { %6547 = vmatpush3.bf16.msra.mxu1 %v7237_v57  ;;  %6526 = vmatprep.subr.bf16.mxu0 %v7238_v58  ;;  %v7301_v57 = vld [vmem:[%s7818_s21 + $0x388] sm:$0xff]   ;;  %v7302_v58 = vld [vmem:[%s7818_s21 + $0x350] sm:$0xff]  }
  0x41   : > { %6548 = vmatprep.subr.bf16.mxu1 %v7239_v59  ;;  %v7303_v59 = vld [vmem:[%s7818_s21 + $0x3d0] sm:$0xff]  }
  0x43   : > { %6527 = vmatpush3.bf16.msra.mxu0 %v7240_v60  ;;  %v7304_v60 = vld [vmem:[%s7818_s21 + $0x310] sm:$0xff]  }
  0x44   : > { %6549 = vmatpush3.bf16.msra.mxu1 %v7241_v61  ;;  %6528 = vmatprep.subr.bf16.mxu0 %v7242_v62  ;;  %v7305_v61 = vld [vmem:[%s7818_s21 + $0x390] sm:$0xff]   ;;  %v7306_v62 = vld [vmem:[%s7818_s21 + $0x358] sm:$0xff]  }
  0x45   : > { %6550 = vmatprep.subr.bf16.mxu1 %v7243_v63  ;;  %v7307_v63 = vld [vmem:[%s7818_s21 + $0x3d8] sm:$0xff]  }
  0x47   : > { %6529 = vmatpush3.bf16.msra.mxu0 %v7244_v0  ;;  %v7308_v0 = vld [vmem:[%s7818_s21 + $0x318] sm:$0xff]  }
  0x48   : > { %6551 = vmatpush3.bf16.msra.mxu1 %v7245_v1  ;;  %6530 = vmatprep.subr.bf16.mxu0 %v7246_v2  ;;  %v7309_v1 = vld [vmem:[%s7818_s21 + $0x398] sm:$0xff]   ;;  %v7310_v2 = vld [vmem:[%s7818_s21 + $0x360] sm:$0xff]  }
  0x49   : > { %6552 = vmatprep.subr.bf16.mxu1 %v7247_v3  ;;  %v7311_v3 = vld [vmem:[%s7818_s21 + $0x3e0] sm:$0xff]  }
  0x4b   : > { %6531 = vmatpush3.bf16.msra.mxu0 %v7248_v4  ;;  %v7312_v4 = vld [vmem:[%s7818_s21 + $0x320] sm:$0xff]  }
  0x4c   : > { %6553 = vmatpush3.bf16.msra.mxu1 %v7249_v5  ;;  %6532 = vmatprep.subr.bf16.mxu0 %v7250_v6  ;;  %v7313_v5 = vld [vmem:[%s7818_s21 + $0x3a0] sm:$0xff]   ;;  %v7314_v6 = vld [vmem:[%s7818_s21 + $0x368] sm:$0xff]  }
  0x4d   : > { %6554 = vmatprep.subr.bf16.mxu1 %v7251_v8  ;;  %v7316_v8 = vld [vmem:[%s7818_s21 + $0x328] sm:$0xff]  }
  0x4f   : > { %6533 = vmatpush3.bf16.msra.mxu0 %v7252_v10  ;;  %v7318_v10 = vld [vmem:[%s7818_s21 + $0x370] sm:$0xff]  }
  0x50   : > { %6555 = vmatpush3.bf16.msra.mxu1 %v7253_v11  ;;  %6562 = vmatprep.subr.bf16.mxu0 %v7258_v14  ;;  %v7319_v11 = vld [vmem:[%s7818_s21 + $0x3f0] sm:$0xff]   ;;  %v7322_v14 = vld [vmem:[%s7818_s21 + $0x378] sm:$0xff]  }
  0x51   : > { %6584 = vmatprep.subr.bf16.mxu1 %v7259_v15  ;;  %v7323_v15 = vld [vmem:[%s7818_s21 + $0x3f8] sm:$0xff]  }
  0x52   : > { %4656 = vmatmul.mubr.bf16.vlgmr.msra.gmra.mrb[4].mxu0 %v5899_v12  ;;  %v7320_v12 = vld [vmem:[%s7818_s21 + $0x330] sm:$0xff]  }
  0x53   : > { %4696 = vmatmul.mubr.bf16.vlgmr.msra.gmra.mrb[4].mxu1 %v5901_v13  ;;  %6563 = vmatpush3.bf16.msra.mxu0 %v7260_v17  ;;  %v7321_v13 = vld [vmem:[%s7818_s21 + $0x3b0] sm:$0xff]   ;;  %v7325_v17 = vld [vmem:[%s7818_s21 + $0x3b8] sm:$0xff]  }
  0x54   : > { %6585 = vmatpush3.bf16.msra.mxu1 %v7261_v19  ;;  %4735 = vmatprep.mubr.bf16.mxu0 %v5904_v16  ;;  %v7324_v16 = vld [vmem:[%s7818_s21 + $0x338] sm:$0xff]  }
  0x55   : > { %6564 = vmatprep.subr.bf16.mxu0 %v7262_v20  ;;  %4775 = vmatprep.mubr.bf16.mxu1 %v5906_v18  ;;  %v190_v18 = vld [vmem:[%s8485_s0 + $0x30] sm:$0xff]  ;;  %v191_v19 = vld [vmem:[%s8485_s0 + $0x38] sm:$0xff] }
  0x56   : > { %6586 = vmatprep.subr.bf16.mxu1 %v7263_v21  ;;  %v5907_v20 = vcombine.low %v190_v18, %v190_v18  ;;  %v5908_v21 = vcombine.high %v190_v18, %v190_v18  ;;  %v7386_v18 = vld [vmem:[%s7818_s21 + $0x568] sm:$0xff]  }
  0x57   : > { %6565 = vmatpush3.bf16.msra.mxu0 %v7264_v22  ;;  %v5909_v22 = vcombine.low %v191_v19, %v191_v19 }
  0x58   : > { %6587 = vmatpush3.bf16.msra.mxu1 %v7265_v23  ;;  %6566 = vmatprep.subr.bf16.mxu0 %v7266_v24  ;;  %v5910_v23 = vcombine.high %v191_v19, %v191_v19  ;;  %v7330_v24 = vld [vmem:[%s7818_s21 + $0x440] sm:$0xff]   ;;  %v7387_v19 = vld [vmem:[%s7818_s21 + $0x5e8] sm:$0xff]  }
  0x59   : > { %6588 = vmatprep.subr.bf16.mxu1 %v7267_v25  ;;  %v7331_v25 = vld [vmem:[%s7818_s21 + $0x4c0] sm:$0xff]  }
  0x5b   : > { %6567 = vmatpush3.bf16.msra.mxu0 %v7268_v26  ;;  %v7332_v26 = vld [vmem:[%s7818_s21 + $0x400] sm:$0xff]  }
  0x5c   : > { %6589 = vmatpush3.bf16.msra.mxu1 %v7269_v27  ;;  %6568 = vmatprep.subr.bf16.mxu0 %v7270_v28  ;;  %v7333_v27 = vld [vmem:[%s7818_s21 + $0x480] sm:$0xff]   ;;  %v7334_v28 = vld [vmem:[%s7818_s21 + $0x448] sm:$0xff]  }
  0x5d   : > { %6590 = vmatprep.subr.bf16.mxu1 %v7271_v29  ;;  %v7335_v29 = vld [vmem:[%s7818_s21 + $0x4c8] sm:$0xff]  }
  0x5f   : > { %6569 = vmatpush3.bf16.msra.mxu0 %v7272_v30  ;;  %v7336_v30 = vld [vmem:[%s7818_s21 + $0x408] sm:$0xff]  }
  0x60   : > { %6591 = vmatpush3.bf16.msra.mxu1 %v7273_v31  ;;  %6570 = vmatprep.subr.bf16.mxu0 %v7274_v32  ;;  %v7337_v31 = vld [vmem:[%s7818_s21 + $0x488] sm:$0xff]   ;;  %v7338_v32 = vld [vmem:[%s7818_s21 + $0x450] sm:$0xff]  }
  0x61   : > { %6592 = vmatprep.subr.bf16.mxu1 %v7275_v33  ;;  %v7339_v33 = vld [vmem:[%s7818_s21 + $0x4d0] sm:$0xff]  }
  0x63   : > { %6571 = vmatpush3.bf16.msra.mxu0 %v7276_v34  ;;  %v7340_v34 = vld [vmem:[%s7818_s21 + $0x410] sm:$0xff]  }
  0x64   : > { %6593 = vmatpush3.bf16.msra.mxu1 %v7277_v35  ;;  %6572 = vmatprep.subr.bf16.mxu0 %v7278_v36  ;;  %v7341_v35 = vld [vmem:[%s7818_s21 + $0x490] sm:$0xff]   ;;  %v7342_v36 = vld [vmem:[%s7818_s21 + $0x458] sm:$0xff]  }
  0x65   : > { %6594 = vmatprep.subr.bf16.mxu1 %v7279_v37  ;;  %v7343_v37 = vld [vmem:[%s7818_s21 + $0x4d8] sm:$0xff]  }
  0x67   : > { %6573 = vmatpush3.bf16.msra.mxu0 %v7280_v38  ;;  %v7344_v38 = vld [vmem:[%s7818_s21 + $0x418] sm:$0xff]  }
  0x68   : > { %6595 = vmatpush3.bf16.msra.mxu1 %v7281_v39  ;;  %6574 = vmatprep.subr.bf16.mxu0 %v7282_v40  ;;  %v7345_v39 = vld [vmem:[%s7818_s21 + $0x498] sm:$0xff]   ;;  %v7346_v40 = vld [vmem:[%s7818_s21 + $0x460] sm:$0xff]  }
  0x69   : > { %6596 = vmatprep.subr.bf16.mxu1 %v7283_v41  ;;  %v7347_v41 = vld [vmem:[%s7818_s21 + $0x4e0] sm:$0xff]  }
  0x6b   : > { %6575 = vmatpush3.bf16.msra.mxu0 %v7284_v42  ;;  %v7348_v42 = vld [vmem:[%s7818_s21 + $0x420] sm:$0xff]  }
  0x6c   : > { %6597 = vmatpush3.bf16.msra.mxu1 %v7285_v43  ;;  %6576 = vmatprep.subr.bf16.mxu0 %v7286_v44  ;;  %v7349_v43 = vld [vmem:[%s7818_s21 + $0x4a0] sm:$0xff]   ;;  %v7350_v44 = vld [vmem:[%s7818_s21 + $0x468] sm:$0xff]  }
  0x6d   : > { %6598 = vmatprep.subr.bf16.mxu1 %v7287_v45  ;;  %v7351_v45 = vld [vmem:[%s7818_s21 + $0x4e8] sm:$0xff]  }
  0x6f   : > { %6577 = vmatpush3.bf16.msra.mxu0 %v7288_v46  ;;  %v7352_v46 = vld [vmem:[%s7818_s21 + $0x428] sm:$0xff]  }
  0x70   : > { %6599 = vmatpush3.bf16.msra.mxu1 %v7289_v47  ;;  %6606 = vmatprep.subr.bf16.mxu0 %v7294_v50  ;;  %v7353_v47 = vld [vmem:[%s7818_s21 + $0x4a8] sm:$0xff]   ;;  %v7356_v50 = vld [vmem:[%s7818_s21 + $0x430] sm:$0xff]  }
  0x71   : > { %6628 = vmatprep.subr.bf16.mxu1 %v7295_v51  ;;  %v7357_v51 = vld [vmem:[%s7818_s21 + $0x4b0] sm:$0xff]  }
  0x72   : > { %4736 = vmatmul.mubr.bf16.vlgmr.msra.gmra.mrb[8].mxu0 %v5903_v48  ;;  %v7354_v48 = vld [vmem:[%s7818_s21 + $0x470] sm:$0xff]  }
  0x73   : > { %4776 = vmatmul.mubr.bf16.vlgmr.msra.gmra.mrb[8].mxu1 %v5905_v49  ;;  %6607 = vmatpush3.bf16.msra.mxu0 %v7296_v52  ;;  %v7355_v49 = vld [vmem:[%s7818_s21 + $0x4f0] sm:$0xff]   ;;  %v7358_v52 = vld [vmem:[%s7818_s21 + $0x478] sm:$0xff]  }
  0x74   : > { %6629 = vmatpush3.bf16.msra.mxu1 %v7297_v53  ;;  %6608 = vmatprep.subr.bf16.mxu0 %v7298_v54  ;;  %v7359_v53 = vld [vmem:[%s7818_s21 + $0x4f8] sm:$0xff]  }
  0x75   : > { %6630 = vmatprep.subr.bf16.mxu1 %v7299_v55  ;;  %4815 = vmatprep.mubr.bf16.mxu0 %v5908_v21  ;;  %v7360_v54 = vld [vmem:[%s7818_s21 + $0x438] sm:$0xff]   ;;  %v7389_v21 = vld [vmem:[%s7818_s21 + $0x5a8] sm:$0xff]  }
  0x76   : > { %4855 = vmatprep.mubr.bf16.mxu1 %v5910_v23  ;;  %v7361_v55 = vld [vmem:[%s7818_s21 + $0x4b8] sm:$0xff]   ;;  %v7391_v23 = vld [vmem:[%s7818_s21 + $0x5f0] sm:$0xff]  }
  0x77   : > { %6609 = vmatpush3.bf16.msra.mxu0 %v7300_v56  ;;  %v192_v56 = vld [vmem:[%s8485_s0 + $0x40] sm:$0xff] }
  0x78   : > { %6631 = vmatpush3.bf16.msra.mxu1 %v7301_v57  ;;  %6610 = vmatprep.subr.bf16.mxu0 %v7302_v58  ;;  %v5911_v57 = vcombine.low %v192_v56, %v192_v56  ;;  %v5912_v58 = vcombine.high %v192_v56, %v192_v56  ;;  %v7422_v56 = vld [vmem:[%s7818_s21 + $0x668] sm:$0xff]  }
  0x79   : > { %6632 = vmatprep.subr.bf16.mxu1 %v7303_v59  ;;  %v193_v59 = vld [vmem:[%s8485_s0 + $0x48] sm:$0xff] }
  0x7b   : > { %6611 = vmatpush3.bf16.msra.mxu0 %v7304_v60  ;;  %v5913_v60 = vcombine.low %v193_v59, %v193_v59 }
  0x7c   : > { %6633 = vmatpush3.bf16.msra.mxu1 %v7305_v61  ;;  %6612 = vmatprep.subr.bf16.mxu0 %v7306_v62  ;;  %v5914_v61 = vcombine.high %v193_v59, %v193_v59  ;;  %v7366_v62 = vld [vmem:[%s7818_s21 + $0x540] sm:$0xff]   ;;  %v7425_v59 = vld [vmem:[%s7818_s21 + $0x6a8] sm:$0xff]  }
  0x7d   : > { %6634 = vmatprep.subr.bf16.mxu1 %v7307_v63  ;;  %v7367_v63 = vld [vmem:[%s7818_s21 + $0x5c0] sm:$0xff]  }
  0x7f   : > { %6613 = vmatpush3.bf16.msra.mxu0 %v7308_v0  ;;  %v7368_v0 = vld [vmem:[%s7818_s21 + $0x500] sm:$0xff]  }
  0x80   : > { %6635 = vmatpush3.bf16.msra.mxu1 %v7309_v1  ;;  %6614 = vmatprep.subr.bf16.mxu0 %v7310_v2  ;;  %v7369_v1 = vld [vmem:[%s7818_s21 + $0x580] sm:$0xff]   ;;  %v7370_v2 = vld [vmem:[%s7818_s21 + $0x548] sm:$0xff]  }
  0x81   : > { %6636 = vmatprep.subr.bf16.mxu1 %v7311_v3  ;;  %v7371_v3 = vld [vmem:[%s7818_s21 + $0x5c8] sm:$0xff]  }
  0x83   : > { %6615 = vmatpush3.bf16.msra.mxu0 %v7312_v4  ;;  %v7372_v4 = vld [vmem:[%s7818_s21 + $0x508] sm:$0xff]  }
  0x84   : > { %6637 = vmatpush3.bf16.msra.mxu1 %v7313_v5  ;;  %6616 = vmatprep.subr.bf16.mxu0 %v7314_v6  ;;  %v7373_v5 = vld [vmem:[%s7818_s21 + $0x588] sm:$0xff]   ;;  %v7374_v6 = vld [vmem:[%s7818_s21 + $0x550] sm:$0xff]  }
  0x85   : > { %6638 = vmatprep.subr.bf16.mxu1 %v7315_v7  ;;  %v7375_v7 = vld [vmem:[%s7818_s21 + $0x5d0] sm:$0xff]  }
  0x87   : > { %6617 = vmatpush3.bf16.msra.mxu0 %v7316_v8  ;;  %v7376_v8 = vld [vmem:[%s7818_s21 + $0x510] sm:$0xff]  }
  0x88   : > { %6639 = vmatpush3.bf16.msra.mxu1 %v7317_v9  ;;  %6618 = vmatprep.subr.bf16.mxu0 %v7318_v10  ;;  %v7377_v9 = vld [vmem:[%s7818_s21 + $0x590] sm:$0xff]   ;;  %v7378_v10 = vld [vmem:[%s7818_s21 + $0x558] sm:$0xff]  }
  0x89   : > { %6640 = vmatprep.subr.bf16.mxu1 %v7319_v11  ;;  %v7379_v11 = vld [vmem:[%s7818_s21 + $0x5d8] sm:$0xff]  }
  0x8b   : > { %6619 = vmatpush3.bf16.msra.mxu0 %v7320_v12  ;;  %v7380_v12 = vld [vmem:[%s7818_s21 + $0x518] sm:$0xff]  }
  0x8c   : > { %6641 = vmatpush3.bf16.msra.mxu1 %v7321_v13  ;;  %6620 = vmatprep.subr.bf16.mxu0 %v7322_v14  ;;  %v7381_v13 = vld [vmem:[%s7818_s21 + $0x598] sm:$0xff]   ;;  %v7382_v14 = vld [vmem:[%s7818_s21 + $0x560] sm:$0xff]  }
  0x8d   : > { %6642 = vmatprep.subr.bf16.mxu1 %v7323_v15  ;;  %v7383_v15 = vld [vmem:[%s7818_s21 + $0x5e0] sm:$0xff]  }
  0x8f   : > { %6621 = vmatpush3.bf16.msra.mxu0 %v7324_v16  ;;  %v7384_v16 = vld [vmem:[%s7818_s21 + $0x520] sm:$0xff]  }
  0x90   : > { %6643 = vmatpush3.bf16.msra.mxu1 %v7325_v17  ;;  %6650 = vmatprep.subr.bf16.mxu0 %v7330_v24  ;;  %v7385_v17 = vld [vmem:[%s7818_s21 + $0x5a0] sm:$0xff]   ;;  %v7392_v24 = vld [vmem:[%s7818_s21 + $0x530] sm:$0xff]  }
  0x91   : > { %6672 = vmatprep.subr.bf16.mxu1 %v7331_v25  ;;  %v7393_v25 = vld [vmem:[%s7818_s21 + $0x5b0] sm:$0xff]  }
  0x92   : > { %4816 = vmatmul.mubr.bf16.vlgmr.msra.gmra.mrb[12].mxu0 %v5907_v20  ;;  %v7388_v20 = vld [vmem:[%s7818_s21 + $0x528] sm:$0xff]  }
  0x93   : > { %4856 = vmatmul.mubr.bf16.vlgmr.msra.gmra.mrb[12].mxu1 %v5909_v22  ;;  %6651 = vmatpush3.bf16.msra.mxu0 %v7332_v26  ;;  %v7390_v22 = vld [vmem:[%s7818_s21 + $0x570] sm:$0xff]   ;;  %v7394_v26 = vld [vmem:[%s7818_s21 + $0x578] sm:$0xff]  }
  0x94   : > { %6673 = vmatpush3.bf16.msra.mxu1 %v7333_v27  ;;  %6652 = vmatprep.subr.bf16.mxu0 %v7334_v28  ;;  %v7395_v27 = vld [vmem:[%s7818_s21 + $0x5f8] sm:$0xff]  }
  0x95   : > { %6674 = vmatprep.subr.bf16.mxu1 %v7335_v29  ;;  %4895 = vmatprep.mubr.bf16.mxu0 %v5912_v58  ;;  %v7396_v28 = vld [vmem:[%s7818_s21 + $0x538] sm:$0xff]   ;;  %v7424_v58 = vld [vmem:[%s7818_s21 + $0x628] sm:$0xff]  }
  0x96   : > { %4935 = vmatprep.mubr.bf16.mxu1 %v5914_v61  ;;  %v7397_v29 = vld [vmem:[%s7818_s21 + $0x5b8] sm:$0xff]   ;;  %v7427_v61 = vld [vmem:[%s7818_s21 + $0x6f0] sm:$0xff]  }
  0x97   : > { %6653 = vmatpush3.bf16.msra.mxu0 %v7336_v30  ;;  %v194_v30 = vld [vmem:[%s8485_s0 + $0x50] sm:$0xff] }
  0x98   : > { %6675 = vmatpush3.bf16.msra.mxu1 %v7337_v31  ;;  %6654 = vmatprep.subr.bf16.mxu0 %v7338_v32  ;;  %v195_v31 = vld [vmem:[%s8485_s0 + $0x58] sm:$0xff]  ;;  %v5915_v32 = vcombine.low %v194_v30, %v194_v30 }
  0x99   : > { %6676 = vmatprep.subr.bf16.mxu1 %v7339_v33  ;;  %v5916_v33 = vcombine.high %v194_v30, %v194_v30 }
  0x9b   : > { %6655 = vmatpush3.bf16.msra.mxu0 %v7340_v34  ;;  %v5917_v34 = vcombine.low %v195_v31, %v195_v31 }
  0x9c   : > { %6677 = vmatpush3.bf16.msra.mxu1 %v7341_v35  ;;  %6656 = vmatprep.subr.bf16.mxu0 %v7342_v36  ;;  %v5918_v35 = vcombine.high %v195_v31, %v195_v31  ;;  %v7402_v36 = vld [vmem:[%s7818_s21 + $0x640] sm:$0xff]  }
  0x9d   : > { %6678 = vmatprep.subr.bf16.mxu1 %v7343_v37  ;;  %v7403_v37 = vld [vmem:[%s7818_s21 + $0x6c0] sm:$0xff]  }
  0x9e   : > { %v5894_v31 = vld [vmem:[%s178_s24] ss:$0 sm:$0xff] }
  0x9f   : > { %6657 = vmatpush3.bf16.msra.mxu0 %v7344_v38  ;;  %v7404_v38 = vld [vmem:[%s7818_s21 + $0x600] sm:$0xff]  }
  0xa0   : > { %6679 = vmatpush3.bf16.msra.mxu1 %v7345_v39  ;;  %6658 = vmatprep.subr.bf16.mxu0 %v7346_v40  ;;  %v7405_v39 = vld [vmem:[%s7818_s21 + $0x680] sm:$0xff]   ;;  %v7406_v40 = vld [vmem:[%s7818_s21 + $0x648] sm:$0xff]  }
  0xa1   : > { %6680 = vmatprep.subr.bf16.mxu1 %v7347_v41  ;;  %v7407_v41 = vld [vmem:[%s7818_s21 + $0x6c8] sm:$0xff]  }
  0xa3   : > { %6659 = vmatpush3.bf16.msra.mxu0 %v7348_v42  ;;  %v7408_v42 = vld [vmem:[%s7818_s21 + $0x608] sm:$0xff]  }
  0xa4   : > { %6681 = vmatpush3.bf16.msra.mxu1 %v7349_v43  ;;  %6660 = vmatprep.subr.bf16.mxu0 %v7350_v44  ;;  %v7409_v43 = vld [vmem:[%s7818_s21 + $0x688] sm:$0xff]   ;;  %v7410_v44 = vld [vmem:[%s7818_s21 + $0x650] sm:$0xff]  }
  0xa5   : > { %6682 = vmatprep.subr.bf16.mxu1 %v7351_v45  ;;  %v7411_v45 = vld [vmem:[%s7818_s21 + $0x6d0] sm:$0xff]  }
  0xa7   : > { %6661 = vmatpush3.bf16.msra.mxu0 %v7352_v46  ;;  %v7412_v46 = vld [vmem:[%s7818_s21 + $0x610] sm:$0xff]  }
  0xa8   : > { %6683 = vmatpush3.bf16.msra.mxu1 %v7353_v47  ;;  %6662 = vmatprep.subr.bf16.mxu0 %v7354_v48  ;;  %v7413_v47 = vld [vmem:[%s7818_s21 + $0x690] sm:$0xff]   ;;  %v7414_v48 = vld [vmem:[%s7818_s21 + $0x658] sm:$0xff]  }
  0xa9   : > { %6684 = vmatprep.subr.bf16.mxu1 %v7355_v49  ;;  %v7415_v49 = vld [vmem:[%s7818_s21 + $0x6d8] sm:$0xff]  }
  0xab   : > { %6663 = vmatpush3.bf16.msra.mxu0 %v7356_v50  ;;  %v7416_v50 = vld [vmem:[%s7818_s21 + $0x618] sm:$0xff]  }
  0xac   : > { %6685 = vmatpush3.bf16.msra.mxu1 %v7357_v51  ;;  %6664 = vmatprep.subr.bf16.mxu0 %v7358_v52  ;;  %v7417_v51 = vld [vmem:[%s7818_s21 + $0x698] sm:$0xff]   ;;  %v7418_v52 = vld [vmem:[%s7818_s21 + $0x660] sm:$0xff]  }
  0xad   : > { %6686 = vmatprep.subr.bf16.mxu1 %v7359_v53  ;;  %v7419_v53 = vld [vmem:[%s7818_s21 + $0x6e0] sm:$0xff]  }
  0xaf   : > { %6665 = vmatpush3.bf16.msra.mxu0 %v7360_v54  ;;  %v7420_v54 = vld [vmem:[%s7818_s21 + $0x620] sm:$0xff]  }
  0xb0   : > { %6687 = vmatpush3.bf16.msra.mxu1 %v7361_v55  ;;  %6694 = vmatprep.subr.bf16.mxu0 %v7366_v62  ;;  %v7421_v55 = vld [vmem:[%s7818_s21 + $0x6a0] sm:$0xff]   ;;  %v7428_v62 = vld [vmem:[%s7818_s21 + $0x630] sm:$0xff]  }
  0xb1   : > { %6716 = vmatprep.subr.bf16.mxu1 %v7367_v63  ;;  %v7429_v63 = vld [vmem:[%s7818_s21 + $0x6b0] sm:$0xff]  }
  0xb2   : > { %4896 = vmatmul.mubr.bf16.vlgmr.msra.gmra.mrb[16].mxu0 %v5911_v57  ;;  %v7423_v57 = vld [vmem:[%s7818_s21 + $0x6e8] sm:$0xff]  }
  0xb3   : > { %4936 = vmatmul.mubr.bf16.vlgmr.msra.gmra.mrb[16].mxu1 %v5913_v60  ;;  %6695 = vmatpush3.bf16.msra.mxu0 %v7368_v0  ;;  %v7426_v60 = vld [vmem:[%s7818_s21 + $0x670] sm:$0xff]   ;;  %v7430_v0 = vld [vmem:[%s7818_s21 + $0x678] sm:$0xff]  }
  0xb4   : > { %6717 = vmatpush3.bf16.msra.mxu1 %v7369_v1  ;;  %6696 = vmatprep.subr.bf16.mxu0 %v7370_v2  ;;  %v7431_v1 = vld [vmem:[%s7818_s21 + $0x6f8] sm:$0xff]  }
  0xb5   : > { %6718 = vmatprep.subr.bf16.mxu1 %v7371_v3  ;;  %4975 = vmatprep.mubr.bf16.mxu0 %v5916_v33  ;;  %v7432_v2 = vld [vmem:[%s7818_s21 + $0x638] sm:$0xff]  }
  0xb6   : > { %5015 = vmatprep.mubr.bf16.mxu1 %v5918_v35  ;;  %v7433_v3 = vld [vmem:[%s7818_s21 + $0x6b8] sm:$0xff]  }
  0xb7   : > { %6697 = vmatpush3.bf16.msra.mxu0 %v7372_v4  ;;  %v196_v4 = vld [vmem:[%s8485_s0 + $0x60] sm:$0xff] }
  0xb8   : > { %6719 = vmatpush3.bf16.msra.mxu1 %v7373_v5  ;;  %6698 = vmatprep.subr.bf16.mxu0 %v7374_v6  ;;  %v197_v5 = vld [vmem:[%s8485_s0 + $0x68] sm:$0xff]  ;;  %v5919_v6 = vcombine.low %v196_v4, %v196_v4 }
  0xb9   : > { %6720 = vmatprep.subr.bf16.mxu1 %v7375_v7  ;;  %v5920_v7 = vcombine.high %v196_v4, %v196_v4  ;;  %v7481_v4 = vld [vmem:[%s7818_s21 + $0x888] sm:$0xff]  }
  0xbb   : > { %6699 = vmatpush3.bf16.msra.mxu0 %v7376_v8  ;;  %v5921_v8 = vcombine.low %v197_v5, %v197_v5 }
  0xbc   : > { %6721 = vmatpush3.bf16.msra.mxu1 %v7377_v9  ;;  %6700 = vmatprep.subr.bf16.mxu0 %v7378_v10  ;;  %v7438_v9 = vld [vmem:[%s7818_s21 + $0x740] sm:$0xff]   ;;  %v5922_v10 = vcombine.high %v197_v5, %v197_v5  ;;  %v7482_v5 = vld [vmem:[%s7818_s21 + $0x850] sm:$0xff]  }
  0xbd   : > { %6722 = vmatprep.subr.bf16.mxu1 %v7379_v11  ;;  %v7439_v11 = vld [vmem:[%s7818_s21 + $0x7c0] sm:$0xff]  }
  0xbf   : > { %6701 = vmatpush3.bf16.msra.mxu0 %v7380_v12  ;;  %v7440_v12 = vld [vmem:[%s7818_s21 + $0x700] sm:$0xff]  }
  0xc0   : > { %6723 = vmatpush3.bf16.msra.mxu1 %v7381_v13  ;;  %6702 = vmatprep.subr.bf16.mxu0 %v7382_v14  ;;  %v7441_v13 = vld [vmem:[%s7818_s21 + $0x780] sm:$0xff]   ;;  %v7442_v14 = vld [vmem:[%s7818_s21 + $0x748] sm:$0xff]  }
  0xc1   : > { %6724 = vmatprep.subr.bf16.mxu1 %v7383_v15  ;;  %v7443_v15 = vld [vmem:[%s7818_s21 + $0x7c8] sm:$0xff]  }
  0xc3   : > { %6703 = vmatpush3.bf16.msra.mxu0 %v7384_v16  ;;  %v7444_v16 = vld [vmem:[%s7818_s21 + $0x708] sm:$0xff]  }
  0xc4   : > { %6725 = vmatpush3.bf16.msra.mxu1 %v7385_v17  ;;  %6704 = vmatprep.subr.bf16.mxu0 %v7386_v18  ;;  %v7445_v17 = vld [vmem:[%s7818_s21 + $0x788] sm:$0xff]   ;;  %v7446_v18 = vld [vmem:[%s7818_s21 + $0x750] sm:$0xff]  }
  0xc5   : > { %6726 = vmatprep.subr.bf16.mxu1 %v7387_v19  ;;  %v7447_v19 = vld [vmem:[%s7818_s21 + $0x7d0] sm:$0xff]  }
  0xc7   : > { %6705 = vmatpush3.bf16.msra.mxu0 %v7388_v20  ;;  %v7448_v20 = vld [vmem:[%s7818_s21 + $0x710] sm:$0xff]  }
  0xc8   : > { %6727 = vmatpush3.bf16.msra.mxu1 %v7389_v21  ;;  %6706 = vmatprep.subr.bf16.mxu0 %v7390_v22  ;;  %v7449_v21 = vld [vmem:[%s7818_s21 + $0x790] sm:$0xff]   ;;  %v7450_v22 = vld [vmem:[%s7818_s21 + $0x758] sm:$0xff]  }
  0xc9   : > { %6728 = vmatprep.subr.bf16.mxu1 %v7391_v23  ;;  %v7451_v23 = vld [vmem:[%s7818_s21 + $0x7d8] sm:$0xff]  }
  0xcb   : > { %6707 = vmatpush3.bf16.msra.mxu0 %v7392_v24  ;;  %v7452_v24 = vld [vmem:[%s7818_s21 + $0x718] sm:$0xff]  }
  0xcc   : > { %6729 = vmatpush3.bf16.msra.mxu1 %v7393_v25  ;;  %6708 = vmatprep.subr.bf16.mxu0 %v7394_v26  ;;  %v7453_v25 = vld [vmem:[%s7818_s21 + $0x798] sm:$0xff]   ;;  %v7454_v26 = vld [vmem:[%s7818_s21 + $0x760] sm:$0xff]  }
  0xcd   : > { %6730 = vmatprep.subr.bf16.mxu1 %v7395_v27  ;;  %v7455_v27 = vld [vmem:[%s7818_s21 + $0x7e0] sm:$0xff]  }
  0xcf   : > { %6709 = vmatpush3.bf16.msra.mxu0 %v7396_v28  ;;  %v7456_v28 = vld [vmem:[%s7818_s21 + $0x720] sm:$0xff]  }
  0xd0   : > { %6731 = vmatpush3.bf16.msra.mxu1 %v7397_v29  ;;  %6738 = vmatprep.subr.bf16.mxu0 %v7402_v36  ;;  %v7457_v29 = vld [vmem:[%s7818_s21 + $0x7a0] sm:$0xff]   ;;  %v7458_v36 = vld [vmem:[%s7818_s21 + $0x768] sm:$0xff]  }
  0xd1   : > { %6760 = vmatprep.subr.bf16.mxu1 %v7403_v37 }
  0xd2   : > { %4976 = vmatmul.mubr.bf16.vlgmr.msra.gmra.mrb[20].mxu0 %v5915_v32 }
  0xd3   : > { %5016 = vmatmul.mubr.bf16.vlgmr.msra.gmra.mrb[20].mxu1 %v5917_v34  ;;  %6739 = vmatpush3.bf16.msra.mxu0 %v7404_v38  ;;  %v7459_v38 = vld [vmem:[%s7818_s21 + $0x7e8] sm:$0xff]  }
  0xd4   : > { %6761 = vmatpush3.bf16.msra.mxu1 %v7405_v39  ;;  %6740 = vmatprep.subr.bf16.mxu0 %v7406_v40 }
  0xd5   : > { %6762 = vmatprep.subr.bf16.mxu1 %v7407_v41  ;;  %5055 = vmatprep.mubr.bf16.mxu0 %v5920_v7  ;;  %v7460_v41 = vld [vmem:[%s7818_s21 + $0x728] sm:$0xff]   ;;  %v7484_v7 = vld [vmem:[%s7818_s21 + $0x810] sm:$0xff]  }
  0xd6   : > { %5095 = vmatprep.mubr.bf16.mxu1 %v5922_v10  ;;  %v7487_v10 = vld [vmem:[%s7818_s21 + $0x8d8] sm:$0xff]  }
  0xd7   : > { %6741 = vmatpush3.bf16.msra.mxu0 %v7408_v42 }
  0xd8   : > { %6763 = vmatpush3.bf16.msra.mxu1 %v7409_v43  ;;  %6742 = vmatprep.subr.bf16.mxu0 %v7410_v44  ;;  %v7461_v43 = vld [vmem:[%s7818_s21 + $0x7a8] sm:$0xff]  }
  0xd9   : > { %6764 = vmatprep.subr.bf16.mxu1 %v7411_v45 }
  0xdb   : > { %6743 = vmatpush3.bf16.msra.mxu0 %v7412_v46  ;;  %v7462_v46 = vld [vmem:[%s7818_s21 + $0x770] sm:$0xff]  }
  0xdc   : > { %6765 = vmatpush3.bf16.msra.mxu1 %v7413_v47  ;;  %6744 = vmatprep.subr.bf16.mxu0 %v7414_v48  ;;  %v7463_v48 = vld [vmem:[%s7818_s21 + $0x7f0] sm:$0xff]  }
  0xdd   : > { %6766 = vmatprep.subr.bf16.mxu1 %v7415_v49  ;;  %v7464_v49 = vld [vmem:[%s7818_s21 + $0x730] sm:$0xff]  }
  0xdf   : > { %6745 = vmatpush3.bf16.msra.mxu0 %v7416_v50  ;;  %v7465_v50 = vld [vmem:[%s7818_s21 + $0x7b0] sm:$0xff]  }
  0xe0   : > { %6767 = vmatpush3.bf16.msra.mxu1 %v7417_v51  ;;  %6746 = vmatprep.subr.bf16.mxu0 %v7418_v52  ;;  %v7466_v51 = vld [vmem:[%s7818_s21 + $0x778] sm:$0xff]  }
  0xe1   : > { %6768 = vmatprep.subr.bf16.mxu1 %v7419_v53  ;;  %v7467_v52 = vld [vmem:[%s7818_s21 + $0x7f8] sm:$0xff]  }
  0xe2   : > { %v7468_v53 = vld [vmem:[%s7818_s21 + $0x738] sm:$0xff]  }
  0xe3   : > { %6747 = vmatpush3.bf16.msra.mxu0 %v7420_v54  ;;  %v7469_v54 = vld [vmem:[%s7818_s21 + $0x7b8] sm:$0xff]  }
  0xe4   : > { %6769 = vmatpush3.bf16.msra.mxu1 %v7421_v55  ;;  %6748 = vmatprep.subr.bf16.mxu0 %v7422_v56  ;;  %v198_v55 = vld [vmem:[%s8485_s0 + $0x70] sm:$0xff]  ;;  %v199_v56 = vld [vmem:[%s8485_s0 + $0x78] sm:$0xff] }
  0xe5   : > { %6770 = vmatprep.subr.bf16.mxu1 %v7423_v57  ;;  %v5923_v57 = vcombine.low %v198_v55, %v198_v55 }
  0xe7   : > { %6749 = vmatpush3.bf16.msra.mxu0 %v7424_v58  ;;  %v5924_v58 = vcombine.high %v198_v55, %v198_v55  ;;  %v7518_v55 = vld [vmem:[%s7818_s21 + $0x950] sm:$0xff]  }
  0xe8   : > { %6771 = vmatpush3.bf16.msra.mxu1 %v7425_v59  ;;  %6750 = vmatprep.subr.bf16.mxu0 %v7426_v60  ;;  %v5925_v59 = vcombine.low %v199_v56, %v199_v56  ;;  %v5926_v60 = vcombine.high %v199_v56, %v199_v56  ;;  %v7519_v56 = vld [vmem:[%s7818_s21 + $0x9d0] sm:$0xff]  }
  0xe9   : > { %6772 = vmatprep.subr.bf16.mxu1 %v7427_v61  ;;  %v7474_v61 = vld [vmem:[%s7818_s21 + $0x840] sm:$0xff]  }
  0xeb   : > { %6751 = vmatpush3.bf16.msra.mxu0 %v7428_v62  ;;  %v7475_v62 = vld [vmem:[%s7818_s21 + $0x8c0] sm:$0xff]  }
  0xec   : > { %6773 = vmatpush3.bf16.msra.mxu1 %v7429_v63  ;;  %6752 = vmatprep.subr.bf16.mxu0 %v7430_v0  ;;  %v7476_v63 = vld [vmem:[%s7818_s21 + $0x800] sm:$0xff]  }
  0xed   : > { %6774 = vmatprep.subr.bf16.mxu1 %v7431_v1  ;;  %v7477_v0 = vld [vmem:[%s7818_s21 + $0x880] sm:$0xff]   ;;  %v7478_v1 = vld [vmem:[%s7818_s21 + $0x848] sm:$0xff]  }
  0xef   : > { %6753 = vmatpush3.bf16.msra.mxu0 %v7432_v2  ;;  %v7479_v2 = vld [vmem:[%s7818_s21 + $0x8c8] sm:$0xff]  }
  0xf0   : > { %6775 = vmatpush3.bf16.msra.mxu1 %v7433_v3  ;;  %6782 = vmatprep.subr.bf16.mxu0 %v7438_v9  ;;  %v7480_v3 = vld [vmem:[%s7818_s21 + $0x808] sm:$0xff]   ;;  %v7486_v9 = vld [vmem:[%s7818_s21 + $0x858] sm:$0xff]  }
  0xf1   : > { %6804 = vmatprep.subr.bf16.mxu1 %v7439_v11  ;;  %v7488_v11 = vld [vmem:[%s7818_s21 + $0x818] sm:$0xff]  }
  0xf2   : > { %5056 = vmatmul.mubr.bf16.vlgmr.msra.gmra.mrb[24].mxu0 %v5919_v6  ;;  %v7483_v6 = vld [vmem:[%s7818_s21 + $0x8d0] sm:$0xff]  }
  0xf3   : > { %5096 = vmatmul.mubr.bf16.vlgmr.msra.gmra.mrb[24].mxu1 %v5921_v8  ;;  %6783 = vmatpush3.bf16.msra.mxu0 %v7440_v12  ;;  %v7485_v8 = vld [vmem:[%s7818_s21 + $0x890] sm:$0xff]   ;;  %v7489_v12 = vld [vmem:[%s7818_s21 + $0x898] sm:$0xff]  }
  0xf4   : > { %6805 = vmatpush3.bf16.msra.mxu1 %v7441_v13  ;;  %6784 = vmatprep.subr.bf16.mxu0 %v7442_v14  ;;  %v7490_v13 = vld [vmem:[%s7818_s21 + $0x860] sm:$0xff]  }
  0xf5   : > { %6806 = vmatprep.subr.bf16.mxu1 %v7443_v15  ;;  %5135 = vmatprep.mubr.bf16.mxu0 %v5924_v58  ;;  %v7491_v14 = vld [vmem:[%s7818_s21 + $0x8e0] sm:$0xff]   ;;  %v7521_v58 = vld [vmem:[%s7818_s21 + $0x990] sm:$0xff]  }
  0xf6   : > { %5175 = vmatprep.mubr.bf16.mxu1 %v5926_v60  ;;  %v7492_v15 = vld [vmem:[%s7818_s21 + $0x820] sm:$0xff]   ;;  %v7523_v60 = vld [vmem:[%s7818_s21 + $0x9d8] sm:$0xff]  }
  0xf7   : > { %6785 = vmatpush3.bf16.msra.mxu0 %v7444_v16 }
  0xf8   : > { %6807 = vmatpush3.bf16.msra.mxu1 %v7445_v17  ;;  %6786 = vmatprep.subr.bf16.mxu0 %v7446_v18  ;;  %v7493_v17 = vld [vmem:[%s7818_s21 + $0x8a0] sm:$0xff]  }
  0xf9   : > { %6808 = vmatprep.subr.bf16.mxu1 %v7447_v19 }
  0xfb   : > { %6787 = vmatpush3.bf16.msra.mxu0 %v7448_v20 }
  0xfc   : > { %6809 = vmatpush3.bf16.msra.mxu1 %v7449_v21  ;;  %6788 = vmatprep.subr.bf16.mxu0 %v7450_v22 }
  0xfd   : > { %6810 = vmatprep.subr.bf16.mxu1 %v7451_v23  ;;  %v7494_v23 = vld [vmem:[%s7818_s21 + $0x868] sm:$0xff]  }
  0xff   : > { %6789 = vmatpush3.bf16.msra.mxu0 %v7452_v24 }
 0x100   : > { %6811 = vmatpush3.bf16.msra.mxu1 %v7453_v25  ;;  %6790 = vmatprep.subr.bf16.mxu0 %v7454_v26  ;;  %v7495_v25 = vld [vmem:[%s7818_s21 + $0x8e8] sm:$0xff]  }
 0x101   : > { %6812 = vmatprep.subr.bf16.mxu1 %v7455_v27 }
 0x103   : > { %6791 = vmatpush3.bf16.msra.mxu0 %v7456_v28  ;;  %v7496_v28 = vld [vmem:[%s7818_s21 + $0x828] sm:$0xff]  }
 0x104   : > { %6813 = vmatpush3.bf16.msra.mxu1 %v7457_v29  ;;  %6792 = vmatprep.subr.bf16.mxu0 %v7458_v36  ;;  %v7501_v36 = vld [vmem:[%s7818_s21 + $0x8b0] sm:$0xff]  }
 0x105   : > { %v6490_v30 = vpop.f32.mrb[0].mxu0  ;;  %6814 = vmatprep.subr.bf16.mxu1 %v7459_v38  ;;  %v7503_v38 = vld [vmem:[%s7818_s21 + $0x8f8] sm:$0xff]  }
 0x106   : > { %v6512_v32 = vpop.f32.mrb[0].mxu1  ;;  %v6491_v33 = vpop.f32.mrb[1].mxu0 }
 0x107   : > { %v6492_v34 = vadd.f32 %v6491_v33, %v6490_v30  ;;  %v6513_v35 = vpop.f32.mrb[1].mxu1  ;;  %v6493_v39 = vpop.f32.mrb[2].mxu0  ;;  %6793 = vmatpush3.bf16.msra.mxu0 %v7460_v41  ;;  %v7497_v30 = vld [vmem:[%s7818_s21 + $0x8a8] sm:$0xff]   ;;  %v7498_v33 = vld [vmem:[%s7818_s21 + $0x870] sm:$0xff]   ;;  %v200_v41 = vld [vmem:[%s8485_s0 + $0x80] sm:$0xff] }
 0x108   : > { %v6514_v37 = vadd.f32 %v6513_v35, %v6512_v32  ;;  %v6515_v40 = vpop.f32.mrb[2].mxu1  ;;  %v6494_v44 = vpop.f32.mrb[3].mxu0  ;;  %6815 = vmatpush3.bf16.msra.mxu1 %v7461_v43  ;;  %6794 = vmatprep.subr.bf16.mxu0 %v7462_v46  ;;  %v7500_v35 = vld [vmem:[%s7818_s21 + $0x830] sm:$0xff]   ;;  %v7504_v39 = vld [vmem:[%s7818_s21 + $0x838] sm:$0xff]   ;;  %v5927_v43 = vcombine.low %v200_v41, %v200_v41 }
 0x109   : > { %v4578_v42 = vadd.f32 %v6492_v34, %v5894_v31  ;;  %v6516_v45 = vpop.f32.mrb[3].mxu1  ;;  %6816 = vmatprep.subr.bf16.mxu1 %v7463_v48  ;;  %v7499_v34 = vld [vmem:[%s7818_s21 + $0x8f0] sm:$0xff]   ;;  %v7505_v40 = vld [vmem:[%s7818_s21 + $0x8b8] sm:$0xff]   ;;  %v5928_v44 = vcombine.high %v200_v41, %v200_v41  ;;  %v7511_v48 = vld [vmem:[%s7818_s21 + $0x9c0] sm:$0xff]  }
 0x10a   : > { %v7554_v41 = vld [vmem:[%s7818_s21 + $0xa50] sm:$0xff]  }
 0x10b   : > { %v8137_v47 = vadd.f32 %v6514_v37, %v4578_v42  ;;  %6795 = vmatpush3.bf16.msra.mxu0 %v7464_v49  ;;  %v7502_v37 = vld [vmem:[%s7818_s21 + $0x878] sm:$0xff]   ;;  %v201_v42 = vld [vmem:[%s8485_s0 + $0x88] sm:$0xff]  ;;  %v7512_v49 = vld [vmem:[%s7818_s21 + $0x900] sm:$0xff]  }
 0x10c   : > { %6817 = vmatpush3.bf16.msra.mxu1 %v7465_v50  ;;  %6796 = vmatprep.subr.bf16.mxu0 %v7466_v51  ;;  %v5929_v45 = vcombine.low %v201_v42, %v201_v42  ;;  %v5930_v46 = vcombine.high %v201_v42, %v201_v42  ;;  %v7513_v50 = vld [vmem:[%s7818_s21 + $0x980] sm:$0xff]   ;;  %v7514_v51 = vld [vmem:[%s7818_s21 + $0x948] sm:$0xff]   ;;  %v7555_v42 = vld [vmem:[%s7818_s21 + $0xad0] sm:$0xff]  }
 0x10d   : > { %6818 = vmatprep.subr.bf16.mxu1 %v7467_v52  ;;  %v7515_v52 = vld [vmem:[%s7818_s21 + $0x9c8] sm:$0xff]  }
 0x10f   : > { %6797 = vmatpush3.bf16.msra.mxu0 %v7468_v53  ;;  %v7516_v53 = vld [vmem:[%s7818_s21 + $0x908] sm:$0xff]  }
 0x110   : > { %6819 = vmatpush3.bf16.msra.mxu1 %v7469_v54  ;;  %6826 = vmatprep.subr.bf16.mxu0 %v7474_v61  ;;  %v7517_v54 = vld [vmem:[%s7818_s21 + $0x988] sm:$0xff]   ;;  %v7524_v61 = vld [vmem:[%s7818_s21 + $0x918] sm:$0xff]  }
 0x111   : > { %6848 = vmatprep.subr.bf16.mxu1 %v7475_v62  ;;  %v7525_v62 = vld [vmem:[%s7818_s21 + $0x998] sm:$0xff]  }
 0x112   : > { %5136 = vmatmul.mubr.bf16.vlgmr.msra.gmra.mrb[28].mxu0 %v5923_v57  ;;  %v7520_v57 = vld [vmem:[%s7818_s21 + $0x910] sm:$0xff]  }
 0x113   : > { %5176 = vmatmul.mubr.bf16.vlgmr.msra.gmra.mrb[28].mxu1 %v5925_v59  ;;  %6827 = vmatpush3.bf16.msra.mxu0 %v7476_v63  ;;  %v7522_v59 = vld [vmem:[%s7818_s21 + $0x958] sm:$0xff]   ;;  %v7526_v63 = vld [vmem:[%s7818_s21 + $0x960] sm:$0xff]  }
 0x114   : > { %6849 = vmatpush3.bf16.msra.mxu1 %v7477_v0  ;;  %6828 = vmatprep.subr.bf16.mxu0 %v7478_v1  ;;  %v7527_v0 = vld [vmem:[%s7818_s21 + $0x9e0] sm:$0xff]  }
 0x115   : > { %6850 = vmatprep.subr.bf16.mxu1 %v7479_v2  ;;  %5215 = vmatprep.mubr.bf16.mxu0 %v5928_v44  ;;  %v7528_v2 = vld [vmem:[%s7818_s21 + $0x920] sm:$0xff]   ;;  %v7557_v44 = vld [vmem:[%s7818_s21 + $0xa90] sm:$0xff]  }
 0x116   : > { %5255 = vmatprep.mubr.bf16.mxu1 %v5930_v46  ;;  %v7559_v46 = vld [vmem:[%s7818_s21 + $0xad8] sm:$0xff]  }
 0x117   : > { %6829 = vmatpush3.bf16.msra.mxu0 %v7480_v3 }
 0x118   : > { %6851 = vmatpush3.bf16.msra.mxu1 %v7481_v4  ;;  %6830 = vmatprep.subr.bf16.mxu0 %v7482_v5  ;;  %v7529_v4 = vld [vmem:[%s7818_s21 + $0x9a0] sm:$0xff]  }
 0x119   : > { %6852 = vmatprep.subr.bf16.mxu1 %v7483_v6 }
 0x11b   : > { %6831 = vmatpush3.bf16.msra.mxu0 %v7484_v7 }
 0x11c   : > { %6853 = vmatpush3.bf16.msra.mxu1 %v7485_v8  ;;  %6832 = vmatprep.subr.bf16.mxu0 %v7486_v9  ;;  %v7530_v8 = vld [vmem:[%s7818_s21 + $0x968] sm:$0xff]  }
 0x11d   : > { %6854 = vmatprep.subr.bf16.mxu1 %v7487_v10  ;;  %v7531_v10 = vld [vmem:[%s7818_s21 + $0x9e8] sm:$0xff]  }
 0x11f   : > { %6833 = vmatpush3.bf16.msra.mxu0 %v7488_v11 }
 0x120   : > { %6855 = vmatpush3.bf16.msra.mxu1 %v7489_v12  ;;  %6834 = vmatprep.subr.bf16.mxu0 %v7490_v13 }
 0x121   : > { %6856 = vmatprep.subr.bf16.mxu1 %v7491_v14  ;;  %v7532_v14 = vld [vmem:[%s7818_s21 + $0x928] sm:$0xff]  }
 0x123   : > { %6835 = vmatpush3.bf16.msra.mxu0 %v7492_v15  ;;  %v7533_v15 = vld [vmem:[%s7818_s21 + $0x9a8] sm:$0xff]  }
 0x124   : > { %6857 = vmatpush3.bf16.msra.mxu1 %v7493_v17  ;;  %6836 = vmatprep.subr.bf16.mxu0 %v7494_v23  ;;  %v7538_v23 = vld [vmem:[%s7818_s21 + $0x978] sm:$0xff]  }
 0x125   : > { %v6534_v16 = vpop.f32.mrb[4].mxu0  ;;  %6858 = vmatprep.subr.bf16.mxu1 %v7495_v25  ;;  %v7540_v25 = vld [vmem:[%s7818_s21 + $0x938] sm:$0xff]  }
 0x126   : > { %v6556_v18 = vpop.f32.mrb[4].mxu1  ;;  %v6535_v19 = vpop.f32.mrb[5].mxu0 }
 0x127   : > { %v6557_v20 = vpop.f32.mrb[5].mxu1  ;;  %v6536_v21 = vadd.f32 %v6535_v19, %v6534_v16  ;;  %v6537_v24 = vpop.f32.mrb[6].mxu0  ;;  %6837 = vmatpush3.bf16.msra.mxu0 %v7496_v28  ;;  %v7534_v19 = vld [vmem:[%s7818_s21 + $0x970] sm:$0xff]   ;;  %v203_v28 = vld [vmem:[%s8485_s0 + $0x98] sm:$0xff] }
 0x128   : > { %v6558_v22 = vadd.f32 %v6557_v20, %v6556_v18  ;;  %v6559_v26 = vpop.f32.mrb[6].mxu1  ;;  %v6538_v29 = vpop.f32.mrb[7].mxu0  ;;  %6859 = vmatpush3.bf16.msra.mxu1 %v7497_v30  ;;  %6838 = vmatprep.subr.bf16.mxu0 %v7498_v33  ;;  %v7535_v20 = vld [vmem:[%s7818_s21 + $0x9f0] sm:$0xff]   ;;  %v7539_v24 = vld [vmem:[%s7818_s21 + $0x9f8] sm:$0xff]   ;;  %v5934_v33 = vcombine.high %v203_v28, %v203_v28 }
 0x129   : > { %v4658_v27 = vadd.f32 %v6536_v21, %v8137_v47  ;;  %v6560_v31 = vpop.f32.mrb[7].mxu1  ;;  %6860 = vmatprep.subr.bf16.mxu1 %v7499_v34  ;;  %v7510_v47 = vld [vmem:[%s7818_s21 + $0x940] sm:$0xff]   ;;  %v7536_v21 = vld [vmem:[%s7818_s21 + $0x930] sm:$0xff]   ;;  %v7541_v26 = vld [vmem:[%s7818_s21 + $0x9b8] sm:$0xff]  }
 0x12a   : > { %v5933_v31 = vcombine.low %v203_v28, %v203_v28  ;;  %v7547_v34 = vld [vmem:[%s7818_s21 + $0xac0] sm:$0xff]   ;;  %v7591_v28 = vld [vmem:[%s7818_s21 + $0xbd0] sm:$0xff]  }
 0x12b   : > { %v8177_v32 = vadd.f32 %v6558_v22, %v4658_v27  ;;  %6839 = vmatpush3.bf16.msra.mxu0 %v7500_v35  ;;  %v7537_v22 = vld [vmem:[%s7818_s21 + $0x9b0] sm:$0xff]   ;;  %v7548_v35 = vld [vmem:[%s7818_s21 + $0xa00] sm:$0xff]  }
 0x12c   : > { %6861 = vmatpush3.bf16.msra.mxu1 %v7501_v36  ;;  %6840 = vmatprep.subr.bf16.mxu0 %v7502_v37  ;;  %v202_v27 = vld [vmem:[%s8485_s0 + $0x90] sm:$0xff]  ;;  %v7549_v36 = vld [vmem:[%s7818_s21 + $0xa80] sm:$0xff]   ;;  %v7550_v37 = vld [vmem:[%s7818_s21 + $0xa48] sm:$0xff]  }
 0x12d   : > { %6862 = vmatprep.subr.bf16.mxu1 %v7503_v38  ;;  %v5931_v29 = vcombine.low %v202_v27, %v202_v27  ;;  %v5932_v30 = vcombine.high %v202_v27, %v202_v27  ;;  %v7551_v38 = vld [vmem:[%s7818_s21 + $0xac8] sm:$0xff]   ;;  %v7590_v27 = vld [vmem:[%s7818_s21 + $0xb50] sm:$0xff]  }
 0x12f   : > { %6841 = vmatpush3.bf16.msra.mxu0 %v7504_v39  ;;  %v7552_v39 = vld [vmem:[%s7818_s21 + $0xa08] sm:$0xff]  }
 0x130   : > { %6863 = vmatpush3.bf16.msra.mxu1 %v7505_v40  ;;  %6870 = vmatprep.subr.bf16.mxu0 %v7510_v47  ;;  %v7553_v40 = vld [vmem:[%s7818_s21 + $0xa88] sm:$0xff]   ;;  %v7560_v47 = vld [vmem:[%s7818_s21 + $0xa18] sm:$0xff]  }
 0x131   : > { %6892 = vmatprep.subr.bf16.mxu1 %v7511_v48  ;;  %v7561_v48 = vld [vmem:[%s7818_s21 + $0xa98] sm:$0xff]  }
 0x132   : > { %5216 = vmatmul.mubr.bf16.vlgmr.msra.gmra.mrb[32].mxu0 %v5927_v43  ;;  %v7556_v43 = vld [vmem:[%s7818_s21 + $0xa10] sm:$0xff]  }
 0x133   : > { %5256 = vmatmul.mubr.bf16.vlgmr.msra.gmra.mrb[32].mxu1 %v5929_v45  ;;  %6871 = vmatpush3.bf16.msra.mxu0 %v7512_v49  ;;  %v7558_v45 = vld [vmem:[%s7818_s21 + $0xa58] sm:$0xff]   ;;  %v7562_v49 = vld [vmem:[%s7818_s21 + $0xa60] sm:$0xff]  }
 0x134   : > { %6893 = vmatpush3.bf16.msra.mxu1 %v7513_v50  ;;  %6872 = vmatprep.subr.bf16.mxu0 %v7514_v51  ;;  %v7563_v50 = vld [vmem:[%s7818_s21 + $0xae0] sm:$0xff]  }
 0x135   : > { %6894 = vmatprep.subr.bf16.mxu1 %v7515_v52  ;;  %5295 = vmatprep.mubr.bf16.mxu0 %v5932_v30  ;;  %v7564_v52 = vld [vmem:[%s7818_s21 + $0xa20] sm:$0xff]   ;;  %v7593_v30 = vld [vmem:[%s7818_s21 + $0xb90] sm:$0xff]  }
 0x136   : > { %5335 = vmatprep.mubr.bf16.mxu1 %v5934_v33  ;;  %v7596_v33 = vld [vmem:[%s7818_s21 + $0xb18] sm:$0xff]  }
 0x137   : > { %6873 = vmatpush3.bf16.msra.mxu0 %v7516_v53 }
 0x138   : > { %6895 = vmatpush3.bf16.msra.mxu1 %v7517_v54  ;;  %6874 = vmatprep.subr.bf16.mxu0 %v7518_v55  ;;  %v7565_v54 = vld [vmem:[%s7818_s21 + $0xaa0] sm:$0xff]  }
 0x139   : > { %6896 = vmatprep.subr.bf16.mxu1 %v7519_v56 }
 0x13b   : > { %6875 = vmatpush3.bf16.msra.mxu0 %v7520_v57  ;;  %v7566_v57 = vld [vmem:[%s7818_s21 + $0xa68] sm:$0xff]  }
 0x13c   : > { %6897 = vmatpush3.bf16.msra.mxu1 %v7521_v58  ;;  %6876 = vmatprep.subr.bf16.mxu0 %v7522_v59 }
 0x13d   : > { %6898 = vmatprep.subr.bf16.mxu1 %v7523_v60  ;;  %v7567_v60 = vld [vmem:[%s7818_s21 + $0xae8] sm:$0xff]  }
 0x13f   : > { %6877 = vmatpush3.bf16.msra.mxu0 %v7524_v61 }
 0x140   : > { %6899 = vmatpush3.bf16.msra.mxu1 %v7525_v62  ;;  %6878 = vmatprep.subr.bf16.mxu0 %v7526_v63  ;;  %v7568_v63 = vld [vmem:[%s7818_s21 + $0xa28] sm:$0xff]  }
 0x141   : > { %6900 = vmatprep.subr.bf16.mxu1 %v7527_v0 }
 0x143   : > { %6879 = vmatpush3.bf16.msra.mxu0 %v7528_v2 }
 0x144   : > { %6901 = vmatpush3.bf16.msra.mxu1 %v7529_v4  ;;  %6880 = vmatprep.subr.bf16.mxu0 %v7530_v8  ;;  %v7570_v4 = vld [vmem:[%s7818_s21 + $0xa70] sm:$0xff]  }
 0x145   : > { %v6578_v1 = vpop.f32.mrb[8].mxu0  ;;  %6902 = vmatprep.subr.bf16.mxu1 %v7531_v10  ;;  %v7573_v8 = vld [vmem:[%s7818_s21 + $0xab0] sm:$0xff]   ;;  %v7575_v10 = vld [vmem:[%s7818_s21 + $0xaf8] sm:$0xff]  }
 0x146   : > { %v6600_v3 = vpop.f32.mrb[8].mxu1  ;;  %v6579_v5 = vpop.f32.mrb[9].mxu0 }
 0x147   : > { %v6580_v6 = vadd.f32 %v6579_v5, %v6578_v1  ;;  %v6601_v7 = vpop.f32.mrb[9].mxu1  ;;  %v6581_v11 = vpop.f32.mrb[10].mxu0  ;;  %6881 = vmatpush3.bf16.msra.mxu0 %v7532_v14  ;;  %v7569_v1 = vld [vmem:[%s7818_s21 + $0xaa8] sm:$0xff]  }
 0x148   : > { %v6602_v9 = vadd.f32 %v6601_v7, %v6600_v3  ;;  %v6603_v13 = vpop.f32.mrb[10].mxu1  ;;  %v6582_v16 = vpop.f32.mrb[11].mxu0  ;;  %6903 = vmatpush3.bf16.msra.mxu1 %v7533_v15  ;;  %6882 = vmatprep.subr.bf16.mxu0 %v7534_v19  ;;  %v7572_v7 = vld [vmem:[%s7818_s21 + $0xa30] sm:$0xff]   ;;  %v7576_v11 = vld [vmem:[%s7818_s21 + $0xa38] sm:$0xff]   ;;  %v7582_v19 = vld [vmem:[%s7818_s21 + $0xb40] sm:$0xff]  }
 0x149   : > { %v4738_v12 = vadd.f32 %v6580_v6, %v8177_v32  ;;  %v6604_v18 = vpop.f32.mrb[11].mxu1  ;;  %6904 = vmatprep.subr.bf16.mxu1 %v7535_v20  ;;  %v7546_v32 = vld [vmem:[%s7818_s21 + $0xa40] sm:$0xff]   ;;  %v7571_v6 = vld [vmem:[%s7818_s21 + $0xaf0] sm:$0xff]   ;;  %v205_v16 = vld [vmem:[%s8485_s0 + $0xa8] sm:$0xff] }
 0x14a   : > { %v204_v13 = vld [vmem:[%s8485_s0 + $0xa0] sm:$0xff]  ;;  %v5938_v18 = vcombine.high %v205_v16, %v205_v16 }
 0x14b   : > { %v8218_v17 = vadd.f32 %v6602_v9, %v4738_v12  ;;  %6883 = vmatpush3.bf16.msra.mxu0 %v7536_v21  ;;  %v7574_v9 = vld [vmem:[%s7818_s21 + $0xa78] sm:$0xff]   ;;  %v5935_v14 = vcombine.low %v204_v13, %v204_v13  ;;  %v5936_v15 = vcombine.high %v204_v13, %v204_v13  ;;  %v7583_v20 = vld [vmem:[%s7818_s21 + $0xbc0] sm:$0xff]   ;;  %v7626_v13 = vld [vmem:[%s7818_s21 + $0xc50] sm:$0xff]  }
 0x14c   : > { %6905 = vmatpush3.bf16.msra.mxu1 %v7537_v22  ;;  %6884 = vmatprep.subr.bf16.mxu0 %v7538_v23  ;;  %v7577_v12 = vld [vmem:[%s7818_s21 + $0xab8] sm:$0xff]   ;;  %v7584_v21 = vld [vmem:[%s7818_s21 + $0xb00] sm:$0xff]   ;;  %v7586_v23 = vld [vmem:[%s7818_s21 + $0xb48] sm:$0xff]  }
 0x14d   : > { %6906 = vmatprep.subr.bf16.mxu1 %v7539_v24  ;;  %v7585_v22 = vld [vmem:[%s7818_s21 + $0xb80] sm:$0xff]   ;;  %v7587_v24 = vld [vmem:[%s7818_s21 + $0xbc8] sm:$0xff]  }
 0x14f   : > { %6885 = vmatpush3.bf16.msra.mxu0 %v7540_v25  ;;  %v7588_v25 = vld [vmem:[%s7818_s21 + $0xb08] sm:$0xff]  }
 0x150   : > { %6907 = vmatpush3.bf16.msra.mxu1 %v7541_v26  ;;  %6914 = vmatprep.subr.bf16.mxu0 %v7546_v32  ;;  %v7589_v26 = vld [vmem:[%s7818_s21 + $0xb88] sm:$0xff]   ;;  %v7595_v32 = vld [vmem:[%s7818_s21 + $0xbd8] sm:$0xff]  }
 0x151   : > { %6936 = vmatprep.subr.bf16.mxu1 %v7547_v34  ;;  %v7597_v34 = vld [vmem:[%s7818_s21 + $0xb98] sm:$0xff]  }
 0x152   : > { %5296 = vmatmul.mubr.bf16.vlgmr.msra.gmra.mrb[36].mxu0 %v5931_v29  ;;  %v7592_v29 = vld [vmem:[%s7818_s21 + $0xb10] sm:$0xff]  }
 0x153   : > { %5336 = vmatmul.mubr.bf16.vlgmr.msra.gmra.mrb[36].mxu1 %v5933_v31  ;;  %6915 = vmatpush3.bf16.msra.mxu0 %v7548_v35  ;;  %v7594_v31 = vld [vmem:[%s7818_s21 + $0xb58] sm:$0xff]   ;;  %v7598_v35 = vld [vmem:[%s7818_s21 + $0xb60] sm:$0xff]  }
 0x154   : > { %6937 = vmatpush3.bf16.msra.mxu1 %v7549_v36  ;;  %6916 = vmatprep.subr.bf16.mxu0 %v7550_v37  ;;  %v7599_v36 = vld [vmem:[%s7818_s21 + $0xbe0] sm:$0xff]  }
 0x155   : > { %6938 = vmatprep.subr.bf16.mxu1 %v7551_v38  ;;  %5375 = vmatprep.mubr.bf16.mxu0 %v5936_v15  ;;  %v7600_v38 = vld [vmem:[%s7818_s21 + $0xb20] sm:$0xff]   ;;  %v7628_v15 = vld [vmem:[%s7818_s21 + $0xc10] sm:$0xff]  }
 0x156   : > { %5415 = vmatprep.mubr.bf16.mxu1 %v5938_v18  ;;  %v7631_v18 = vld [vmem:[%s7818_s21 + $0xcd8] sm:$0xff]  }
 0x157   : > { %6917 = vmatpush3.bf16.msra.mxu0 %v7552_v39 }
 0x158   : > { %6939 = vmatpush3.bf16.msra.mxu1 %v7553_v40  ;;  %6918 = vmatprep.subr.bf16.mxu0 %v7554_v41  ;;  %v7601_v40 = vld [vmem:[%s7818_s21 + $0xba0] sm:$0xff]  }
 0x159   : > { %6940 = vmatprep.subr.bf16.mxu1 %v7555_v42 }
 0x15b   : > { %6919 = vmatpush3.bf16.msra.mxu0 %v7556_v43  ;;  %v7602_v43 = vld [vmem:[%s7818_s21 + $0xb68] sm:$0xff]  }
 0x15c   : > { %6941 = vmatpush3.bf16.msra.mxu1 %v7557_v44  ;;  %6920 = vmatprep.subr.bf16.mxu0 %v7558_v45 }
 0x15d   : > { %6942 = vmatprep.subr.bf16.mxu1 %v7559_v46  ;;  %v7603_v46 = vld [vmem:[%s7818_s21 + $0xbe8] sm:$0xff]  }
 0x15f   : > { %6921 = vmatpush3.bf16.msra.mxu0 %v7560_v47 }
 0x160   : > { %6943 = vmatpush3.bf16.msra.mxu1 %v7561_v48  ;;  %6922 = vmatprep.subr.bf16.mxu0 %v7562_v49  ;;  %v7604_v49 = vld [vmem:[%s7818_s21 + $0xb28] sm:$0xff]  }
 0x161   : > { %6944 = vmatprep.subr.bf16.mxu1 %v7563_v50 }
 0x163   : > { %6923 = vmatpush3.bf16.msra.mxu0 %v7564_v52 }
 0x164   : > { %6945 = vmatpush3.bf16.msra.mxu1 %v7565_v54  ;;  %6924 = vmatprep.subr.bf16.mxu0 %v7566_v57  ;;  %v7606_v54 = vld [vmem:[%s7818_s21 + $0xb70] sm:$0xff]  }
 0x165   : > { %v6622_v51 = vpop.f32.mrb[12].mxu0  ;;  %6946 = vmatprep.subr.bf16.mxu1 %v7567_v60  ;;  %v7608_v57 = vld [vmem:[%s7818_s21 + $0xb30] sm:$0xff]   ;;  %v7611_v60 = vld [vmem:[%s7818_s21 + $0xbf8] sm:$0xff]  }
 0x166   : > { %v6644_v53 = vpop.f32.mrb[12].mxu1  ;;  %v6623_v55 = vpop.f32.mrb[13].mxu0 }
 0x167   : > { %v6645_v56 = vpop.f32.mrb[13].mxu1  ;;  %v6624_v58 = vadd.f32 %v6623_v55, %v6622_v51  ;;  %v6625_v61 = vpop.f32.mrb[14].mxu0  ;;  %6925 = vmatpush3.bf16.msra.mxu0 %v7568_v63  ;;  %v7605_v51 = vld [vmem:[%s7818_s21 + $0xba8] sm:$0xff]   ;;  %v206_v63 = vld [vmem:[%s8485_s0 + $0xb0] sm:$0xff] }
 0x168   : > { %v6646_v59 = vadd.f32 %v6645_v56, %v6644_v53  ;;  %v6647_v62 = vpop.f32.mrb[14].mxu1  ;;  %v6626_v2 = vpop.f32.mrb[15].mxu0  ;;  %6947 = vmatpush3.bf16.msra.mxu1 %v7569_v1  ;;  %6926 = vmatprep.subr.bf16.mxu0 %v7570_v4  ;;  %v7607_v56 = vld [vmem:[%s7818_s21 + $0xbf0] sm:$0xff]   ;;  %v7612_v61 = vld [vmem:[%s7818_s21 + $0xb38] sm:$0xff]   ;;  %v5939_v1 = vcombine.low %v206_v63, %v206_v63 }
 0x169   : > { %v4818_v0 = vadd.f32 %v6624_v58, %v8218_v17  ;;  %v6648_v3 = vpop.f32.mrb[15].mxu1  ;;  %6948 = vmatprep.subr.bf16.mxu1 %v7571_v6  ;;  %v5937_v17 = vcombine.low %v205_v16, %v205_v16  ;;  %v7609_v58 = vld [vmem:[%s7818_s21 + $0xbb0] sm:$0xff]   ;;  %v7613_v62 = vld [vmem:[%s7818_s21 + $0xbb8] sm:$0xff]   ;;  %v5940_v2 = vcombine.high %v206_v63, %v206_v63  ;;  %v7619_v6 = vld [vmem:[%s7818_s21 + $0xcc0] sm:$0xff]  }
 0x16a   : > { %v7629_v16 = vld [vmem:[%s7818_s21 + $0xc90] sm:$0xff]  }
 0x16b   : > { %v8260_v5 = vadd.f32 %v6646_v59, %v4818_v0  ;;  %6927 = vmatpush3.bf16.msra.mxu0 %v7572_v7  ;;  %v7610_v59 = vld [vmem:[%s7818_s21 + $0xb78] sm:$0xff]   ;;  %v7620_v7 = vld [vmem:[%s7818_s21 + $0xc00] sm:$0xff]   ;;  %v7662_v63 = vld [vmem:[%s7818_s21 + $0xd50] sm:$0xff]  }
 0x16c   : > { %6949 = vmatpush3.bf16.msra.mxu1 %v7573_v8  ;;  %6928 = vmatprep.subr.bf16.mxu0 %v7574_v9  ;;  %v207_v0 = vld [vmem:[%s8485_s0 + $0xb8] sm:$0xff]  ;;  %v7621_v8 = vld [vmem:[%s7818_s21 + $0xc80] sm:$0xff]   ;;  %v7622_v9 = vld [vmem:[%s7818_s21 + $0xc48] sm:$0xff]  }
 0x16d   : > { %6950 = vmatprep.subr.bf16.mxu1 %v7575_v10  ;;  %v5941_v3 = vcombine.low %v207_v0, %v207_v0  ;;  %v5942_v4 = vcombine.high %v207_v0, %v207_v0  ;;  %v7623_v10 = vld [vmem:[%s7818_s21 + $0xcc8] sm:$0xff]   ;;  %v7663_v0 = vld [vmem:[%s7818_s21 + $0xdd0] sm:$0xff]  }
 0x16f   : > { %6929 = vmatpush3.bf16.msra.mxu0 %v7576_v11  ;;  %v7624_v11 = vld [vmem:[%s7818_s21 + $0xc08] sm:$0xff]  }
 0x170   : > { %6951 = vmatpush3.bf16.msra.mxu1 %v7577_v12  ;;  %6958 = vmatprep.subr.bf16.mxu0 %v7582_v19  ;;  %v7625_v12 = vld [vmem:[%s7818_s21 + $0xc88] sm:$0xff]   ;;  %v7632_v19 = vld [vmem:[%s7818_s21 + $0xc18] sm:$0xff]  }
 0x171   : > { %6980 = vmatprep.subr.bf16.mxu1 %v7583_v20  ;;  %v7633_v20 = vld [vmem:[%s7818_s21 + $0xc98] sm:$0xff]  }
 0x172   : > { %5376 = vmatmul.mubr.bf16.vlgmr.msra.gmra.mrb[40].mxu0 %v5935_v14  ;;  %v7627_v14 = vld [vmem:[%s7818_s21 + $0xcd0] sm:$0xff]  }
 0x173   : > { %5416 = vmatmul.mubr.bf16.vlgmr.msra.gmra.mrb[40].mxu1 %v5937_v17  ;;  %6959 = vmatpush3.bf16.msra.mxu0 %v7584_v21  ;;  %v7630_v17 = vld [vmem:[%s7818_s21 + $0xc58] sm:$0xff]   ;;  %v7634_v21 = vld [vmem:[%s7818_s21 + $0xc60] sm:$0xff]  }
 0x174   : > { %6981 = vmatpush3.bf16.msra.mxu1 %v7585_v22  ;;  %6960 = vmatprep.subr.bf16.mxu0 %v7586_v23  ;;  %v7635_v22 = vld [vmem:[%s7818_s21 + $0xce0] sm:$0xff]  }
 0x175   : > { %6982 = vmatprep.subr.bf16.mxu1 %v7587_v24  ;;  %5455 = vmatprep.mubr.bf16.mxu0 %v5940_v2  ;;  %v7636_v24 = vld [vmem:[%s7818_s21 + $0xc20] sm:$0xff]   ;;  %v7665_v2 = vld [vmem:[%s7818_s21 + $0xd90] sm:$0xff]  }
 0x176   : > { %5495 = vmatprep.mubr.bf16.mxu1 %v5942_v4  ;;  %v7667_v4 = vld [vmem:[%s7818_s21 + $0xdd8] sm:$0xff]  }
 0x177   : > { %6961 = vmatpush3.bf16.msra.mxu0 %v7588_v25 }
 0x178   : > { %6983 = vmatpush3.bf16.msra.mxu1 %v7589_v26  ;;  %6962 = vmatprep.subr.bf16.mxu0 %v7590_v27  ;;  %v7637_v26 = vld [vmem:[%s7818_s21 + $0xca0] sm:$0xff]  }
 0x179   : > { %6984 = vmatprep.subr.bf16.mxu1 %v7591_v28 }
 0x17b   : > { %6963 = vmatpush3.bf16.msra.mxu0 %v7592_v29 }
 0x17c   : > { %6985 = vmatpush3.bf16.msra.mxu1 %v7593_v30  ;;  %6964 = vmatprep.subr.bf16.mxu0 %v7594_v31  ;;  %v7638_v30 = vld [vmem:[%s7818_s21 + $0xc68] sm:$0xff]  }
 0x17d   : > { %6986 = vmatprep.subr.bf16.mxu1 %v7595_v32  ;;  %v7639_v32 = vld [vmem:[%s7818_s21 + $0xce8] sm:$0xff]  }
 0x17f   : > { %6965 = vmatpush3.bf16.msra.mxu0 %v7596_v33 }
 0x180   : > { %6987 = vmatpush3.bf16.msra.mxu1 %v7597_v34  ;;  %6966 = vmatprep.subr.bf16.mxu0 %v7598_v35 }
 0x181   : > { %6988 = vmatprep.subr.bf16.mxu1 %v7599_v36  ;;  %v7640_v36 = vld [vmem:[%s7818_s21 + $0xc28] sm:$0xff]  }
 0x183   : > { %6967 = vmatpush3.bf16.msra.mxu0 %v7600_v38 }
 0x184   : > { %6989 = vmatpush3.bf16.msra.mxu1 %v7601_v40  ;;  %6968 = vmatprep.subr.bf16.mxu0 %v7602_v43  ;;  %v7644_v43 = vld [vmem:[%s7818_s21 + $0xc30] sm:$0xff]  }
 0x185   : > { %v6666_v37 = vpop.f32.mrb[16].mxu0  ;;  %6990 = vmatprep.subr.bf16.mxu1 %v7603_v46  ;;  %v7647_v46 = vld [vmem:[%s7818_s21 + $0xcf8] sm:$0xff]  }
 0x186   : > { %v6688_v39 = vpop.f32.mrb[16].mxu1  ;;  %v6667_v41 = vpop.f32.mrb[17].mxu0 }
 0x187   : > { %v6689_v42 = vpop.f32.mrb[17].mxu1  ;;  %v6668_v44 = vadd.f32 %v6667_v41, %v6666_v37  ;;  %v6669_v47 = vpop.f32.mrb[18].mxu0  ;;  %6969 = vmatpush3.bf16.msra.mxu0 %v7604_v49  ;;  %v7641_v37 = vld [vmem:[%s7818_s21 + $0xca8] sm:$0xff]   ;;  %v7642_v41 = vld [vmem:[%s7818_s21 + $0xc70] sm:$0xff]   ;;  %v208_v49 = vld [vmem:[%s8485_s0 + $0xc0] sm:$0xff] }
 0x188   : > { %v6690_v45 = vadd.f32 %v6689_v42, %v6688_v39  ;;  %v6691_v48 = vpop.f32.mrb[18].mxu1  ;;  %v6670_v52 = vpop.f32.mrb[19].mxu0  ;;  %6991 = vmatpush3.bf16.msra.mxu1 %v7605_v51  ;;  %6970 = vmatprep.subr.bf16.mxu0 %v7606_v54  ;;  %v7643_v42 = vld [vmem:[%s7818_s21 + $0xcf0] sm:$0xff]   ;;  %v7648_v47 = vld [vmem:[%s7818_s21 + $0xc38] sm:$0xff]   ;;  %v5943_v51 = vcombine.low %v208_v49, %v208_v49  ;;  %v7654_v54 = vld [vmem:[%s7818_s21 + $0xd40] sm:$0xff]  }
 0x189   : > { %v4898_v50 = vadd.f32 %v6668_v44, %v8260_v5  ;;  %v6692_v53 = vpop.f32.mrb[19].mxu1  ;;  %6992 = vmatprep.subr.bf16.mxu1 %v7607_v56  ;;  %v7618_v5 = vld [vmem:[%s7818_s21 + $0xc40] sm:$0xff]   ;;  %v7645_v44 = vld [vmem:[%s7818_s21 + $0xcb0] sm:$0xff]   ;;  %v7649_v48 = vld [vmem:[%s7818_s21 + $0xcb8] sm:$0xff]   ;;  %v5944_v52 = vcombine.high %v208_v49, %v208_v49 }
 0x18a   : > { %v7655_v56 = vld [vmem:[%s7818_s21 + $0xdc0] sm:$0xff]   ;;  %v7698_v49 = vld [vmem:[%s7818_s21 + $0xe50] sm:$0xff]  }
 0x18b   : > { %v8301_v55 = vadd.f32 %v6690_v45, %v4898_v50  ;;  %6971 = vmatpush3.bf16.msra.mxu0 %v7608_v57  ;;  %v7646_v45 = vld [vmem:[%s7818_s21 + $0xc78] sm:$0xff]   ;;  %v209_v50 = vld [vmem:[%s8485_s0 + $0xc8] sm:$0xff]  ;;  %v7656_v57 = vld [vmem:[%s7818_s21 + $0xd00] sm:$0xff]  }
 0x18c   : > { %6993 = vmatpush3.bf16.msra.mxu1 %v7609_v58  ;;  %6972 = vmatprep.subr.bf16.mxu0 %v7610_v59  ;;  %v5945_v53 = vcombine.low %v209_v50, %v209_v50  ;;  %v7657_v58 = vld [vmem:[%s7818_s21 + $0xd80] sm:$0xff]   ;;  %v7658_v59 = vld [vmem:[%s7818_s21 + $0xd48] sm:$0xff]  }
 0x18d   : > { %6994 = vmatprep.subr.bf16.mxu1 %v7611_v60  ;;  %v7659_v60 = vld [vmem:[%s7818_s21 + $0xdc8] sm:$0xff]  }
 0x18f   : > { %6973 = vmatpush3.bf16.msra.mxu0 %v7612_v61  ;;  %v7660_v61 = vld [vmem:[%s7818_s21 + $0xd08] sm:$0xff]  }
 0x190   : > { %6995 = vmatpush3.bf16.msra.mxu1 %v7613_v62  ;;  %7002 = vmatprep.subr.bf16.mxu0 %v7618_v5  ;;  %v7661_v62 = vld [vmem:[%s7818_s21 + $0xd88] sm:$0xff]   ;;  %v7668_v5 = vld [vmem:[%s7818_s21 + $0xd18] sm:$0xff]  }
 0x191   : > { %7024 = vmatprep.subr.bf16.mxu1 %v7619_v6  ;;  %v7669_v6 = vld [vmem:[%s7818_s21 + $0xd98] sm:$0xff]  }
 0x192   : > { %5456 = vmatmul.mubr.bf16.vlgmr.msra.gmra.mrb[44].mxu0 %v5939_v1  ;;  %v7664_v1 = vld [vmem:[%s7818_s21 + $0xd10] sm:$0xff]  }
 0x193   : > { %5496 = vmatmul.mubr.bf16.vlgmr.msra.gmra.mrb[44].mxu1 %v5941_v3  ;;  %7003 = vmatpush3.bf16.msra.mxu0 %v7620_v7  ;;  %v7666_v3 = vld [vmem:[%s7818_s21 + $0xd58] sm:$0xff]   ;;  %v7670_v7 = vld [vmem:[%s7818_s21 + $0xd60] sm:$0xff]  }
 0x194   : > { %7025 = vmatpush3.bf16.msra.mxu1 %v7621_v8  ;;  %7004 = vmatprep.subr.bf16.mxu0 %v7622_v9  ;;  %v7671_v8 = vld [vmem:[%s7818_s21 + $0xde0] sm:$0xff]  }
 0x195   : > { %7026 = vmatprep.subr.bf16.mxu1 %v7623_v10  ;;  %5535 = vmatprep.mubr.bf16.mxu0 %v5944_v52  ;;  %v7672_v10 = vld [vmem:[%s7818_s21 + $0xd20] sm:$0xff]   ;;  %v7701_v52 = vld [vmem:[%s7818_s21 + $0xe90] sm:$0xff]  }
 0x197   : > { %7005 = vmatpush3.bf16.msra.mxu0 %v7624_v11 }
 0x198   : > { %7027 = vmatpush3.bf16.msra.mxu1 %v7625_v12  ;;  %7006 = vmatprep.subr.bf16.mxu0 %v7626_v13  ;;  %v7673_v12 = vld [vmem:[%s7818_s21 + $0xda0] sm:$0xff]  }
 0x199   : > { %7028 = vmatprep.subr.bf16.mxu1 %v7627_v14 }
 0x19b   : > { %7007 = vmatpush3.bf16.msra.mxu0 %v7628_v15  ;;  %v7674_v15 = vld [vmem:[%s7818_s21 + $0xd68] sm:$0xff]  }
 0x19c   : > { %7029 = vmatpush3.bf16.msra.mxu1 %v7629_v16  ;;  %7008 = vmatprep.subr.bf16.mxu0 %v7630_v17 }
 0x19d   : > { %7030 = vmatprep.subr.bf16.mxu1 %v7631_v18  ;;  %v7675_v18 = vld [vmem:[%s7818_s21 + $0xde8] sm:$0xff]  }
 0x19f   : > { %7009 = vmatpush3.bf16.msra.mxu0 %v7632_v19 }
 0x1a0   : > { %7031 = vmatpush3.bf16.msra.mxu1 %v7633_v20  ;;  %7010 = vmatprep.subr.bf16.mxu0 %v7634_v21  ;;  %v7676_v21 = vld [vmem:[%s7818_s21 + $0xd28] sm:$0xff]  }
 0x1a1   : > { %7032 = vmatprep.subr.bf16.mxu1 %v7635_v22 }
 0x1a3   : > { %7011 = vmatpush3.bf16.msra.mxu0 %v7636_v24 }
 0x1a4   : > { %7033 = vmatpush3.bf16.msra.mxu1 %v7637_v26  ;;  %7012 = vmatprep.subr.bf16.mxu0 %v7638_v30  ;;  %v7678_v26 = vld [vmem:[%s7818_s21 + $0xd70] sm:$0xff]  }
 0x1a5   : > { %v6710_v23 = vpop.f32.mrb[20].mxu0  ;;  %7034 = vmatprep.subr.bf16.mxu1 %v7639_v32  ;;  %v7681_v30 = vld [vmem:[%s7818_s21 + $0xdb0] sm:$0xff]   ;;  %v7683_v32 = vld [vmem:[%s7818_s21 + $0xdf8] sm:$0xff]  }
 0x1a6   : > { %v6732_v25 = vpop.f32.mrb[20].mxu1  ;;  %v6711_v27 = vpop.f32.mrb[21].mxu0 }
 0x1a7   : > { %v6712_v28 = vadd.f32 %v6711_v27, %v6710_v23  ;;  %v6733_v29 = vpop.f32.mrb[21].mxu1  ;;  %v6713_v33 = vpop.f32.mrb[22].mxu0  ;;  %7013 = vmatpush3.bf16.msra.mxu0 %v7640_v36  ;;  %v7677_v23 = vld [vmem:[%s7818_s21 + $0xda8] sm:$0xff]  }
 0x1a8   : > { %v6734_v31 = vadd.f32 %v6733_v29, %v6732_v25  ;;  %v6735_v35 = vpop.f32.mrb[22].mxu1  ;;  %v6714_v38 = vpop.f32.mrb[23].mxu0  ;;  %7035 = vmatpush3.bf16.msra.mxu1 %v7641_v37  ;;  %7014 = vmatprep.subr.bf16.mxu0 %v7642_v41  ;;  %v7680_v29 = vld [vmem:[%s7818_s21 + $0xd30] sm:$0xff]   ;;  %v7684_v33 = vld [vmem:[%s7818_s21 + $0xd38] sm:$0xff]   ;;  %v7690_v41 = vld [vmem:[%s7818_s21 + $0xe40] sm:$0xff]  }
 0x1a9   : > { %v4978_v34 = vadd.f32 %v6712_v28, %v8301_v55  ;;  %v6736_v40 = vpop.f32.mrb[23].mxu1  ;;  %7036 = vmatprep.subr.bf16.mxu1 %v7643_v42  ;;  %v5946_v55 = vcombine.high %v209_v50, %v209_v50  ;;  %v7679_v28 = vld [vmem:[%s7818_s21 + $0xdf0] sm:$0xff]   ;;  %v211_v38 = vld [vmem:[%s8485_s0 + $0xd8] sm:$0xff]  ;;  %v7691_v42 = vld [vmem:[%s7818_s21 + $0xec0] sm:$0xff]  }
 0x1aa   : > { %v210_v35 = vld [vmem:[%s8485_s0 + $0xd0] sm:$0xff]  ;;  %v5950_v40 = vcombine.high %v211_v38, %v211_v38 }
 0x1ab   : > { %v8341_v39 = vadd.f32 %v6734_v31, %v4978_v34  ;;  %7015 = vmatpush3.bf16.msra.mxu0 %v7644_v43  ;;  %5575 = vmatprep.mubr.bf16.mxu1 %v5946_v55  ;;  %v7682_v31 = vld [vmem:[%s7818_s21 + $0xd78] sm:$0xff]   ;;  %v5947_v36 = vcombine.low %v210_v35, %v210_v35  ;;  %v5948_v37 = vcombine.high %v210_v35, %v210_v35  ;;  %v7692_v43 = vld [vmem:[%s7818_s21 + $0xe00] sm:$0xff]   ;;  %v7699_v50 = vld [vmem:[%s7818_s21 + $0xed0] sm:$0xff]  }
 0x1ac   : > { %7037 = vmatpush3.bf16.msra.mxu1 %v7645_v44  ;;  %7016 = vmatprep.subr.bf16.mxu0 %v7646_v45  ;;  %v7685_v34 = vld [vmem:[%s7818_s21 + $0xdb8] sm:$0xff]   ;;  %v7693_v44 = vld [vmem:[%s7818_s21 + $0xe80] sm:$0xff]   ;;  %v7694_v45 = vld [vmem:[%s7818_s21 + $0xe48] sm:$0xff]  }
 0x1ad   : > { %7038 = vmatprep.subr.bf16.mxu1 %v7647_v46  ;;  %v7695_v46 = vld [vmem:[%s7818_s21 + $0xec8] sm:$0xff]   ;;  %v7704_v55 = vld [vmem:[%s7818_s21 + $0xe18] sm:$0xff]   ;;  %v7734_v35 = vld [vmem:[%s7818_s21 + $0xf50] sm:$0xff]  }
 0x1af   : > { %7017 = vmatpush3.bf16.msra.mxu0 %v7648_v47  ;;  %v7696_v47 = vld [vmem:[%s7818_s21 + $0xe08] sm:$0xff]  }
 0x1b0   : > { %7039 = vmatpush3.bf16.msra.mxu1 %v7649_v48  ;;  %7046 = vmatprep.subr.bf16.mxu0 %v7654_v54  ;;  %v7697_v48 = vld [vmem:[%s7818_s21 + $0xe88] sm:$0xff]   ;;  %v7703_v54 = vld [vmem:[%s7818_s21 + $0xed8] sm:$0xff]  }
 0x1b1   : > { %7068 = vmatprep.subr.bf16.mxu1 %v7655_v56  ;;  %v7705_v56 = vld [vmem:[%s7818_s21 + $0xe98] sm:$0xff]  }
 0x1b2   : > { %5536 = vmatmul.mubr.bf16.vlgmr.msra.gmra.mrb[48].mxu0 %v5943_v51  ;;  %v7700_v51 = vld [vmem:[%s7818_s21 + $0xe10] sm:$0xff]  }
 0x1b3   : > { %5576 = vmatmul.mubr.bf16.vlgmr.msra.gmra.mrb[48].mxu1 %v5945_v53  ;;  %7047 = vmatpush3.bf16.msra.mxu0 %v7656_v57  ;;  %v7702_v53 = vld [vmem:[%s7818_s21 + $0xe58] sm:$0xff]   ;;  %v7706_v57 = vld [vmem:[%s7818_s21 + $0xe60] sm:$0xff]  }
 0x1b4   : > { %7069 = vmatpush3.bf16.msra.mxu1 %v7657_v58  ;;  %7048 = vmatprep.subr.bf16.mxu0 %v7658_v59  ;;  %v7707_v58 = vld [vmem:[%s7818_s21 + $0xee0] sm:$0xff]  }
 0x1b5   : > { %7070 = vmatprep.subr.bf16.mxu1 %v7659_v60  ;;  %5615 = vmatprep.mubr.bf16.mxu0 %v5948_v37  ;;  %v7708_v60 = vld [vmem:[%s7818_s21 + $0xe20] sm:$0xff]   ;;  %v7736_v37 = vld [vmem:[%s7818_s21 + $0xf10] sm:$0xff]  }
 0x1b6   : > { %5655 = vmatprep.mubr.bf16.mxu1 %v5950_v40  ;;  %v7739_v40 = vld [vmem:[%s7818_s21 + $0xfd8] sm:$0xff]  }
 0x1b7   : > { %7049 = vmatpush3.bf16.msra.mxu0 %v7660_v61 }
 0x1b8   : > { %7071 = vmatpush3.bf16.msra.mxu1 %v7661_v62  ;;  %7050 = vmatprep.subr.bf16.mxu0 %v7662_v63  ;;  %v7709_v62 = vld [vmem:[%s7818_s21 + $0xea0] sm:$0xff]  }
 0x1b9   : > { %7072 = vmatprep.subr.bf16.mxu1 %v7663_v0 }
 0x1bb   : > { %7051 = vmatpush3.bf16.msra.mxu0 %v7664_v1  ;;  %v7710_v1 = vld [vmem:[%s7818_s21 + $0xe68] sm:$0xff]  }
 0x1bc   : > { %7073 = vmatpush3.bf16.msra.mxu1 %v7665_v2  ;;  %7052 = vmatprep.subr.bf16.mxu0 %v7666_v3 }
 0x1bd   : > { %7074 = vmatprep.subr.bf16.mxu1 %v7667_v4  ;;  %v7711_v4 = vld [vmem:[%s7818_s21 + $0xee8] sm:$0xff]  }
 0x1bf   : > { %7053 = vmatpush3.bf16.msra.mxu0 %v7668_v5 }
 0x1c0   : > { %7075 = vmatpush3.bf16.msra.mxu1 %v7669_v6  ;;  %7054 = vmatprep.subr.bf16.mxu0 %v7670_v7  ;;  %v7712_v7 = vld [vmem:[%s7818_s21 + $0xe28] sm:$0xff]  }
 0x1c1   : > { %7076 = vmatprep.subr.bf16.mxu1 %v7671_v8 }
 0x1c3   : > { %7055 = vmatpush3.bf16.msra.mxu0 %v7672_v10 }
 0x1c4   : > { %7077 = vmatpush3.bf16.msra.mxu1 %v7673_v12  ;;  %7056 = vmatprep.subr.bf16.mxu0 %v7674_v15  ;;  %v7714_v12 = vld [vmem:[%s7818_s21 + $0xe70] sm:$0xff]  }
 0x1c5   : > { %v6754_v9 = vpop.f32.mrb[24].mxu0  ;;  %7078 = vmatprep.subr.bf16.mxu1 %v7675_v18  ;;  %v7716_v15 = vld [vmem:[%s7818_s21 + $0xe30] sm:$0xff]   ;;  %v7719_v18 = vld [vmem:[%s7818_s21 + $0xef8] sm:$0xff]  }
 0x1c6   : > { %v6776_v11 = vpop.f32.mrb[24].mxu1  ;;  %v6755_v13 = vpop.f32.mrb[25].mxu0 }
 0x1c7   : > { %v6777_v14 = vpop.f32.mrb[25].mxu1  ;;  %v6756_v16 = vadd.f32 %v6755_v13, %v6754_v9  ;;  %v6757_v19 = vpop.f32.mrb[26].mxu0  ;;  %7057 = vmatpush3.bf16.msra.mxu0 %v7676_v21  ;;  %v7713_v9 = vld [vmem:[%s7818_s21 + $0xea8] sm:$0xff]   ;;  %v212_v21 = vld [vmem:[%s8485_s0 + $0xe0] sm:$0xff] }
 0x1c8   : > { %v6778_v17 = vadd.f32 %v6777_v14, %v6776_v11  ;;  %v6779_v20 = vpop.f32.mrb[26].mxu1  ;;  %v6758_v24 = vpop.f32.mrb[27].mxu0  ;;  %7079 = vmatpush3.bf16.msra.mxu1 %v7677_v23  ;;  %7058 = vmatprep.subr.bf16.mxu0 %v7678_v26  ;;  %v7715_v14 = vld [vmem:[%s7818_s21 + $0xef0] sm:$0xff]   ;;  %v7720_v19 = vld [vmem:[%s7818_s21 + $0xe38] sm:$0xff]   ;;  %v5951_v23 = vcombine.low %v212_v21, %v212_v21 }
 0x1c9   : > { %v5058_v22 = vadd.f32 %v6756_v16, %v8341_v39  ;;  %v6780_v25 = vpop.f32.mrb[27].mxu1  ;;  %7080 = vmatprep.subr.bf16.mxu1 %v7679_v28  ;;  %v5949_v39 = vcombine.low %v211_v38, %v211_v38  ;;  %v7717_v16 = vld [vmem:[%s7818_s21 + $0xeb0] sm:$0xff]   ;;  %v7721_v20 = vld [vmem:[%s7818_s21 + $0xeb8] sm:$0xff]   ;;  %v5952_v24 = vcombine.high %v212_v21, %v212_v21  ;;  %v7727_v28 = vld [vmem:[%s7818_s21 + $0xfc0] sm:$0xff]  }
 0x1ca   : > { %v7737_v38 = vld [vmem:[%s7818_s21 + $0xf90] sm:$0xff]  }
 0x1cb   : > { %v8383_v27 = vadd.f32 %v6778_v17, %v5058_v22  ;;  %7059 = vmatpush3.bf16.msra.mxu0 %v7680_v29  ;;  %v7718_v17 = vld [vmem:[%s7818_s21 + $0xe78] sm:$0xff]   ;;  %v213_v22 = vld [vmem:[%s8485_s0 + $0xe8] sm:$0xff]  ;;  %v7728_v29 = vld [vmem:[%s7818_s21 + $0xf00] sm:$0xff]  }
 0x1cc   : > { %7081 = vmatpush3.bf16.msra.mxu1 %v7681_v30  ;;  %7060 = vmatprep.subr.bf16.mxu0 %v7682_v31  ;;  %v5953_v25 = vcombine.low %v213_v22, %v213_v22  ;;  %v5954_v26 = vcombine.high %v213_v22, %v213_v22  ;;  %v7729_v30 = vld [vmem:[%s7818_s21 + $0xf80] sm:$0xff]   ;;  %v7730_v31 = vld [vmem:[%s7818_s21 + $0xf48] sm:$0xff]  }
 0x1cd   : > { %7082 = vmatprep.subr.bf16.mxu1 %v7683_v32  ;;  %v7731_v32 = vld [vmem:[%s7818_s21 + $0xfc8] sm:$0xff]  }
 0x1cf   : > { %7061 = vmatpush3.bf16.msra.mxu0 %v7684_v33  ;;  %v7732_v33 = vld [vmem:[%s7818_s21 + $0xf08] sm:$0xff]  }
 0x1d0   : > { %7083 = vmatpush3.bf16.msra.mxu1 %v7685_v34  ;;  %7090 = vmatprep.subr.bf16.mxu0 %v7690_v41  ;;  %v7733_v34 = vld [vmem:[%s7818_s21 + $0xf88] sm:$0xff]   ;;  %v7740_v41 = vld [vmem:[%s7818_s21 + $0xf18] sm:$0xff]  }
 0x1d1   : > { %7112 = vmatprep.subr.bf16.mxu1 %v7691_v42  ;;  %v7741_v42 = vld [vmem:[%s7818_s21 + $0xf98] sm:$0xff]  }
 0x1d2   : > { %5616 = vmatmul.mubr.bf16.vlgmr.msra.gmra.mrb[52].mxu0 %v5947_v36  ;;  %v7735_v36 = vld [vmem:[%s7818_s21 + $0xfd0] sm:$0xff]  }
 0x1d3   : > { %5656 = vmatmul.mubr.bf16.vlgmr.msra.gmra.mrb[52].mxu1 %v5949_v39  ;;  %7091 = vmatpush3.bf16.msra.mxu0 %v7692_v43  ;;  %v7738_v39 = vld [vmem:[%s7818_s21 + $0xf58] sm:$0xff]   ;;  %v7742_v43 = vld [vmem:[%s7818_s21 + $0xf60] sm:$0xff]  }
 0x1d4   : > { %7113 = vmatpush3.bf16.msra.mxu1 %v7693_v44  ;;  %7092 = vmatprep.subr.bf16.mxu0 %v7694_v45  ;;  %v7743_v44 = vld [vmem:[%s7818_s21 + $0xfe0] sm:$0xff]  }
 0x1d5   : > { %7114 = vmatprep.subr.bf16.mxu1 %v7695_v46  ;;  %5695 = vmatprep.mubr.bf16.mxu0 %v5952_v24  ;;  %v7744_v45 = vld [vmem:[%s7818_s21 + $0xf20] sm:$0xff]  }
 0x1d6   : > { %5735 = vmatprep.mubr.bf16.mxu1 %v5954_v26 }
 0x1d7   : > { %7093 = vmatpush3.bf16.msra.mxu0 %v7696_v47  ;;  %v7745_v47 = vld [vmem:[%s7818_s21 + $0xfa0] sm:$0xff]  }
 0x1d8   : > { %7115 = vmatpush3.bf16.msra.mxu1 %v7697_v48  ;;  %7094 = vmatprep.subr.bf16.mxu0 %v7698_v49 }
 0x1d9   : > { %7116 = vmatprep.subr.bf16.mxu1 %v7699_v50 }
 0x1db   : > { %7095 = vmatpush3.bf16.msra.mxu0 %v7700_v51 }
 0x1dc   : > { %7117 = vmatpush3.bf16.msra.mxu1 %v7701_v52  ;;  %7096 = vmatprep.subr.bf16.mxu0 %v7702_v53  ;;  %v7746_v53 = vld [vmem:[%s7818_s21 + $0xf68] sm:$0xff]  }
 0x1dd   : > { %7118 = vmatprep.subr.bf16.mxu1 %v7703_v54 }
 0x1df   : > { %7097 = vmatpush3.bf16.msra.mxu0 %v7704_v55  ;;  %v7747_v55 = vld [vmem:[%s7818_s21 + $0xfe8] sm:$0xff]  }
 0x1e0   : > { %7119 = vmatpush3.bf16.msra.mxu1 %v7705_v56  ;;  %7098 = vmatprep.subr.bf16.mxu0 %v7706_v57 }
 0x1e1   : > { %7120 = vmatprep.subr.bf16.mxu1 %v7707_v58  ;;  %v7748_v58 = vld [vmem:[%s7818_s21 + $0xf28] sm:$0xff]  }
 0x1e3   : > { %7099 = vmatpush3.bf16.msra.mxu0 %v7708_v60  ;;  %v7749_v60 = vld [vmem:[%s7818_s21 + $0xfa8] sm:$0xff]  }
 0x1e4   : > { %7121 = vmatpush3.bf16.msra.mxu1 %v7709_v62  ;;  %7100 = vmatprep.subr.bf16.mxu0 %v7710_v1  ;;  %v7752_v1 = vld [vmem:[%s7818_s21 + $0xf30] sm:$0xff]  }
 0x1e5   : > { %v6798_v59 = vpop.f32.mrb[28].mxu0  ;;  %7122 = vmatprep.subr.bf16.mxu1 %v7711_v4  ;;  %v7755_v4 = vld [vmem:[%s7818_s21 + $0xff8] sm:$0xff]  }
 0x1e6   : > { %v6820_v61 = vpop.f32.mrb[28].mxu1  ;;  %v6799_v63 = vpop.f32.mrb[29].mxu0 }
 0x1e7   : > { %v6821_v0 = vpop.f32.mrb[29].mxu1  ;;  %v6800_v2 = vadd.f32 %v6799_v63, %v6798_v59  ;;  %v6801_v5 = vpop.f32.mrb[30].mxu0  ;;  %7101 = vmatpush3.bf16.msra.mxu0 %v7712_v7  ;;  %v7750_v63 = vld [vmem:[%s7818_s21 + $0xf70] sm:$0xff]  }
 0x1e8   : > { %v6822_v3 = vadd.f32 %v6821_v0, %v6820_v61  ;;  %v6823_v6 = vpop.f32.mrb[30].mxu1  ;;  %v6802_v10 = vpop.f32.mrb[31].mxu0  ;;  %7123 = vmatpush3.bf16.msra.mxu1 %v7713_v9  ;;  %7102 = vmatprep.subr.bf16.mxu0 %v7714_v12  ;;  %v7751_v0 = vld [vmem:[%s7818_s21 + $0xff0] sm:$0xff]   ;;  %v7756_v5 = vld [vmem:[%s7818_s21 + $0xf38] sm:$0xff]  }
 0x1e9   : > { %v5138_v8 = vadd.f32 %v6800_v2, %v8383_v27  ;;  %v6824_v11 = vpop.f32.mrb[31].mxu1  ;;  %7124 = vmatprep.subr.bf16.mxu1 %v7715_v14  ;;  %v7726_v27 = vld [vmem:[%s7818_s21 + $0xf40] sm:$0xff]   ;;  %v7753_v2 = vld [vmem:[%s7818_s21 + $0xfb0] sm:$0xff]   ;;  %v7757_v6 = vld [vmem:[%s7818_s21 + $0xfb8] sm:$0xff]  }
 0x1ea   : > { %v214_v7 = vld [vmem:[%s8485_s0 + $0xf0] sm:$0xff] }
 0x1eb   : > { %v8424_v13 = vadd.f32 %v6822_v3, %v5138_v8  ;;  %7103 = vmatpush3.bf16.msra.mxu0 %v7716_v15  ;;  %v7754_v3 = vld [vmem:[%s7818_s21 + $0xf78] sm:$0xff]   ;;  %v5955_v9 = vcombine.low %v214_v7, %v214_v7  ;;  %v5956_v10 = vcombine.high %v214_v7, %v214_v7  ;;  %s5893_s21 = sshll.u32 %s8490_s13, 3 }
 0x1ec   : > { %7125 = vmatpush3.bf16.msra.mxu1 %v7717_v16  ;;  %7104 = vmatprep.subr.bf16.mxu0 %v7718_v17  ;;  %v215_v8 = vld [vmem:[%s8485_s0 + $0xf8] sm:$0xff]  ;;  %s182_s14 = scalar_lea.vmem %s8488_s3, %s5893_s21 }
 0x1ed   : > { %7126 = vmatprep.subr.bf16.mxu1 %v7719_v18  ;;  %v5957_v11 = vcombine.low %v215_v8, %v215_v8  ;;  %v5958_v12 = vcombine.high %v215_v8, %v215_v8 }
 0x1ef   : > { %7105 = vmatpush3.bf16.msra.mxu0 %v7720_v19 }
 0x1f0   : > { %7127 = vmatpush3.bf16.msra.mxu1 %v7721_v20  ;;  %7134 = vmatprep.subr.bf16.mxu0 %v7726_v27 }
 0x1f1   : > { %7156 = vmatprep.subr.bf16.mxu1 %v7727_v28 }
 0x1f2   : > { %5696 = vmatmul.mubr.bf16.vlgmr.msra.gmra.mrb[56].mxu0 %v5951_v23 }
 0x1f3   : > { %5736 = vmatmul.mubr.bf16.vlgmr.msra.gmra.mrb[56].mxu1 %v5953_v25  ;;  %7135 = vmatpush3.bf16.msra.mxu0 %v7728_v29 }
 0x1f4   : > { %7157 = vmatpush3.bf16.msra.mxu1 %v7729_v30  ;;  %7136 = vmatprep.subr.bf16.mxu0 %v7730_v31 }
 0x1f5   : > { %7158 = vmatprep.subr.bf16.mxu1 %v7731_v32  ;;  %5775 = vmatprep.mubr.bf16.mxu0 %v5956_v10 }
 0x1f6   : > { %5815 = vmatprep.mubr.bf16.mxu1 %v5958_v12 }
 0x1f7   : > { %7137 = vmatpush3.bf16.msra.mxu0 %v7732_v33 }
 0x1f8   : > { %7159 = vmatpush3.bf16.msra.mxu1 %v7733_v34  ;;  %7138 = vmatprep.subr.bf16.mxu0 %v7734_v35 }
 0x1f9   : > { %7160 = vmatprep.subr.bf16.mxu1 %v7735_v36 }
 0x1fb   : > { %7139 = vmatpush3.bf16.msra.mxu0 %v7736_v37 }
 0x1fc   : > { %7161 = vmatpush3.bf16.msra.mxu1 %v7737_v38  ;;  %7140 = vmatprep.subr.bf16.mxu0 %v7738_v39 }
 0x1fd   : > { %7162 = vmatprep.subr.bf16.mxu1 %v7739_v40 }
 0x1ff   : > { %7141 = vmatpush3.bf16.msra.mxu0 %v7740_v41 }
 0x200   : > { %7163 = vmatpush3.bf16.msra.mxu1 %v7741_v42  ;;  %7142 = vmatprep.subr.bf16.mxu0 %v7742_v43 }
 0x201   : > { %7164 = vmatprep.subr.bf16.mxu1 %v7743_v44 }
 0x203   : > { %7143 = vmatpush3.bf16.msra.mxu0 %v7744_v45 }
 0x204   : > { %7165 = vmatpush3.bf16.msra.mxu1 %v7745_v47  ;;  %7144 = vmatprep.subr.bf16.mxu0 %v7746_v53 }
 0x205   : > { %v6842_v46 = vpop.f32.mrb[32].mxu0  ;;  %7166 = vmatprep.subr.bf16.mxu1 %v7747_v55 }
 0x206   : > { %v6864_v48 = vpop.f32.mrb[32].mxu1  ;;  %v6843_v49 = vpop.f32.mrb[33].mxu0 }
 0x207   : > { %v6865_v50 = vpop.f32.mrb[33].mxu1  ;;  %v6844_v51 = vadd.f32 %v6843_v49, %v6842_v46  ;;  %v6845_v54 = vpop.f32.mrb[34].mxu0  ;;  %7145 = vmatpush3.bf16.msra.mxu0 %v7748_v58 }
 0x208   : > { %v6866_v52 = vadd.f32 %v6865_v50, %v6864_v48  ;;  %v6867_v56 = vpop.f32.mrb[34].mxu1  ;;  %v6846_v59 = vpop.f32.mrb[35].mxu0  ;;  %7167 = vmatpush3.bf16.msra.mxu1 %v7749_v60  ;;  %7146 = vmatprep.subr.bf16.mxu0 %v7750_v63 }
 0x209   : > { %v5218_v57 = vadd.f32 %v6844_v51, %v8424_v13  ;;  %v6868_v61 = vpop.f32.mrb[35].mxu1  ;;  %7168 = vmatprep.subr.bf16.mxu1 %v7751_v0 }
 0x20b   : > { %v5258_v62 = vadd.f32 %v6866_v52, %v5218_v57  ;;  %7147 = vmatpush3.bf16.msra.mxu0 %v7752_v1 }
 0x20c   : > { %7169 = vmatpush3.bf16.msra.mxu1 %v7753_v2  ;;  %7148 = vmatprep.subr.bf16.mxu0 %v7754_v3 }
 0x20d   : > { %7170 = vmatprep.subr.bf16.mxu1 %v7755_v4 }
 0x20f   : > { %7149 = vmatpush3.bf16.msra.mxu0 %v7756_v5 }
 0x210   : > { %7171 = vmatpush3.bf16.msra.mxu1 %v7757_v6 }
 0x212   : > { %5776 = vmatmul.mubr.bf16.vlgmr.msra.gmra.mrb[60].mxu0 %v5955_v9 }
 0x213   : > { %5816 = vmatmul.mubr.bf16.vlgmr.msra.gmra.mrb[60].mxu1 %v5957_v11 }
 0x225   : > { %v6886_v13 = vpop.f32.mrb[36].mxu0 }
 0x226   : > { %v6908_v14 = vpop.f32.mrb[36].mxu1  ;;  %v6887_v15 = vpop.f32.mrb[37].mxu0 }
 0x227   : > { %v6888_v16 = vadd.f32 %v6887_v15, %v6886_v13  ;;  %v6909_v17 = vpop.f32.mrb[37].mxu1  ;;  %v6889_v18 = vpop.f32.mrb[38].mxu0 }
 0x228   : > { %v6910_v19 = vadd.f32 %v6909_v17, %v6908_v14  ;;  %v6911_v20 = vpop.f32.mrb[38].mxu1  ;;  %v6890_v21 = vpop.f32.mrb[39].mxu0 }
 0x229   : > { %v5298_v22 = vadd.f32 %v6888_v16, %v5258_v62  ;;  %v6912_v23 = vpop.f32.mrb[39].mxu1 }
 0x22b   : > { %v5338_v24 = vadd.f32 %v6910_v19, %v5298_v22 }
 0x245   : > { %v6930_v25 = vpop.f32.mrb[40].mxu0 }
 0x246   : > { %v6952_v26 = vpop.f32.mrb[40].mxu1  ;;  %v6931_v27 = vpop.f32.mrb[41].mxu0 }
 0x247   : > { %v6953_v28 = vpop.f32.mrb[41].mxu1  ;;  %v6932_v29 = vadd.f32 %v6931_v27, %v6930_v25  ;;  %v6933_v31 = vpop.f32.mrb[42].mxu0 }
 0x248   : > { %v6954_v30 = vadd.f32 %v6953_v28, %v6952_v26  ;;  %v6955_v32 = vpop.f32.mrb[42].mxu1  ;;  %v6934_v33 = vpop.f32.mrb[43].mxu0 }
 0x249   : > { %v6956_v34 = vpop.f32.mrb[43].mxu1  ;;  %v5378_v35 = vadd.f32 %v6932_v29, %v5338_v24 }
 0x24b   : > { %v5418_v36 = vadd.f32 %v6954_v30, %v5378_v35 }
 0x265   : > { %v6974_v37 = vpop.f32.mrb[44].mxu0 }
 0x266   : > { %v6996_v38 = vpop.f32.mrb[44].mxu1  ;;  %v6975_v39 = vpop.f32.mrb[45].mxu0 }
 0x267   : > { %v6976_v40 = vadd.f32 %v6975_v39, %v6974_v37  ;;  %v6997_v41 = vpop.f32.mrb[45].mxu1  ;;  %v6977_v42 = vpop.f32.mrb[46].mxu0 }
 0x268   : > { %v6998_v43 = vadd.f32 %v6997_v41, %v6996_v38  ;;  %v6999_v44 = vpop.f32.mrb[46].mxu1  ;;  %v6978_v45 = vpop.f32.mrb[47].mxu0 }
 0x269   : > { %v5458_v46 = vadd.f32 %v6976_v40, %v5418_v36  ;;  %v7000_v47 = vpop.f32.mrb[47].mxu1 }
 0x26b   : > { %v5498_v48 = vadd.f32 %v6998_v43, %v5458_v46 }
 0x285   : > { %v7018_v49 = vpop.f32.mrb[48].mxu0 }
 0x286   : > { %v7040_v50 = vpop.f32.mrb[48].mxu1  ;;  %v7019_v51 = vpop.f32.mrb[49].mxu0 }
 0x287   : > { %v7020_v52 = vadd.f32 %v7019_v51, %v7018_v49  ;;  %v7041_v53 = vpop.f32.mrb[49].mxu1  ;;  %v7021_v54 = vpop.f32.mrb[50].mxu0 }
 0x288   : > { %v7042_v55 = vadd.f32 %v7041_v53, %v7040_v50  ;;  %v7043_v56 = vpop.f32.mrb[50].mxu1  ;;  %v7022_v57 = vpop.f32.mrb[51].mxu0 }
 0x289   : > { %v5538_v58 = vadd.f32 %v7020_v52, %v5498_v48  ;;  %v7044_v59 = vpop.f32.mrb[51].mxu1 }
 0x28b   : > { %v5578_v60 = vadd.f32 %v7042_v55, %v5538_v58 }
 0x2a5   : > { %v7062_v61 = vpop.f32.mrb[52].mxu0 }
 0x2a6   : > { %v7084_v62 = vpop.f32.mrb[52].mxu1  ;;  %v7063_v63 = vpop.f32.mrb[53].mxu0 }
 0x2a7   : > { %v7085_v0 = vpop.f32.mrb[53].mxu1  ;;  %v7064_v1 = vadd.f32 %v7063_v63, %v7062_v61  ;;  %v7065_v3 = vpop.f32.mrb[54].mxu0 }
 0x2a8   : > { %v7086_v2 = vadd.f32 %v7085_v0, %v7084_v62  ;;  %v7087_v4 = vpop.f32.mrb[54].mxu1  ;;  %v7066_v5 = vpop.f32.mrb[55].mxu0 }
 0x2a9   : > { %v7088_v6 = vpop.f32.mrb[55].mxu1  ;;  %v5618_v7 = vadd.f32 %v7064_v1, %v5578_v60 }
 0x2ab   : > { %v5658_v8 = vadd.f32 %v7086_v2, %v5618_v7 }
 0x2c5   : > { %v7106_v9 = vpop.f32.mrb[56].mxu0 }
 0x2c6   : > { %v7128_v10 = vpop.f32.mrb[56].mxu1  ;;  %v7107_v11 = vpop.f32.mrb[57].mxu0 }
 0x2c7   : > { %v7108_v12 = vadd.f32 %v7107_v11, %v7106_v9  ;;  %v7129_v13 = vpop.f32.mrb[57].mxu1  ;;  %v7109_v14 = vpop.f32.mrb[58].mxu0 }
 0x2c8   : > { %v7130_v15 = vadd.f32 %v7129_v13, %v7128_v10  ;;  %v7131_v16 = vpop.f32.mrb[58].mxu1  ;;  %v7110_v17 = vpop.f32.mrb[59].mxu0 }
 0x2c9   : > { %v5698_v18 = vadd.f32 %v7108_v12, %v5658_v8  ;;  %v7132_v19 = vpop.f32.mrb[59].mxu1 }
 0x2cb   : > { %v5738_v20 = vadd.f32 %v7130_v15, %v5698_v18 }
 0x2e5   : > { %v7150_v21 = vpop.f32.mrb[60].mxu0 }
 0x2e6   : > { %v7172_v22 = vpop.f32.mrb[60].mxu1  ;;  %v7151_v23 = vpop.f32.mrb[61].mxu0 }
 0x2e7   : > { %v7152_v24 = vadd.f32 %v7151_v23, %v7150_v21  ;;  %v7173_v25 = vpop.f32.mrb[61].mxu1  ;;  %v7153_v26 = vpop.f32.mrb[62].mxu0 }
 0x2e8   : > { %v7174_v27 = vadd.f32 %v7173_v25, %v7172_v22  ;;  %v7175_v28 = vpop.f32.mrb[62].mxu1  ;;  %v7154_v29 = vpop.f32.mrb[63].mxu0 }
 0x2e9   : > { %v5778_v30 = vadd.f32 %v7152_v24, %v5738_v20  ;;  %v7176_v31 = vpop.f32.mrb[63].mxu1 }
 0x2eb   : > { %v5818_v32 = vadd.f32 %v7174_v27, %v5778_v30 }
 0x2ed   : > { %5823 = vst [vmem:[%s182_s14] sm:$0xff] %v5818_v32 }
 0x2ee PF: > { %s13_s12 = sadd.s32 1, %s7768_s12  }
 0x2ef   : > { %p10_p4 = scmp.ge.s32.totalorder %s13_s12, 5  }
 0x2f1   :  { %12 = sbr.rel (!%p10_p4) target bundleno = 1 (0x1), region = 65 }

</bundles_post_ra>
